<compile_context>
chip_gen: v6e
topology: v6e:2x2x1
jax: 0.10.0
libtpu: 0.0.40
codegen_flags: <defaults>
</compile_context>

<pallas_src>
import functools

import jax
import jax.numpy as jnp
from jax.experimental import pallas as pl
from jax.experimental.pallas import tpu as pltpu


# --------------------------------------------------------------------------
# helpers
# --------------------------------------------------------------------------

def _pick_m_tile(m):
    """Largest M tile: whole array if small, else biggest pow2 divisor <= 512."""
    if m <= 512:
        return m
    for t in (512, 256, 128, 64, 32, 16, 8):
        if m % t == 0:
            return t
    return m


def _silu(x):
    return x * jax.nn.sigmoid(x)


# --------------------------------------------------------------------------
# Pallas kernels
# --------------------------------------------------------------------------

def _mm_kernel(a_ref, b_ref, bias_ref, o_ref, *, activation):
    """Single-K-step matmul with fused epilogue: o = act(a @ b + bias)."""
    y = jnp.dot(a_ref[...], b_ref[...],
                preferred_element_type=jnp.float32) + bias_ref[...]
    if activation == "relu":
        y = jnp.maximum(y, 0.0)
    elif activation == "silu":
        y = _silu(y)
    o_ref[...] = y.astype(o_ref.dtype)


def _maxpool_kernel(x_ref, o_ref, *, c):
    """2x2 max pool.  x_ref: [rows, 2(h-pair), OW, 2*C] -> o_ref: [rows, OW, C].

    The four window elements are static contiguous slices of the block
    (no strided loads, no HBM-materialized shifted views)."""
    a = x_ref[:, 0, :, 0:c]
    b = x_ref[:, 0, :, c:2 * c]
    cc = x_ref[:, 1, :, 0:c]
    d = x_ref[:, 1, :, c:2 * c]
    o_ref[...] = jnp.maximum(jnp.maximum(a, b), jnp.maximum(cc, d))


def _tail_kernel(flat_ref, fcw_ref, fcb_ref,
                 e0_ref, c0w1_ref, c0b1_ref, c0w2_ref, c0b2_ref,
                 e1_ref, c1w1_ref, c1b1_ref, c1w2_ref, c1b2_ref,
                 jw1_ref, jb1_ref, jw2_ref, jb2_ref,
                 o_ref, *, dim):
    """Fused tail: image FC + both ConditionalEmbedding MLPs + joiner MLP.

    The torch.cat([img, lab0, lab1]) is folded away by splitting the joiner's
    first weight matrix into three K-slices and summing three partial dots."""
    f32 = jnp.float32
    bf16 = jnp.bfloat16

    def linear(x, w_ref, b_ref):
        return jnp.dot(x.astype(bf16), w_ref[...],
                       preferred_element_type=f32) + b_ref[...]

    # MNISTEmbedding final Linear
    img = linear(flat_ref[...], fcw_ref, fcb_ref)                         # (B, dim)
    # ConditionalEmbedding 0: Linear -> SiLU -> Linear
    emb0 = linear(_silu(linear(e0_ref[...], c0w1_ref, c0b1_ref)),
                  c0w2_ref, c0b2_ref)
    # ConditionalEmbedding 1
    emb1 = linear(_silu(linear(e1_ref[...], c1w1_ref, c1b1_ref)),
                  c1w2_ref, c1b2_ref)
    # Joiner: Linear(3*dim, dim) with concat folded into three K-slices of w1.
    h = (jnp.dot(img.astype(bf16), jw1_ref[0:dim, :], preferred_element_type=f32)
         + jnp.dot(emb0.astype(bf16), jw1_ref[dim:2 * dim, :], preferred_element_type=f32)
         + jnp.dot(emb1.astype(bf16), jw1_ref[2 * dim:3 * dim, :], preferred_element_type=f32)
         + jb1_ref[...])
    h = _silu(h)
    out = jnp.dot(h.astype(bf16), jw2_ref[...], preferred_element_type=f32) + jb2_ref[...]
    o_ref[...] = out.astype(o_ref.dtype)


# --------------------------------------------------------------------------
# Pallas wrappers
# --------------------------------------------------------------------------

def matmul_bias(a, b, bias, activation="none", out_dtype=jnp.float32):
    """act(a @ b + bias). a: [M, K] bf16, b: [K, N] bf16, bias: [1, N] f32.

    Full-K / full-N blocks (no padding anywhere); only M is tiled."""
    m, k = a.shape
    k2, n = b.shape
    assert k == k2 and bias.shape == (1, n)
    tm = _pick_m_tile(m)
    return pl.pallas_call(
        functools.partial(_mm_kernel, activation=activation),
        out_shape=jax.ShapeDtypeStruct((m, n), out_dtype),
        grid=(m // tm,),
        in_specs=[pl.BlockSpec((tm, k), lambda i: (i, 0)),
                  pl.BlockSpec((k, n), lambda i: (0, 0)),
                  pl.BlockSpec((1, n), lambda i: (0, 0))],
        out_specs=pl.BlockSpec((tm, n), lambda i: (i, 0)),
        compiler_params=pltpu.CompilerParams(
            dimension_semantics=("parallel",)),
    )(a.astype(jnp.bfloat16), b, bias)


def conv2d_bias_relu(x_nhwc, w_mat, bias, k, padding, cout):
    """'same' Conv2d via one conv_general_dilated_patches + Pallas matmul.

    w_mat: [Cin*k*k, Cout] with rows ordered (cin, kh, kw) -- the feature
    ordering produced by lax.conv_general_dilated_patches."""
    n, h, w, cin = x_nhwc.shape
    patches = jax.lax.conv_general_dilated_patches(
        x_nhwc, filter_shape=(k, k), window_strides=(1, 1),
        padding=((padding, padding), (padding, padding)),
        dimension_numbers=("NHWC", "HWIO", "NHWC"))      # (n, h, w, cin*k*k)
    a = patches.reshape(n * h * w, cin * k * k)
    y = matmul_bias(a, w_mat, bias, activation="relu", out_dtype=jnp.bfloat16)
    return y.reshape(n, h, w, cout)


def maxpool_2x2_nhwc(x_nhwc):
    """MaxPool2d(2): single grid=(1,) kernel, input reshaped (free, contiguous)
    so the 4 window elements are static in-kernel slices."""
    n, h, w, c = x_nhwc.shape
    oh, ow = h // 2, w // 2
    xr = x_nhwc.reshape(n * oh, 2, ow, 2 * c)
    out = pl.pallas_call(
        functools.partial(_maxpool_kernel, c=c),
        out_shape=jax.ShapeDtypeStruct((n * oh, ow, c), x_nhwc.dtype),
        grid=(1,),
        in_specs=[pl.BlockSpec((n * oh, 2, ow, 2 * c), lambda i: (0, 0, 0, 0))],
        out_specs=pl.BlockSpec((n * oh, ow, c), lambda i: (0, 0, 0)),
    )(xr)
    return out.reshape(n, oh, ow, c)


def fused_tail(params, flat, emb0, emb1):
    """One pallas_call for: image FC, cond0 MLP, cond1 MLP, joiner MLP."""
    fc_w, fc_b = params['img']['fc']
    c0, c1, jn = params['cond0'], params['cond1'], params['joiner']
    dim = fc_w.shape[1]
    b = flat.shape[0]
    args = (flat.astype(jnp.bfloat16), fc_w, fc_b,
            emb0, c0['lin1'][0], c0['lin1'][1], c0['lin2'][0], c0['lin2'][1],
            emb1, c1['lin1'][0], c1['lin1'][1], c1['lin2'][0], c1['lin2'][1],
            jn['lin1'][0], jn['lin1'][1], jn['lin2'][0], jn['lin2'][1])
    in_specs = [pl.BlockSpec(a.shape, lambda i: (0, 0)) for a in args]
    return pl.pallas_call(
        functools.partial(_tail_kernel, dim=dim),
        out_shape=jax.ShapeDtypeStruct((b, dim), jnp.float32),
        grid=(1,),
        in_specs=in_specs,
        out_specs=pl.BlockSpec((b, dim), lambda i: (0, 0)),
    )(*args)


# --------------------------------------------------------------------------
# parameters (deterministic synthetic init, PyTorch-like; pre-transposed /
# pre-flattened / bias pre-shaped ONCE at init)
# --------------------------------------------------------------------------

def _linear_params(key, fan_in, fan_out):
    kw, kb = jax.random.split(key)
    bound = 1.0 / (fan_in ** 0.5)
    w = jax.random.uniform(kw, (fan_in, fan_out), jnp.float32, -bound, bound)
    b = jax.random.uniform(kb, (1, fan_out), jnp.float32, -bound, bound)
    return w.astype(jnp.bfloat16), b


def _conv_params(key, cin, cout, k):
    kw, kb = jax.random.split(key)
    fan_in = cin * k * k
    bound = 1.0 / (fan_in ** 0.5)
    # Rows ordered (cin, kh, kw) to match conv_general_dilated_patches features.
    w = jax.random.uniform(kw, (cin, k, k, cout), jnp.float32, -bound, bound)
    b = jax.random.uniform(kb, (1, cout), jnp.float32, -bound, bound)
    return w.reshape(fan_in, cout).astype(jnp.bfloat16), b


def _fc_params(key, c, h, w, dim):
    kw, kb = jax.random.split(key)
    fan_in = c * h * w
    bound = 1.0 / (fan_in ** 0.5)
    # PyTorch Flatten order is (C,H,W); pre-permute rows to (H,W,C) once at init
    # so the NHWC conv output flattens directly (no transpose in the forward).
    w_chw = jax.random.uniform(kw, (c, h, w, dim), jnp.float32, -bound, bound)
    w_hwc = jnp.transpose(w_chw, (1, 2, 0, 3)).reshape(fan_in, dim)
    b = jax.random.uniform(kb, (1, dim), jnp.float32, -bound, bound)
    return w_hwc.astype(jnp.bfloat16), b


def _cond_params(key, num_labels, d_model, dim):
    k0, k1, k2 = jax.random.split(key, 3)
    table = jax.random.normal(k0, (num_labels + 1, d_model), jnp.float32)
    table = table.at[0].set(0.0)                      # padding_idx=0
    return dict(table=table.astype(jnp.bfloat16),
                lin1=_linear_params(k1, d_model, dim),
                lin2=_linear_params(k2, dim, dim))


def init_params(key, num_labels_0, num_labels_1, d_model, channels, dim, hw=32):
    assert d_model % 2 == 0
    pooled = {28: 7, 32: 8}[hw]
    keys = jax.random.split(key, 7)
    return dict(
        img=dict(conv1=_conv_params(keys[0], channels, 16, 5),
                 conv2=_conv_params(keys[1], 16, 32, 5),
                 fc=_fc_params(keys[2], 32, pooled, pooled, dim)),
        cond0=_cond_params(keys[3], num_labels_0, d_model, dim),
        cond1=_cond_params(keys[4], num_labels_1, d_model, dim),
        joiner=dict(lin1=_linear_params(keys[5], 3 * dim, dim),
                    lin2=_linear_params(keys[6], dim, dim)),
    )


# --------------------------------------------------------------------------
# forward pass
# --------------------------------------------------------------------------

def mnist_embedding_features(p, img_nchw):
    x = jnp.transpose(img_nchw, (0, 2, 3, 1)).astype(jnp.bfloat16)   # NCHW -> NHWC
    n = x.shape[0]
    w1, b1 = p['conv1']
    w2, b2 = p['conv2']
    x = conv2d_bias_relu(x, w1, b1, k=5, padding=2, cout=16)
    x = maxpool_2x2_nhwc(x)
    x = conv2d_bias_relu(x, w2, b2, k=5, padding=2, cout=32)
    x = maxpool_2x2_nhwc(x)
    # (h, w, c) flatten order matches the pre-permuted FC weight rows.
    return x.reshape(n, -1)


def joint_embedding2_forward(params, img, lab_0, lab_1):
    # TODO(synk): drop_label / drop_image random masking not reproduced
    #             (only the default drop_label=False, drop_image=False path).
    flat = mnist_embedding_features(params['img'], img)
    # nn.Embedding lookup == a 2-row gather (padding_idx=0 row zeroed at init).
    emb0 = jnp.take(params['cond0']['table'], lab_0.astype(jnp.int32), axis=0)
    emb1 = jnp.take(params['cond1']['table'], lab_1.astype(jnp.int32), axis=0)
    return fused_tail(params, flat, emb0, emb1)


# --------------------------------------------------------------------------

if __name__ == "__main__":
    key = jax.random.PRNGKey(0)
    kp, kimg, k0, k1 = jax.random.split(key, 4)

    num_labels_0, num_labels_1 = 10, 5
    d_model, channels, dim, hw = 16, 1, 32, 32
    bsz = 2

    params = init_params(kp, num_labels_0, num_labels_1, d_model, channels, dim, hw)
    img = jax.random.normal(kimg, (bsz, channels, hw, hw), jnp.float32)      # NCHW
    lab_0 = jax.random.randint(k0, (bsz,), 0, num_labels_0 + 1)
    lab_1 = jax.random.randint(k1, (bsz,), 0, num_labels_1 + 1)

    fwd = jax.jit(joint_embedding2_forward)
    out = jax.block_until_ready(fwd(params, img, lab_0, lab_1))

    assert out.shape == (bsz, dim), out.shape
    assert bool(jnp.all(jnp.isfinite(out)))
    print("KERNEL_OK")
</pallas_src>

<mosaic_0001>
module attributes {stable_mosaic.version = 11 : i64} {
  func.func @_mm_kernel(%arg0: i32, %arg1: memref<512x25xbf16, #tpu.memory_space<vmem>>, %arg2: memref<25x16xbf16, #tpu.memory_space<vmem>>, %arg3: memref<1x16xf32, #tpu.memory_space<vmem>>, %arg4: memref<512x16xbf16, #tpu.memory_space<vmem>>) attributes {dimension_semantics = [#tpu.dimension_semantics<parallel>], iteration_bounds = array<i64: 4>, scalar_prefetch = 0 : i64, scratch_operands = 0 : i64, tpu.core_type = #tpu.core_type<tc>, window_params = [{transform_indices = @transform_0, window_bounds = array<i64: 512, 25>}, {pipeline_mode = #tpu.pipeline_mode<synchronous>, transform_indices = @transform_1, window_bounds = array<i64: 25, 16>}, {pipeline_mode = #tpu.pipeline_mode<synchronous>, transform_indices = @transform_2, window_bounds = array<i64: 1, 16>}, {transform_indices = @transform_3, window_bounds = array<i64: 512, 16>}]} {
    %c0 = arith.constant 0 : index
    %c0_0 = arith.constant 0 : index
    %0 = vector.load %arg1[%c0, %c0_0] : memref<512x25xbf16, #tpu.memory_space<vmem>>, vector<512x25xbf16>
    %c0_1 = arith.constant 0 : index
    %c0_2 = arith.constant 0 : index
    %1 = vector.load %arg2[%c0_1, %c0_2] : memref<25x16xbf16, #tpu.memory_space<vmem>>, vector<25x16xbf16>
    %cst = arith.constant dense<0.000000e+00> : vector<512x16xf32>
    %2 = tpu.matmul %0, %1, %cst {dimension_numbers = #tpu.dot_dimension_numbers<[1], [0], [0], [1], [0, 0, 1, 1], [], []>} : vector<512x25xbf16>, vector<25x16xbf16>, vector<512x16xf32> -> vector<512x16xf32>
    %c0_3 = arith.constant 0 : index
    %c0_4 = arith.constant 0 : index
    %3 = vector.load %arg3[%c0_3, %c0_4] : memref<1x16xf32, #tpu.memory_space<vmem>>, vector<1x16xf32>
    %4 = vector.broadcast %3 : vector<1x16xf32> to vector<512x16xf32>
    %5 = arith.addf %2, %4 : vector<512x16xf32>
    %cst_5 = arith.constant 0.000000e+00 : f32
    %6 = vector.broadcast %cst_5 : f32 to vector<512x16xf32>
    %7 = arith.maximumf %5, %6 : vector<512x16xf32>
    %8 = arith.truncf %7 : vector<512x16xf32> to vector<512x16xbf16>
    %c0_6 = arith.constant 0 : index
    %c0_7 = arith.constant 0 : index
    %9 = vector.load %arg4[%c0_6, %c0_7] : memref<512x16xbf16, #tpu.memory_space<vmem>>, vector<512x16xbf16>
    tpu.vector_store %arg4[%c0_6, %c0_7], %8 {strides = array<i32>} : memref<512x16xbf16, #tpu.memory_space<vmem>>, vector<512x16xbf16>,
    return
  }
  func.func @transform_0(%arg0: i32) -> (i32, i32) {
    %c0_i32 = arith.constant 0 : i32
    %c0_i32_0 = arith.constant 0 : i32
    return %arg0, %c0_i32 : i32, i32
  }
  func.func @transform_1(%arg0: i32) -> (i32, i32) {
    %c0_i32 = arith.constant 0 : i32
    %c0_i32_0 = arith.constant 0 : i32
    %c0_i32_1 = arith.constant 0 : i32
    return %c0_i32, %c0_i32_0 : i32, i32
  }
  func.func @transform_2(%arg0: i32) -> (i32, i32) {
    %c0_i32 = arith.constant 0 : i32
    %c0_i32_0 = arith.constant 0 : i32
    %c0_i32_1 = arith.constant 0 : i32
    return %c0_i32, %c0_i32_0 : i32, i32
  }
  func.func @transform_3(%arg0: i32) -> (i32, i32) {
    %c0_i32 = arith.constant 0 : i32
    %c0_i32_0 = arith.constant 0 : i32
    return %arg0, %c0_i32 : i32, i32
  }
}

module attributes {stable_mosaic.version = 11 : i64} {
  func.func @_maxpool_kernel(%arg0: i32, %arg1: memref<32x2x16x32xbf16, #tpu.memory_space<vmem>>, %arg2: memref<32x16x16xbf16, #tpu.memory_space<vmem>>) attributes {dimension_semantics = [#tpu.dimension_semantics<arbitrary>], iteration_bounds = array<i64: 1>, scalar_prefetch = 0 : i64, scratch_operands = 0 : i64, tpu.core_type = #tpu.core_type<tc>, window_params = [{pipeline_mode = #tpu.pipeline_mode<synchronous>, transform_indices = @transform_0, window_bounds = array<i64: 32, 2, 16, 32>}, {pipeline_mode = #tpu.pipeline_mode<synchronous>, transform_indices = @transform_1, window_bounds = array<i64: 32, 16, 16>}]} {
    %c0 = arith.constant 0 : index
    %c0_0 = arith.constant 0 : index
    %c0_1 = arith.constant 0 : index
    %c0_2 = arith.constant 0 : index
    %0 = vector.load %arg1[%c0, %c0_0, %c0_1, %c0_2] : memref<32x2x16x32xbf16, #tpu.memory_space<vmem>>, vector<32x1x16x16xbf16>
    %1 = vector.shape_cast %0 : vector<32x1x16x16xbf16> to vector<32x16x16xbf16>
    %c0_3 = arith.constant 0 : index
    %c0_4 = arith.constant 0 : index
    %c0_5 = arith.constant 0 : index
    %c16 = arith.constant 16 : index
    %2 = vector.load %arg1[%c0_3, %c0_4, %c0_5, %c16] : memref<32x2x16x32xbf16, #tpu.memory_space<vmem>>, vector<32x1x16x16xbf16>
    %3 = vector.shape_cast %2 : vector<32x1x16x16xbf16> to vector<32x16x16xbf16>
    %c0_6 = arith.constant 0 : index
    %c1 = arith.constant 1 : index
    %c0_7 = arith.constant 0 : index
    %c0_8 = arith.constant 0 : index
    %4 = vector.load %arg1[%c0_6, %c1, %c0_7, %c0_8] : memref<32x2x16x32xbf16, #tpu.memory_space<vmem>>, vector<32x1x16x16xbf16>
    %5 = vector.shape_cast %4 : vector<32x1x16x16xbf16> to vector<32x16x16xbf16>
    %c0_9 = arith.constant 0 : index
    %c1_10 = arith.constant 1 : index
    %c0_11 = arith.constant 0 : index
    %c16_12 = arith.constant 16 : index
    %6 = vector.load %arg1[%c0_9, %c1_10, %c0_11, %c16_12] : memref<32x2x16x32xbf16, #tpu.memory_space<vmem>>, vector<32x1x16x16xbf16>
    %7 = vector.shape_cast %6 : vector<32x1x16x16xbf16> to vector<32x16x16xbf16>
    %8 = arith.maximumf %1, %3 : vector<32x16x16xbf16>
    %9 = arith.maximumf %5, %7 : vector<32x16x16xbf16>
    %10 = arith.maximumf %8, %9 : vector<32x16x16xbf16>
    %c0_13 = arith.constant 0 : index
    %c0_14 = arith.constant 0 : index
    %c0_15 = arith.constant 0 : index
    %11 = vector.load %arg2[%c0_13, %c0_14, %c0_15] : memref<32x16x16xbf16, #tpu.memory_space<vmem>>, vector<32x16x16xbf16>
    tpu.vector_store %arg2[%c0_13, %c0_14, %c0_15], %10 {strides = array<i32>} : memref<32x16x16xbf16, #tpu.memory_space<vmem>>, vector<32x16x16xbf16>,
    return
  }
  func.func @transform_0(%arg0: i32) -> (i32, i32, i32, i32) {
    %c0_i32 = arith.constant 0 : i32
    %c0_i32_0 = arith.constant 0 : i32
    %c0_i32_1 = arith.constant 0 : i32
    %c0_i32_2 = arith.constant 0 : i32
    %c0_i32_3 = arith.constant 0 : i32
    return %c0_i32, %c0_i32_0, %c0_i32_1, %c0_i32_2 : i32, i32, i32, i32
  }
  func.func @transform_1(%arg0: i32) -> (i32, i32, i32) {
    %c0_i32 = arith.constant 0 : i32
    %c0_i32_0 = arith.constant 0 : i32
    %c0_i32_1 = arith.constant 0 : i32
    %c0_i32_2 = arith.constant 0 : i32
    return %c0_i32, %c0_i32_0, %c0_i32_1 : i32, i32, i32
  }
}

module attributes {stable_mosaic.version = 11 : i64} {
  func.func @_mm_kernel(%arg0: i32, %arg1: memref<512x400xbf16, #tpu.memory_space<vmem>>, %arg2: memref<400x32xbf16, #tpu.memory_space<vmem>>, %arg3: memref<1x32xf32, #tpu.memory_space<vmem>>, %arg4: memref<512x32xbf16, #tpu.memory_space<vmem>>) attributes {dimension_semantics = [#tpu.dimension_semantics<parallel>], iteration_bounds = array<i64: 1>, scalar_prefetch = 0 : i64, scratch_operands = 0 : i64, tpu.core_type = #tpu.core_type<tc>, window_params = [{transform_indices = @transform_0, window_bounds = array<i64: 512, 400>}, {pipeline_mode = #tpu.pipeline_mode<synchronous>, transform_indices = @transform_1, window_bounds = array<i64: 400, 32>}, {pipeline_mode = #tpu.pipeline_mode<synchronous>, transform_indices = @transform_2, window_bounds = array<i64: 1, 32>}, {transform_indices = @transform_3, window_bounds = array<i64: 512, 32>}]} {
    %c0 = arith.constant 0 : index
    %c0_0 = arith.constant 0 : index
    %0 = vector.load %arg1[%c0, %c0_0] : memref<512x400xbf16, #tpu.memory_space<vmem>>, vector<512x400xbf16>
    %c0_1 = arith.constant 0 : index
    %c0_2 = arith.constant 0 : index
    %1 = vector.load %arg2[%c0_1, %c0_2] : memref<400x32xbf16, #tpu.memory_space<vmem>>, vector<400x32xbf16>
    %cst = arith.constant dense<0.000000e+00> : vector<512x32xf32>
    %2 = tpu.matmul %0, %1, %cst {dimension_numbers = #tpu.dot_dimension_numbers<[1], [0], [0], [1], [0, 0, 1, 1], [], []>} : vector<512x400xbf16>, vector<400x32xbf16>, vector<512x32xf32> -> vector<512x32xf32>
    %c0_3 = arith.constant 0 : index
    %c0_4 = arith.constant 0 : index
    %3 = vector.load %arg3[%c0_3, %c0_4] : memref<1x32xf32, #tpu.memory_space<vmem>>, vector<1x32xf32>
    %4 = vector.broadcast %3 : vector<1x32xf32> to vector<512x32xf32>
    %5 = arith.addf %2, %4 : vector<512x32xf32>
    %cst_5 = arith.constant 0.000000e+00 : f32
    %6 = vector.broadcast %cst_5 : f32 to vector<512x32xf32>
    %7 = arith.maximumf %5, %6 : vector<512x32xf32>
    %8 = arith.truncf %7 : vector<512x32xf32> to vector<512x32xbf16>
    %c0_6 = arith.constant 0 : index
    %c0_7 = arith.constant 0 : index
    %9 = vector.load %arg4[%c0_6, %c0_7] : memref<512x32xbf16, #tpu.memory_space<vmem>>, vector<512x32xbf16>
    tpu.vector_store %arg4[%c0_6, %c0_7], %8 {strides = array<i32>} : memref<512x32xbf16, #tpu.memory_space<vmem>>, vector<512x32xbf16>,
    return
  }
  func.func @transform_0(%arg0: i32) -> (i32, i32) {
    %c0_i32 = arith.constant 0 : i32
    %c0_i32_0 = arith.constant 0 : i32
    return %arg0, %c0_i32 : i32, i32
  }
  func.func @transform_1(%arg0: i32) -> (i32, i32) {
    %c0_i32 = arith.constant 0 : i32
    %c0_i32_0 = arith.constant 0 : i32
    %c0_i32_1 = arith.constant 0 : i32
    return %c0_i32, %c0_i32_0 : i32, i32
  }
  func.func @transform_2(%arg0: i32) -> (i32, i32) {
    %c0_i32 = arith.constant 0 : i32
    %c0_i32_0 = arith.constant 0 : i32
    %c0_i32_1 = arith.constant 0 : i32
    return %c0_i32, %c0_i32_0 : i32, i32
  }
  func.func @transform_3(%arg0: i32) -> (i32, i32) {
    %c0_i32 = arith.constant 0 : i32
    %c0_i32_0 = arith.constant 0 : i32
    return %arg0, %c0_i32 : i32, i32
  }
}

module attributes {stable_mosaic.version = 11 : i64} {
  func.func @_maxpool_kernel(%arg0: i32, %arg1: memref<16x2x8x64xbf16, #tpu.memory_space<vmem>>, %arg2: memref<16x8x32xbf16, #tpu.memory_space<vmem>>) attributes {dimension_semantics = [#tpu.dimension_semantics<arbitrary>], iteration_bounds = array<i64: 1>, scalar_prefetch = 0 : i64, scratch_operands = 0 : i64, tpu.core_type = #tpu.core_type<tc>, window_params = [{pipeline_mode = #tpu.pipeline_mode<synchronous>, transform_indices = @transform_0, window_bounds = array<i64: 16, 2, 8, 64>}, {pipeline_mode = #tpu.pipeline_mode<synchronous>, transform_indices = @transform_1, window_bounds = array<i64: 16, 8, 32>}]} {
    %c0 = arith.constant 0 : index
    %c0_0 = arith.constant 0 : index
    %c0_1 = arith.constant 0 : index
    %c0_2 = arith.constant 0 : index
    %0 = vector.load %arg1[%c0, %c0_0, %c0_1, %c0_2] : memref<16x2x8x64xbf16, #tpu.memory_space<vmem>>, vector<16x1x8x32xbf16>
    %1 = vector.shape_cast %0 : vector<16x1x8x32xbf16> to vector<16x8x32xbf16>
    %c0_3 = arith.constant 0 : index
    %c0_4 = arith.constant 0 : index
    %c0_5 = arith.constant 0 : index
    %c32 = arith.constant 32 : index
    %2 = vector.load %arg1[%c0_3, %c0_4, %c0_5, %c32] : memref<16x2x8x64xbf16, #tpu.memory_space<vmem>>, vector<16x1x8x32xbf16>
    %3 = vector.shape_cast %2 : vector<16x1x8x32xbf16> to vector<16x8x32xbf16>
    %c0_6 = arith.constant 0 : index
    %c1 = arith.constant 1 : index
    %c0_7 = arith.constant 0 : index
    %c0_8 = arith.constant 0 : index
    %4 = vector.load %arg1[%c0_6, %c1, %c0_7, %c0_8] : memref<16x2x8x64xbf16, #tpu.memory_space<vmem>>, vector<16x1x8x32xbf16>
    %5 = vector.shape_cast %4 : vector<16x1x8x32xbf16> to vector<16x8x32xbf16>
    %c0_9 = arith.constant 0 : index
    %c1_10 = arith.constant 1 : index
    %c0_11 = arith.constant 0 : index
    %c32_12 = arith.constant 32 : index
    %6 = vector.load %arg1[%c0_9, %c1_10, %c0_11, %c32_12] : memref<16x2x8x64xbf16, #tpu.memory_space<vmem>>, vector<16x1x8x32xbf16>
    %7 = vector.shape_cast %6 : vector<16x1x8x32xbf16> to vector<16x8x32xbf16>
    %8 = arith.maximumf %1, %3 : vector<16x8x32xbf16>
    %9 = arith.maximumf %5, %7 : vector<16x8x32xbf16>
    %10 = arith.maximumf %8, %9 : vector<16x8x32xbf16>
    %c0_13 = arith.constant 0 : index
    %c0_14 = arith.constant 0 : index
    %c0_15 = arith.constant 0 : index
    %11 = vector.load %arg2[%c0_13, %c0_14, %c0_15] : memref<16x8x32xbf16, #tpu.memory_space<vmem>>, vector<16x8x32xbf16>
    tpu.vector_store %arg2[%c0_13, %c0_14, %c0_15], %10 {strides = array<i32>} : memref<16x8x32xbf16, #tpu.memory_space<vmem>>, vector<16x8x32xbf16>,
    return
  }
  func.func @transform_0(%arg0: i32) -> (i32, i32, i32, i32) {
    %c0_i32 = arith.constant 0 : i32
    %c0_i32_0 = arith.constant 0 : i32
    %c0_i32_1 = arith.constant 0 : i32
    %c0_i32_2 = arith.constant 0 : i32
    %c0_i32_3 = arith.constant 0 : i32
    return %c0_i32, %c0_i32_0, %c0_i32_1, %c0_i32_2 : i32, i32, i32, i32
  }
  func.func @transform_1(%arg0: i32) -> (i32, i32, i32) {
    %c0_i32 = arith.constant 0 : i32
    %c0_i32_0 = arith.constant 0 : i32
    %c0_i32_1 = arith.constant 0 : i32
    %c0_i32_2 = arith.constant 0 : i32
    return %c0_i32, %c0_i32_0, %c0_i32_1 : i32, i32, i32
  }
}

module attributes {stable_mosaic.version = 11 : i64} {
  func.func @_tail_kernel(%arg0: i32, %arg1: memref<2x2048xbf16, #tpu.memory_space<vmem>>, %arg2: memref<2048x32xbf16, #tpu.memory_space<vmem>>, %arg3: memref<1x32xf32, #tpu.memory_space<vmem>>, %arg4: memref<2x16xbf16, #tpu.memory_space<vmem>>, %arg5: memref<16x32xbf16, #tpu.memory_space<vmem>>, %arg6: memref<1x32xf32, #tpu.memory_space<vmem>>, %arg7: memref<32x32xbf16, #tpu.memory_space<vmem>>, %arg8: memref<1x32xf32, #tpu.memory_space<vmem>>, %arg9: memref<2x16xbf16, #tpu.memory_space<vmem>>, %arg10: memref<16x32xbf16, #tpu.memory_space<vmem>>, %arg11: memref<1x32xf32, #tpu.memory_space<vmem>>, %arg12: memref<32x32xbf16, #tpu.memory_space<vmem>>, %arg13: memref<1x32xf32, #tpu.memory_space<vmem>>, %arg14: memref<96x32xbf16, #tpu.memory_space<vmem>>, %arg15: memref<1x32xf32, #tpu.memory_space<vmem>>, %arg16: memref<32x32xbf16, #tpu.memory_space<vmem>>, %arg17: memref<1x32xf32, #tpu.memory_space<vmem>>, %arg18: memref<2x32xf32, #tpu.memory_space<vmem>>) attributes {dimension_semantics = [#tpu.dimension_semantics<arbitrary>], iteration_bounds = array<i64: 1>, scalar_prefetch = 0 : i64, scratch_operands = 0 : i64, tpu.core_type = #tpu.core_type<tc>, window_params = [{pipeline_mode = #tpu.pipeline_mode<synchronous>, transform_indices = @transform_0, window_bounds = array<i64: 2, 2048>}, {pipeline_mode = #tpu.pipeline_mode<synchronous>, transform_indices = @transform_1, window_bounds = array<i64: 2048, 32>}, {pipeline_mode = #tpu.pipeline_mode<synchronous>, transform_indices = @transform_2, window_bounds = array<i64: 1, 32>}, {pipeline_mode = #tpu.pipeline_mode<synchronous>, transform_indices = @transform_3, window_bounds = array<i64: 2, 16>}, {pipeline_mode = #tpu.pipeline_mode<synchronous>, transform_indices = @transform_4, window_bounds = array<i64: 16, 32>}, {pipeline_mode = #tpu.pipeline_mode<synchronous>, transform_indices = @transform_5, window_bounds = array<i64: 1, 32>}, {pipeline_mode = #tpu.pipeline_mode<synchronous>, transform_indices = @transform_6, window_bounds = array<i64: 32, 32>}, {pipeline_mode = #tpu.pipeline_mode<synchronous>, transform_indices = @transform_7, window_bounds = array<i64: 1, 32>}, {pipeline_mode = #tpu.pipeline_mode<synchronous>, transform_indices = @transform_8, window_bounds = array<i64: 2, 16>}, {pipeline_mode = #tpu.pipeline_mode<synchronous>, transform_indices = @transform_9, window_bounds = array<i64: 16, 32>}, {pipeline_mode = #tpu.pipeline_mode<synchronous>, transform_indices = @transform_10, window_bounds = array<i64: 1, 32>}, {pipeline_mode = #tpu.pipeline_mode<synchronous>, transform_indices = @transform_11, window_bounds = array<i64: 32, 32>}, {pipeline_mode = #tpu.pipeline_mode<synchronous>, transform_indices = @transform_12, window_bounds = array<i64: 1, 32>}, {pipeline_mode = #tpu.pipeline_mode<synchronous>, transform_indices = @transform_13, window_bounds = array<i64: 96, 32>}, {pipeline_mode = #tpu.pipeline_mode<synchronous>, transform_indices = @transform_14, window_bounds = array<i64: 1, 32>}, {pipeline_mode = #tpu.pipeline_mode<synchronous>, transform_indices = @transform_15, window_bounds = array<i64: 32, 32>}, {pipeline_mode = #tpu.pipeline_mode<synchronous>, transform_indices = @transform_16, window_bounds = array<i64: 1, 32>}, {pipeline_mode = #tpu.pipeline_mode<synchronous>, transform_indices = @transform_17, window_bounds = array<i64: 2, 32>}]} {
    %c0 = arith.constant 0 : index
    %c0_0 = arith.constant 0 : index
    %0 = vector.load %arg1[%c0, %c0_0] : memref<2x2048xbf16, #tpu.memory_space<vmem>>, vector<2x2048xbf16>
    %c0_1 = arith.constant 0 : index
    %c0_2 = arith.constant 0 : index
    %1 = vector.load %arg2[%c0_1, %c0_2] : memref<2048x32xbf16, #tpu.memory_space<vmem>>, vector<2048x32xbf16>
    %cst = arith.constant dense<0.000000e+00> : vector<2x32xf32>
    %2 = tpu.matmul %0, %1, %cst {dimension_numbers = #tpu.dot_dimension_numbers<[1], [0], [0], [1], [0, 0, 1, 1], [], []>} : vector<2x2048xbf16>, vector<2048x32xbf16>, vector<2x32xf32> -> vector<2x32xf32>
    %c0_3 = arith.constant 0 : index
    %c0_4 = arith.constant 0 : index
    %3 = vector.load %arg3[%c0_3, %c0_4] : memref<1x32xf32, #tpu.memory_space<vmem>>, vector<1x32xf32>
    %4 = vector.broadcast %3 : vector<1x32xf32> to vector<2x32xf32>
    %5 = arith.addf %2, %4 : vector<2x32xf32>
    %c0_5 = arith.constant 0 : index
    %c0_6 = arith.constant 0 : index
    %6 = vector.load %arg4[%c0_5, %c0_6] : memref<2x16xbf16, #tpu.memory_space<vmem>>, vector<2x16xbf16>
    %c0_7 = arith.constant 0 : index
    %c0_8 = arith.constant 0 : index
    %7 = vector.load %arg5[%c0_7, %c0_8] : memref<16x32xbf16, #tpu.memory_space<vmem>>, vector<16x32xbf16>
    %cst_9 = arith.constant dense<0.000000e+00> : vector<2x32xf32>
    %8 = tpu.matmul %6, %7, %cst_9 {dimension_numbers = #tpu.dot_dimension_numbers<[1], [0], [0], [1], [0, 0, 1, 1], [], []>} : vector<2x16xbf16>, vector<16x32xbf16>, vector<2x32xf32> -> vector<2x32xf32>
    %c0_10 = arith.constant 0 : index
    %c0_11 = arith.constant 0 : index
    %9 = vector.load %arg6[%c0_10, %c0_11] : memref<1x32xf32, #tpu.memory_space<vmem>>, vector<1x32xf32>
    %10 = vector.broadcast %9 : vector<1x32xf32> to vector<2x32xf32>
    %11 = arith.addf %8, %10 : vector<2x32xf32>
    %12 = arith.negf %11 : vector<2x32xf32>
    %13 = math.exp %12 : vector<2x32xf32>
    %cst_12 = arith.constant 1.000000e+00 : f32
    %14 = vector.broadcast %cst_12 : f32 to vector<2x32xf32>
    %15 = arith.addf %14, %13 : vector<2x32xf32>
    %16 = arith.divf %14, %15 : vector<2x32xf32>
    %17 = arith.mulf %11, %16 : vector<2x32xf32>
    %18 = arith.truncf %17 : vector<2x32xf32> to vector<2x32xbf16>
    %c0_13 = arith.constant 0 : index
    %c0_14 = arith.constant 0 : index
    %19 = vector.load %arg7[%c0_13, %c0_14] : memref<32x32xbf16, #tpu.memory_space<vmem>>, vector<32x32xbf16>
    %cst_15 = arith.constant dense<0.000000e+00> : vector<2x32xf32>
    %20 = tpu.matmul %18, %19, %cst_15 {dimension_numbers = #tpu.dot_dimension_numbers<[1], [0], [0], [1], [0, 0, 1, 1], [], []>} : vector<2x32xbf16>, vector<32x32xbf16>, vector<2x32xf32> -> vector<2x32xf32>
    %c0_16 = arith.constant 0 : index
    %c0_17 = arith.constant 0 : index
    %21 = vector.load %arg8[%c0_16, %c0_17] : memref<1x32xf32, #tpu.memory_space<vmem>>, vector<1x32xf32>
    %22 = vector.broadcast %21 : vector<1x32xf32> to vector<2x32xf32>
    %23 = arith.addf %20, %22 : vector<2x32xf32>
    %c0_18 = arith.constant 0 : index
    %c0_19 = arith.constant 0 : index
    %24 = vector.load %arg9[%c0_18, %c0_19] : memref<2x16xbf16, #tpu.memory_space<vmem>>, vector<2x16xbf16>
    %c0_20 = arith.constant 0 : index
    %c0_21 = arith.constant 0 : index
    %25 = vector.load %arg10[%c0_20, %c0_21] : memref<16x32xbf16, #tpu.memory_space<vmem>>, vector<16x32xbf16>
    %cst_22 = arith.constant dense<0.000000e+00> : vector<2x32xf32>
    %26 = tpu.matmul %24, %25, %cst_22 {dimension_numbers = #tpu.dot_dimension_numbers<[1], [0], [0], [1], [0, 0, 1, 1], [], []>} : vector<2x16xbf16>, vector<16x32xbf16>, vector<2x32xf32> -> vector<2x32xf32>
    %c0_23 = arith.constant 0 : index
    %c0_24 = arith.constant 0 : index
    %27 = vector.load %arg11[%c0_23, %c0_24] : memref<1x32xf32, #tpu.memory_space<vmem>>, vector<1x32xf32>
    %28 = vector.broadcast %27 : vector<1x32xf32> to vector<2x32xf32>
    %29 = arith.addf %26, %28 : vector<2x32xf32>
    %30 = arith.negf %29 : vector<2x32xf32>
    %31 = math.exp %30 : vector<2x32xf32>
    %cst_25 = arith.constant 1.000000e+00 : f32
    %32 = vector.broadcast %cst_25 : f32 to vector<2x32xf32>
    %33 = arith.addf %32, %31 : vector<2x32xf32>
    %34 = arith.divf %32, %33 : vector<2x32xf32>
    %35 = arith.mulf %29, %34 : vector<2x32xf32>
    %36 = arith.truncf %35 : vector<2x32xf32> to vector<2x32xbf16>
    %c0_26 = arith.constant 0 : index
    %c0_27 = arith.constant 0 : index
    %37 = vector.load %arg12[%c0_26, %c0_27] : memref<32x32xbf16, #tpu.memory_space<vmem>>, vector<32x32xbf16>
    %cst_28 = arith.constant dense<0.000000e+00> : vector<2x32xf32>
    %38 = tpu.matmul %36, %37, %cst_28 {dimension_numbers = #tpu.dot_dimension_numbers<[1], [0], [0], [1], [0, 0, 1, 1], [], []>} : vector<2x32xbf16>, vector<32x32xbf16>, vector<2x32xf32> -> vector<2x32xf32>
    %c0_29 = arith.constant 0 : index
    %c0_30 = arith.constant 0 : index
    %39 = vector.load %arg13[%c0_29, %c0_30] : memref<1x32xf32, #tpu.memory_space<vmem>>, vector<1x32xf32>
    %40 = vector.broadcast %39 : vector<1x32xf32> to vector<2x32xf32>
    %41 = arith.addf %38, %40 : vector<2x32xf32>
    %42 = arith.truncf %5 : vector<2x32xf32> to vector<2x32xbf16>
    %c0_31 = arith.constant 0 : index
    %c0_32 = arith.constant 0 : index
    %43 = vector.load %arg14[%c0_31, %c0_32] : memref<96x32xbf16, #tpu.memory_space<vmem>>, vector<32x32xbf16>
    %cst_33 = arith.constant dense<0.000000e+00> : vector<2x32xf32>
    %44 = tpu.matmul %42, %43, %cst_33 {dimension_numbers = #tpu.dot_dimension_numbers<[1], [0], [0], [1], [0, 0, 1, 1], [], []>} : vector<2x32xbf16>, vector<32x32xbf16>, vector<2x32xf32> -> vector<2x32xf32>
    %45 = arith.truncf %23 : vector<2x32xf32> to vector<2x32xbf16>
    %c32 = arith.constant 32 : index
    %c0_34 = arith.constant 0 : index
    %46 = vector.load %arg14[%c32, %c0_34] : memref<96x32xbf16, #tpu.memory_space<vmem>>, vector<32x32xbf16>
    %cst_35 = arith.constant dense<0.000000e+00> : vector<2x32xf32>
    %47 = tpu.matmul %45, %46, %cst_35 {dimension_numbers = #tpu.dot_dimension_numbers<[1], [0], [0], [1], [0, 0, 1, 1], [], []>} : vector<2x32xbf16>, vector<32x32xbf16>, vector<2x32xf32> -> vector<2x32xf32>
    %48 = arith.addf %44, %47 : vector<2x32xf32>
    %49 = arith.truncf %41 : vector<2x32xf32> to vector<2x32xbf16>
    %c64 = arith.constant 64 : index
    %c0_36 = arith.constant 0 : index
    %50 = vector.load %arg14[%c64, %c0_36] : memref<96x32xbf16, #tpu.memory_space<vmem>>, vector<32x32xbf16>
    %cst_37 = arith.constant dense<0.000000e+00> : vector<2x32xf32>
    %51 = tpu.matmul %49, %50, %cst_37 {dimension_numbers = #tpu.dot_dimension_numbers<[1], [0], [0], [1], [0, 0, 1, 1], [], []>} : vector<2x32xbf16>, vector<32x32xbf16>, vector<2x32xf32> -> vector<2x32xf32>
    %52 = arith.addf %48, %51 : vector<2x32xf32>
    %c0_38 = arith.constant 0 : index
    %c0_39 = arith.constant 0 : index
    %53 = vector.load %arg15[%c0_38, %c0_39] : memref<1x32xf32, #tpu.memory_space<vmem>>, vector<1x32xf32>
    %54 = vector.broadcast %53 : vector<1x32xf32> to vector<2x32xf32>
    %55 = arith.addf %52, %54 : vector<2x32xf32>
    %56 = arith.negf %55 : vector<2x32xf32>
    %57 = math.exp %56 : vector<2x32xf32>
    %cst_40 = arith.constant 1.000000e+00 : f32
    %58 = vector.broadcast %cst_40 : f32 to vector<2x32xf32>
    %59 = arith.addf %58, %57 : vector<2x32xf32>
    %60 = arith.divf %58, %59 : vector<2x32xf32>
    %61 = arith.mulf %55, %60 : vector<2x32xf32>
    %62 = arith.truncf %61 : vector<2x32xf32> to vector<2x32xbf16>
    %c0_41 = arith.constant 0 : index
    %c0_42 = arith.constant 0 : index
    %63 = vector.load %arg16[%c0_41, %c0_42] : memref<32x32xbf16, #tpu.memory_space<vmem>>, vector<32x32xbf16>
    %cst_43 = arith.constant dense<0.000000e+00> : vector<2x32xf32>
    %64 = tpu.matmul %62, %63, %cst_43 {dimension_numbers = #tpu.dot_dimension_numbers<[1], [0], [0], [1], [0, 0, 1, 1], [], []>} : vector<2x32xbf16>, vector<32x32xbf16>, vector<2x32xf32> -> vector<2x32xf32>
    %c0_44 = arith.constant 0 : index
    %c0_45 = arith.constant 0 : index
    %65 = vector.load %arg17[%c0_44, %c0_45] : memref<1x32xf32, #tpu.memory_space<vmem>>, vector<1x32xf32>
    %66 = vector.broadcast %65 : vector<1x32xf32> to vector<2x32xf32>
    %67 = arith.addf %64, %66 : vector<2x32xf32>
    %c0_46 = arith.constant 0 : index
    %c0_47 = arith.constant 0 : index
    %68 = vector.load %arg18[%c0_46, %c0_47] : memref<2x32xf32, #tpu.memory_space<vmem>>, vector<2x32xf32>
    tpu.vector_store %arg18[%c0_46, %c0_47], %67 {strides = array<i32>} : memref<2x32xf32, #tpu.memory_space<vmem>>, vector<2x32xf32>,
    return
  }
  func.func @transform_0(%arg0: i32) -> (i32, i32) {
    %c0_i32 = arith.constant 0 : i32
    %c0_i32_0 = arith.constant 0 : i32
    %c0_i32_1 = arith.constant 0 : i32
    return %c0_i32, %c0_i32_0 : i32, i32
  }
  func.func @transform_1(%arg0: i32) -> (i32, i32) {
    %c0_i32 = arith.constant 0 : i32
    %c0_i32_0 = arith.constant 0 : i32
    %c0_i32_1 = arith.constant 0 : i32
    return %c0_i32, %c0_i32_0 : i32, i32
  }
  func.func @transform_2(%arg0: i32) -> (i32, i32) {
    %c0_i32 = arith.constant 0 : i32
    %c0_i32_0 = arith.constant 0 : i32
    %c0_i32_1 = arith.constant 0 : i32
    return %c0_i32, %c0_i32_0 : i32, i32
  }
  func.func @transform_3(%arg0: i32) -> (i32, i32) {
    %c0_i32 = arith.constant 0 : i32
    %c0_i32_0 = arith.constant 0 : i32
    %c0_i32_1 = arith.constant 0 : i32
    return %c0_i32, %c0_i32_0 : i32, i32
  }
  func.func @transform_4(%arg0: i32) -> (i32, i32) {
    %c0_i32 = arith.constant 0 : i32
    %c0_i32_0 = arith.constant 0 : i32
    %c0_i32_1 = arith.constant 0 : i32
    return %c0_i32, %c0_i32_0 : i32, i32
  }
  func.func @transform_5(%arg0: i32) -> (i32, i32) {
    %c0_i32 = arith.constant 0 : i32
    %c0_i32_0 = arith.constant 0 : i32
    %c0_i32_1 = arith.constant 0 : i32
    return %c0_i32, %c0_i32_0 : i32, i32
  }
  func.func @transform_6(%arg0: i32) -> (i32, i32) {
    %c0_i32 = arith.constant 0 : i32
    %c0_i32_0 = arith.constant 0 : i32
    %c0_i32_1 = arith.constant 0 : i32
    return %c0_i32, %c0_i32_0 : i32, i32
  }
  func.func @transform_7(%arg0: i32) -> (i32, i32) {
    %c0_i32 = arith.constant 0 : i32
    %c0_i32_0 = arith.constant 0 : i32
    %c0_i32_1 = arith.constant 0 : i32
    return %c0_i32, %c0_i32_0 : i32, i32
  }
  func.func @transform_8(%arg0: i32) -> (i32, i32) {
    %c0_i32 = arith.constant 0 : i32
    %c0_i32_0 = arith.constant 0 : i32
    %c0_i32_1 = arith.constant 0 : i32
    return %c0_i32, %c0_i32_0 : i32, i32
  }
  func.func @transform_9(%arg0: i32) -> (i32, i32) {
    %c0_i32 = arith.constant 0 : i32
    %c0_i32_0 = arith.constant 0 : i32
    %c0_i32_1 = arith.constant 0 : i32
    return %c0_i32, %c0_i32_0 : i32, i32
  }
  func.func @transform_10(%arg0: i32) -> (i32, i32) {
    %c0_i32 = arith.constant 0 : i32
    %c0_i32_0 = arith.constant 0 : i32
    %c0_i32_1 = arith.constant 0 : i32
    return %c0_i32, %c0_i32_0 : i32, i32
  }
  func.func @transform_11(%arg0: i32) -> (i32, i32) {
    %c0_i32 = arith.constant 0 : i32
    %c0_i32_0 = arith.constant 0 : i32
    %c0_i32_1 = arith.constant 0 : i32
    return %c0_i32, %c0_i32_0 : i32, i32
  }
  func.func @transform_12(%arg0: i32) -> (i32, i32) {
    %c0_i32 = arith.constant 0 : i32
    %c0_i32_0 = arith.constant 0 : i32
    %c0_i32_1 = arith.constant 0 : i32
    return %c0_i32, %c0_i32_0 : i32, i32
  }
  func.func @transform_13(%arg0: i32) -> (i32, i32) {
    %c0_i32 = arith.constant 0 : i32
    %c0_i32_0 = arith.constant 0 : i32
    %c0_i32_1 = arith.constant 0 : i32
    return %c0_i32, %c0_i32_0 : i32, i32
  }
  func.func @transform_14(%arg0: i32) -> (i32, i32) {
    %c0_i32 = arith.constant 0 : i32
    %c0_i32_0 = arith.constant 0 : i32
    %c0_i32_1 = arith.constant 0 : i32
    return %c0_i32, %c0_i32_0 : i32, i32
  }
  func.func @transform_15(%arg0: i32) -> (i32, i32) {
    %c0_i32 = arith.constant 0 : i32
    %c0_i32_0 = arith.constant 0 : i32
    %c0_i32_1 = arith.constant 0 : i32
    return %c0_i32, %c0_i32_0 : i32, i32
  }
  func.func @transform_16(%arg0: i32) -> (i32, i32) {
    %c0_i32 = arith.constant 0 : i32
    %c0_i32_0 = arith.constant 0 : i32
    %c0_i32_1 = arith.constant 0 : i32
    return %c0_i32, %c0_i32_0 : i32, i32
  }
  func.func @transform_17(%arg0: i32) -> (i32, i32) {
    %c0_i32 = arith.constant 0 : i32
    %c0_i32_0 = arith.constant 0 : i32
    %c0_i32_1 = arith.constant 0 : i32
    return %c0_i32, %c0_i32_0 : i32, i32
  }
}

</mosaic_0001>

<bundles_post_ra>
// kernel: joint_embedding2_forward.5
= control target key start
LH: loop header
LB: loop body
LE: loop exit
PB: predicated region body
PF: predicated region fallthrough
CT: control target
= control target key end

     0   :  { %s1639_s12 = smov 0   ;;  %s1934_s0 = inlined_call_operand.vmem [shape: bf16[2048,25], index: 0, kind: input, shape index: {}]   ;;  %s1935_s1 = inlined_call_operand.vmem [shape: bf16[25,16], index: 1, kind: input, shape index: {}]   ;;  %s1936_s2 = inlined_call_operand.vmem [shape: f32[1,16], index: 2, kind: input, shape index: {}]   ;;  %s1937_s3 = inlined_call_operand.vmem [shape: bf16[2048,16], index: 3, kind: output, shape index: {}]  }
   0x1 LB: > { %s1255_s13 = sadd.s32 4294967295, %s1616_s12   ;;  %p1259_p0 = scmp.ge.s32.totalorder %s1616_s12, 1  ;;  %s1616_s12 = sphi %s1639_s12, %s13_s12  }
   0x2   : > { %p138_p1 = scmp.lt.s32.totalorder %s1616_s12, 5 }
   0x4   : > { %p139_p2 = pnand %p1259_p0, %p138_p1 }
   0x5   : > { %s1260_s16 = sshll.u32 (!%p139_p2), %s1255_s13, 6 }
   0x6   : > { %142 = sbr.rel (%p139_p2) target bundleno = 286 (0x11e), region = 32  ;;  %p163_p3 = scmp.lt.s32.totalorder (!%p139_p2), %s1260_s16, 255 }
   0xb   : > { %v1576_v0 = vld [vmem:[%s1935_s1 + $0x8] sm:$0x1f]   ;;  %vm518_vm0 = vcmask 1043456   ;;  %vm519_vm1 = vcmask 1044480   ;;  %v1618_v1 = vmov 65535   ;;  %v1577_v5 = vld [vmem:[%s1935_s1] sm:$0xff]  }
   0xc   : > { %v520_v2 = vsel %vm518_vm0, 4294967295, %v1618_v1  ;;  %s1939_s16 = smov (!%p163_p3, %s1260_s16), 255  ;;  %vm421_vm2 = vcmask 203776   ;;  %v1730_v38 = vld [vmem:[%s1936_s2] ss:$0 sm:$0xff]  ;;  %vm1134_vm3 = vcmask 125952  }
   0xd   : > { %v521_v3 = vsel %vm519_vm1, %v520_v2, 0  ;;  %s1261_s19 = sshll.u32 %s1939_s16, 2 }
   0xe   : > { %v523_v4 = vand.u32 %v1576_v0, %v521_v3  ;;  %s1661_s22 = scalar_lea.vmem %s1934_s0, %s1261_s19  ;;  %s1741_s27 = scalar_lea.vmem %s1937_s3, %s1261_s19 }
   0xf   : > { %v1578_v6 = vld [vmem:[%s1661_s22] sm:$0xff]   ;;  %v1580_v8 = vld [vmem:[%s1661_s22 + $0x8] sm:$0xff]   ;;  %v1582_v10 = vld [vmem:[%s1661_s22 + $0x10] sm:$0xff]  }
  0x10   : > { %1495 = vmatprep.subr.bf16.mxu0 %v523_v4  ;;  %1563 = vmatprep.subr.bf16.mxu1 %v523_v4  ;;  %v1579_v7 = vld [vmem:[%s1661_s22 + $0x80] sm:$0xff]   ;;  %v1581_v9 = vld [vmem:[%s1661_s22 + $0x88] sm:$0xff]   ;;  %v1583_v11 = vld [vmem:[%s1661_s22 + $0x90] sm:$0xff]  }
  0x11   : > { %1496 = vmatpush3.bf16.msra.mxu0 %v523_v4  ;;  %1565 = vmatpush3.bf16.msra.mxu1 %v523_v4  ;;  %v1584_v12 = vld [vmem:[%s1661_s22 + $0x18] sm:$0xff]   ;;  %v1586_v14 = vld [vmem:[%s1661_s22 + $0x20] sm:$0xff]   ;;  %v1588_v16 = vld [vmem:[%s1661_s22 + $0x28] sm:$0xff]  }
  0x12   : > { %1497 = vmatprep.subr.bf16.mxu0 %v1577_v5  ;;  %1564 = vmatprep.subr.bf16.mxu1 %v1577_v5  ;;  %v1585_v13 = vld [vmem:[%s1661_s22 + $0x98] sm:$0xff]   ;;  %v1587_v15 = vld [vmem:[%s1661_s22 + $0xa0] sm:$0xff]   ;;  %v1589_v17 = vld [vmem:[%s1661_s22 + $0xa8] sm:$0xff]  }
  0x13   : > { %1499 = vmatprep.mubr.msk.bf16.mxu0 %vm421_vm2, %v1578_v6  ;;  %1531 = vmatprep.mubr.msk.bf16.mxu1 %vm421_vm2, %v1579_v7  ;;  %v1590_v18 = vld [vmem:[%s1661_s22 + $0x30] sm:$0xff]   ;;  %v1592_v20 = vld [vmem:[%s1661_s22 + $0x38] sm:$0xff]   ;;  %v1594_v22 = vld [vmem:[%s1661_s22 + $0x40] sm:$0xff]  }
  0x14   : > { %v1591_v19 = vld [vmem:[%s1661_s22 + $0xb0] sm:$0xff]   ;;  %v1593_v21 = vld [vmem:[%s1661_s22 + $0xb8] sm:$0xff]   ;;  %v1595_v23 = vld [vmem:[%s1661_s22 + $0xc0] sm:$0xff]  }
  0x15   : > { %1498 = vmatpush3.bf16.msra.mxu0 %v1577_v5  ;;  %1566 = vmatpush3.bf16.msra.mxu1 %v1577_v5  ;;  %v1596_v24 = vld [vmem:[%s1661_s22 + $0x48] sm:$0xff]   ;;  %v1598_v26 = vld [vmem:[%s1661_s22 + $0x50] sm:$0xff]   ;;  %v1600_v28 = vld [vmem:[%s1661_s22 + $0x58] sm:$0xff]  }
  0x16   : > { %v1597_v25 = vld [vmem:[%s1661_s22 + $0xc8] sm:$0xff]   ;;  %v1599_v27 = vld [vmem:[%s1661_s22 + $0xd0] sm:$0xff]   ;;  %v1601_v29 = vld [vmem:[%s1661_s22 + $0xd8] sm:$0xff]  }
  0x17   : > { %v1602_v30 = vld [vmem:[%s1661_s22 + $0x60] sm:$0xff]   ;;  %v1604_v32 = vld [vmem:[%s1661_s22 + $0x68] sm:$0xff]   ;;  %v1606_v34 = vld [vmem:[%s1661_s22 + $0x70] sm:$0xff]  }
  0x18   : > { %1500 = vmatmul.mubr.msk.bf16.vlgmr.msra.gmra.mxu0 %vm421_vm2, %v1580_v8  ;;  %1532 = vmatmul.mubr.msk.bf16.vlgmr.msra.gmra.mxu1 %vm421_vm2, %v1581_v9  ;;  %v1603_v31 = vld [vmem:[%s1661_s22 + $0xe0] sm:$0xff]   ;;  %v1605_v33 = vld [vmem:[%s1661_s22 + $0xe8] sm:$0xff]   ;;  %v1607_v35 = vld [vmem:[%s1661_s22 + $0xf0] sm:$0xff]  }
  0x19   : > { %1503 = vmatprep.mubr.msk.bf16.mxu0 %vm421_vm2, %v1582_v10  ;;  %1535 = vmatprep.mubr.msk.bf16.mxu1 %vm421_vm2, %v1583_v11  ;;  %v1608_v36 = vld [vmem:[%s1661_s22 + $0x78] sm:$0xff]  }
  0x1a   : > { %v1609_v37 = vld [vmem:[%s1661_s22 + $0xf8] sm:$0xff]  }
  0x20   : > { %1504 = vmatmul.mubr.msk.bf16.gmra.mxu0 %vm421_vm2, %v1584_v12  ;;  %1536 = vmatmul.mubr.msk.bf16.gmra.mxu1 %vm421_vm2, %v1585_v13 }
  0x21   : > { %1507 = vmatprep.mubr.msk.bf16.mxu0 %vm421_vm2, %v1586_v14  ;;  %1539 = vmatprep.mubr.msk.bf16.mxu1 %vm421_vm2, %v1587_v15 }
  0x28   : > { %1508 = vmatmul.mubr.msk.bf16.gmra.mxu0 %vm421_vm2, %v1588_v16  ;;  %1540 = vmatmul.mubr.msk.bf16.gmra.mxu1 %vm421_vm2, %v1589_v17 }
  0x29   : > { %1511 = vmatprep.mubr.msk.bf16.mxu0 %vm421_vm2, %v1590_v18  ;;  %1543 = vmatprep.mubr.msk.bf16.mxu1 %vm421_vm2, %v1591_v19 }
  0x30   : > { %1512 = vmatmul.mubr.msk.bf16.gmra.mxu0 %vm421_vm2, %v1592_v20  ;;  %1544 = vmatmul.mubr.msk.bf16.gmra.mxu1 %vm421_vm2, %v1593_v21 }
  0x31   : > { %1515 = vmatprep.mubr.msk.bf16.mxu0 %vm421_vm2, %v1594_v22  ;;  %1547 = vmatprep.mubr.msk.bf16.mxu1 %vm421_vm2, %v1595_v23 }
  0x38   : > { %1516 = vmatmul.mubr.msk.bf16.gmra.mxu0 %vm421_vm2, %v1596_v24  ;;  %1548 = vmatmul.mubr.msk.bf16.gmra.mxu1 %vm421_vm2, %v1597_v25 }
  0x39   : > { %1519 = vmatprep.mubr.msk.bf16.mxu0 %vm421_vm2, %v1598_v26  ;;  %1551 = vmatprep.mubr.msk.bf16.mxu1 %vm421_vm2, %v1599_v27 }
  0x40   : > { %1520 = vmatmul.mubr.msk.bf16.gmra.mxu0 %vm421_vm2, %v1600_v28  ;;  %1552 = vmatmul.mubr.msk.bf16.gmra.mxu1 %vm421_vm2, %v1601_v29 }
  0x41   : > { %1523 = vmatprep.mubr.msk.bf16.mxu0 %vm421_vm2, %v1602_v30  ;;  %1555 = vmatprep.mubr.msk.bf16.mxu1 %vm421_vm2, %v1603_v31 }
  0x48   : > { %1524 = vmatmul.mubr.msk.bf16.gmra.mxu0 %vm421_vm2, %v1604_v32  ;;  %1556 = vmatmul.mubr.msk.bf16.gmra.mxu1 %vm421_vm2, %v1605_v33 }
  0x49   : > { %1527 = vmatprep.mubr.msk.bf16.mxu0 %vm421_vm2, %v1606_v34  ;;  %1559 = vmatprep.mubr.msk.bf16.mxu1 %vm421_vm2, %v1607_v35 }
  0x50   : > { %1528 = vmatmul.mubr.msk.bf16.gmra.mxu0 %vm421_vm2, %v1608_v36  ;;  %1560 = vmatmul.mubr.msk.bf16.gmra.mxu1 %vm421_vm2, %v1609_v37 }
  0xd8   : > { %v1501_v39 = vpop.f32.mrf.mxu0  ;;  %v1533_v40 = vpop.f32.mrf.mxu1 }
  0xd9   : > { %v568_v41 = vadd.f32 %v1501_v39, %v1730_v38  ;;  %v696_v42 = vadd.f32 %v1533_v40, %v1730_v38 }
  0xda   : > { %v559_v43 = vpop.f32.mrf.mxu0  ;;  %v687_v44 = vpop.f32.mrf.mxu1 }
  0xdb   : > { %v816_v45 = vmax.f32 %v568_v41, 0.0  ;;  %v848_v46 = vmax.f32 %v696_v42, 0.0  ;;  %v560_v47 = vadd.f32 %v1730_v38, %v559_v43  ;;  %v688_v48 = vadd.f32 %v1730_v38, %v687_v44 }
  0xdc   : > { %v1502_v49 = vpop.f32.mrf.mxu0  ;;  %v1534_v50 = vpop.f32.mrf.mxu1 }
  0xdd   : > { %v1399_v51 = vpack.c.bf16 %v816_v45, %v816_v45  ;;  %v1431_v52 = vpack.c.bf16 %v848_v46, %v848_v46  ;;  %v814_v53 = vmax.f32 %v560_v47, 0.0  ;;  %v846_v54 = vmax.f32 %v688_v48, 0.0 }
  0xde   : > { %v571_v55 = vadd.f32 %v1502_v49, %v1730_v38  ;;  %v699_v56 = vadd.f32 %v1534_v50, %v1730_v38  ;;  %v562_v57 = vpop.f32.mrf.mxu0  ;;  %v690_v58 = vpop.f32.mrf.mxu1 }
  0xdf   : > { %1137 = vst.msk [vmem:[%s1741_s27 + $0x8] sm:$0xf] %vm1134_vm3, %v1399_v51  ;;  %1169 = vst.msk [vmem:[%s1741_s27 + $0x88] sm:$0xf] %vm1134_vm3, %v1431_v52  ;;  %v1397_v59 = vpack.c.bf16 %v814_v53, %v814_v53  ;;  %v1429_v60 = vpack.c.bf16 %v846_v54, %v846_v54  ;;  %v563_v61 = vadd.f32 %v1730_v38, %v562_v57 }
  0xe0   : > { %v691_v62 = vadd.f32 %v1730_v38, %v690_v58  ;;  %v817_v63 = vmax.f32 %v571_v55, 0.0  ;;  %v849_v0 = vmax.f32 %v699_v56, 0.0  ;;  %v1505_v1 = vpop.f32.mrf.mxu0  ;;  %v1537_v2 = vpop.f32.mrf.mxu1 }
  0xe1   : > { %1135 = vst.msk [vmem:[%s1741_s27] sm:$0xf] %vm1134_vm3, %v1397_v59  ;;  %1167 = vst.msk [vmem:[%s1741_s27 + $0x80] sm:$0xf] %vm1134_vm3, %v1429_v60  ;;  %v815_v3 = vmax.f32 %v563_v61, 0.0  ;;  %v584_v5 = vadd.f32 %v1505_v1, %v1730_v38  ;;  %v712_v6 = vadd.f32 %v1537_v2, %v1730_v38 }
  0xe2   : > { %v847_v4 = vmax.f32 %v691_v62, 0.0  ;;  %v1400_v7 = vpack.c.bf16 %v817_v63, %v817_v63  ;;  %v1432_v8 = vpack.c.bf16 %v849_v0, %v849_v0  ;;  %v575_v9 = vpop.f32.mrf.mxu0  ;;  %v703_v10 = vpop.f32.mrf.mxu1 }
  0xe3   : > { %v1398_v11 = vpack.c.bf16 %v815_v3, %v815_v3  ;;  %v820_v13 = vmax.f32 %v584_v5, 0.0  ;;  %v852_v14 = vmax.f32 %v712_v6, 0.0  ;;  %v576_v15 = vadd.f32 %v1730_v38, %v575_v9 }
  0xe4   : > { %v1430_v12 = vpack.c.bf16 %v847_v4, %v847_v4  ;;  %1138 = vst.msk [vmem:[%s1741_s27 + $0xc] sm:$0xf] %vm1134_vm3, %v1400_v7  ;;  %1170 = vst.msk [vmem:[%s1741_s27 + $0x8c] sm:$0xf] %vm1134_vm3, %v1432_v8  ;;  %v704_v16 = vadd.f32 %v1730_v38, %v703_v10  ;;  %v1506_v17 = vpop.f32.mrf.mxu0  ;;  %v1538_v18 = vpop.f32.mrf.mxu1 }
  0xe5   : > { %1136 = vst.msk [vmem:[%s1741_s27 + $0x4] sm:$0xf] %vm1134_vm3, %v1398_v11  ;;  %v1403_v19 = vpack.c.bf16 %v820_v13, %v820_v13  ;;  %v1435_v20 = vpack.c.bf16 %v852_v14, %v852_v14  ;;  %v587_v21 = vadd.f32 %v1506_v17, %v1730_v38  ;;  %v715_v22 = vadd.f32 %v1538_v18, %v1730_v38 }
  0xe6   : > { %1168 = vst.msk [vmem:[%s1741_s27 + $0x84] sm:$0xf] %vm1134_vm3, %v1430_v12  ;;  %v818_v23 = vmax.f32 %v576_v15, 0.0  ;;  %v850_v24 = vmax.f32 %v704_v16, 0.0  ;;  %v578_v25 = vpop.f32.mrf.mxu0  ;;  %v706_v26 = vpop.f32.mrf.mxu1 }
  0xe7   : > { %1141 = vst.msk [vmem:[%s1741_s27 + $0x18] sm:$0xf] %vm1134_vm3, %v1403_v19  ;;  %1173 = vst.msk [vmem:[%s1741_s27 + $0x98] sm:$0xf] %vm1134_vm3, %v1435_v20  ;;  %v821_v27 = vmax.f32 %v587_v21, 0.0  ;;  %v853_v28 = vmax.f32 %v715_v22, 0.0  ;;  %v579_v29 = vadd.f32 %v1730_v38, %v578_v25  ;;  %v707_v30 = vadd.f32 %v1730_v38, %v706_v26 }
  0xe8   : > { %v1401_v31 = vpack.c.bf16 %v818_v23, %v818_v23  ;;  %v1433_v32 = vpack.c.bf16 %v850_v24, %v850_v24  ;;  %v1509_v33 = vpop.f32.mrf.mxu0  ;;  %v1541_v34 = vpop.f32.mrf.mxu1 }
  0xe9   : > { %v1404_v35 = vpack.c.bf16 %v821_v27, %v821_v27  ;;  %v1436_v36 = vpack.c.bf16 %v853_v28, %v853_v28  ;;  %v819_v37 = vmax.f32 %v579_v29, 0.0  ;;  %v851_v39 = vmax.f32 %v707_v30, 0.0 }
  0xea   : > { %1139 = vst.msk [vmem:[%s1741_s27 + $0x10] sm:$0xf] %vm1134_vm3, %v1401_v31  ;;  %1171 = vst.msk [vmem:[%s1741_s27 + $0x90] sm:$0xf] %vm1134_vm3, %v1433_v32  ;;  %v600_v40 = vadd.f32 %v1509_v33, %v1730_v38  ;;  %v728_v41 = vadd.f32 %v1541_v34, %v1730_v38  ;;  %v591_v42 = vpop.f32.mrf.mxu0  ;;  %v719_v43 = vpop.f32.mrf.mxu1 }
  0xeb   : > { %1142 = vst.msk [vmem:[%s1741_s27 + $0x1c] sm:$0xf] %vm1134_vm3, %v1404_v35  ;;  %1174 = vst.msk [vmem:[%s1741_s27 + $0x9c] sm:$0xf] %vm1134_vm3, %v1436_v36  ;;  %v1402_v44 = vpack.c.bf16 %v819_v37, %v819_v37  ;;  %v1434_v45 = vpack.c.bf16 %v851_v39, %v851_v39  ;;  %v592_v46 = vadd.f32 %v1730_v38, %v591_v42 }
  0xec   : > { %v720_v47 = vadd.f32 %v1730_v38, %v719_v43  ;;  %v824_v48 = vmax.f32 %v600_v40, 0.0  ;;  %v856_v49 = vmax.f32 %v728_v41, 0.0  ;;  %v1510_v50 = vpop.f32.mrf.mxu0  ;;  %v1542_v51 = vpop.f32.mrf.mxu1 }
  0xed   : > { %1140 = vst.msk [vmem:[%s1741_s27 + $0x14] sm:$0xf] %vm1134_vm3, %v1402_v44  ;;  %1172 = vst.msk [vmem:[%s1741_s27 + $0x94] sm:$0xf] %vm1134_vm3, %v1434_v45  ;;  %v822_v52 = vmax.f32 %v592_v46, 0.0  ;;  %v603_v54 = vadd.f32 %v1510_v50, %v1730_v38  ;;  %v731_v55 = vadd.f32 %v1542_v51, %v1730_v38 }
  0xee   : > { %v854_v53 = vmax.f32 %v720_v47, 0.0  ;;  %v1407_v56 = vpack.c.bf16 %v824_v48, %v824_v48  ;;  %v1439_v57 = vpack.c.bf16 %v856_v49, %v856_v49  ;;  %v594_v58 = vpop.f32.mrf.mxu0  ;;  %v722_v59 = vpop.f32.mrf.mxu1 }
  0xef   : > { %v1405_v60 = vpack.c.bf16 %v822_v52, %v822_v52  ;;  %v825_v62 = vmax.f32 %v603_v54, 0.0  ;;  %v857_v63 = vmax.f32 %v731_v55, 0.0  ;;  %v595_v0 = vadd.f32 %v1730_v38, %v594_v58 }
  0xf0   : > { %v1437_v61 = vpack.c.bf16 %v854_v53, %v854_v53  ;;  %1145 = vst.msk [vmem:[%s1741_s27 + $0x28] sm:$0xf] %vm1134_vm3, %v1407_v56  ;;  %1177 = vst.msk [vmem:[%s1741_s27 + $0xa8] sm:$0xf] %vm1134_vm3, %v1439_v57  ;;  %v723_v1 = vadd.f32 %v1730_v38, %v722_v59  ;;  %v1513_v2 = vpop.f32.mrf.mxu0  ;;  %v1545_v3 = vpop.f32.mrf.mxu1 }
  0xf1   : > { %1143 = vst.msk [vmem:[%s1741_s27 + $0x20] sm:$0xf] %vm1134_vm3, %v1405_v60  ;;  %v1408_v4 = vpack.c.bf16 %v825_v62, %v825_v62  ;;  %v1440_v5 = vpack.c.bf16 %v857_v63, %v857_v63  ;;  %v616_v6 = vadd.f32 %v1513_v2, %v1730_v38  ;;  %v744_v7 = vadd.f32 %v1545_v3, %v1730_v38 }
  0xf2   : > { %1175 = vst.msk [vmem:[%s1741_s27 + $0xa0] sm:$0xf] %vm1134_vm3, %v1437_v61  ;;  %v823_v8 = vmax.f32 %v595_v0, 0.0  ;;  %v855_v9 = vmax.f32 %v723_v1, 0.0  ;;  %v607_v10 = vpop.f32.mrf.mxu0  ;;  %v735_v11 = vpop.f32.mrf.mxu1 }
  0xf3   : > { %1146 = vst.msk [vmem:[%s1741_s27 + $0x2c] sm:$0xf] %vm1134_vm3, %v1408_v4  ;;  %1178 = vst.msk [vmem:[%s1741_s27 + $0xac] sm:$0xf] %vm1134_vm3, %v1440_v5  ;;  %v828_v12 = vmax.f32 %v616_v6, 0.0  ;;  %v860_v13 = vmax.f32 %v744_v7, 0.0  ;;  %v608_v14 = vadd.f32 %v1730_v38, %v607_v10  ;;  %v736_v15 = vadd.f32 %v1730_v38, %v735_v11 }
  0xf4   : > { %v1406_v16 = vpack.c.bf16 %v823_v8, %v823_v8  ;;  %v1438_v17 = vpack.c.bf16 %v855_v9, %v855_v9  ;;  %v1514_v18 = vpop.f32.mrf.mxu0  ;;  %v1546_v19 = vpop.f32.mrf.mxu1 }
  0xf5   : > { %v1411_v20 = vpack.c.bf16 %v828_v12, %v828_v12  ;;  %v1443_v21 = vpack.c.bf16 %v860_v13, %v860_v13  ;;  %v826_v22 = vmax.f32 %v608_v14, 0.0  ;;  %v858_v23 = vmax.f32 %v736_v15, 0.0 }
  0xf6   : > { %1144 = vst.msk [vmem:[%s1741_s27 + $0x24] sm:$0xf] %vm1134_vm3, %v1406_v16  ;;  %1176 = vst.msk [vmem:[%s1741_s27 + $0xa4] sm:$0xf] %vm1134_vm3, %v1438_v17  ;;  %v619_v24 = vadd.f32 %v1514_v18, %v1730_v38  ;;  %v747_v25 = vadd.f32 %v1546_v19, %v1730_v38  ;;  %v610_v26 = vpop.f32.mrf.mxu0  ;;  %v738_v27 = vpop.f32.mrf.mxu1 }
  0xf7   : > { %1149 = vst.msk [vmem:[%s1741_s27 + $0x38] sm:$0xf] %vm1134_vm3, %v1411_v20  ;;  %1181 = vst.msk [vmem:[%s1741_s27 + $0xb8] sm:$0xf] %vm1134_vm3, %v1443_v21  ;;  %v1409_v28 = vpack.c.bf16 %v826_v22, %v826_v22  ;;  %v1441_v29 = vpack.c.bf16 %v858_v23, %v858_v23  ;;  %v611_v30 = vadd.f32 %v1730_v38, %v610_v26 }
  0xf8   : > { %v739_v31 = vadd.f32 %v1730_v38, %v738_v27  ;;  %v829_v32 = vmax.f32 %v619_v24, 0.0  ;;  %v861_v33 = vmax.f32 %v747_v25, 0.0  ;;  %v1517_v34 = vpop.f32.mrf.mxu0  ;;  %v1549_v35 = vpop.f32.mrf.mxu1 }
  0xf9   : > { %1147 = vst.msk [vmem:[%s1741_s27 + $0x30] sm:$0xf] %vm1134_vm3, %v1409_v28  ;;  %1179 = vst.msk [vmem:[%s1741_s27 + $0xb0] sm:$0xf] %vm1134_vm3, %v1441_v29  ;;  %v827_v36 = vmax.f32 %v611_v30, 0.0  ;;  %v632_v39 = vadd.f32 %v1517_v34, %v1730_v38  ;;  %v760_v40 = vadd.f32 %v1549_v35, %v1730_v38 }
  0xfa   : > { %v859_v37 = vmax.f32 %v739_v31, 0.0  ;;  %v1412_v41 = vpack.c.bf16 %v829_v32, %v829_v32  ;;  %v1444_v42 = vpack.c.bf16 %v861_v33, %v861_v33  ;;  %v623_v43 = vpop.f32.mrf.mxu0  ;;  %v751_v44 = vpop.f32.mrf.mxu1 }
  0xfb   : > { %v1410_v45 = vpack.c.bf16 %v827_v36, %v827_v36  ;;  %v832_v47 = vmax.f32 %v632_v39, 0.0  ;;  %v864_v48 = vmax.f32 %v760_v40, 0.0  ;;  %v624_v49 = vadd.f32 %v1730_v38, %v623_v43 }
  0xfc   : > { %v1442_v46 = vpack.c.bf16 %v859_v37, %v859_v37  ;;  %1150 = vst.msk [vmem:[%s1741_s27 + $0x3c] sm:$0xf] %vm1134_vm3, %v1412_v41  ;;  %1182 = vst.msk [vmem:[%s1741_s27 + $0xbc] sm:$0xf] %vm1134_vm3, %v1444_v42  ;;  %v752_v50 = vadd.f32 %v1730_v38, %v751_v44  ;;  %v1518_v51 = vpop.f32.mrf.mxu0  ;;  %v1550_v52 = vpop.f32.mrf.mxu1 }
  0xfd   : > { %1148 = vst.msk [vmem:[%s1741_s27 + $0x34] sm:$0xf] %vm1134_vm3, %v1410_v45  ;;  %v1415_v53 = vpack.c.bf16 %v832_v47, %v832_v47  ;;  %v1447_v54 = vpack.c.bf16 %v864_v48, %v864_v48  ;;  %v635_v55 = vadd.f32 %v1518_v51, %v1730_v38  ;;  %v763_v56 = vadd.f32 %v1550_v52, %v1730_v38 }
  0xfe   : > { %1180 = vst.msk [vmem:[%s1741_s27 + $0xb4] sm:$0xf] %vm1134_vm3, %v1442_v46  ;;  %v830_v57 = vmax.f32 %v624_v49, 0.0  ;;  %v862_v58 = vmax.f32 %v752_v50, 0.0  ;;  %v626_v59 = vpop.f32.mrf.mxu0  ;;  %v754_v60 = vpop.f32.mrf.mxu1 }
  0xff   : > { %1153 = vst.msk [vmem:[%s1741_s27 + $0x48] sm:$0xf] %vm1134_vm3, %v1415_v53  ;;  %1185 = vst.msk [vmem:[%s1741_s27 + $0xc8] sm:$0xf] %vm1134_vm3, %v1447_v54  ;;  %v833_v61 = vmax.f32 %v635_v55, 0.0  ;;  %v865_v62 = vmax.f32 %v763_v56, 0.0  ;;  %v627_v63 = vadd.f32 %v1730_v38, %v626_v59  ;;  %v755_v0 = vadd.f32 %v1730_v38, %v754_v60 }
 0x100   : > { %v1413_v1 = vpack.c.bf16 %v830_v57, %v830_v57  ;;  %v1445_v2 = vpack.c.bf16 %v862_v58, %v862_v58  ;;  %v1521_v3 = vpop.f32.mrf.mxu0  ;;  %v1553_v4 = vpop.f32.mrf.mxu1 }
 0x101   : > { %v1416_v5 = vpack.c.bf16 %v833_v61, %v833_v61  ;;  %v1448_v6 = vpack.c.bf16 %v865_v62, %v865_v62  ;;  %v831_v7 = vmax.f32 %v627_v63, 0.0  ;;  %v863_v8 = vmax.f32 %v755_v0, 0.0 }
 0x102   : > { %1151 = vst.msk [vmem:[%s1741_s27 + $0x40] sm:$0xf] %vm1134_vm3, %v1413_v1  ;;  %1183 = vst.msk [vmem:[%s1741_s27 + $0xc0] sm:$0xf] %vm1134_vm3, %v1445_v2  ;;  %v648_v9 = vadd.f32 %v1521_v3, %v1730_v38  ;;  %v776_v10 = vadd.f32 %v1553_v4, %v1730_v38  ;;  %v639_v11 = vpop.f32.mrf.mxu0  ;;  %v767_v12 = vpop.f32.mrf.mxu1 }
 0x103   : > { %1154 = vst.msk [vmem:[%s1741_s27 + $0x4c] sm:$0xf] %vm1134_vm3, %v1416_v5  ;;  %1186 = vst.msk [vmem:[%s1741_s27 + $0xcc] sm:$0xf] %vm1134_vm3, %v1448_v6  ;;  %v1414_v13 = vpack.c.bf16 %v831_v7, %v831_v7  ;;  %v1446_v14 = vpack.c.bf16 %v863_v8, %v863_v8  ;;  %v640_v15 = vadd.f32 %v1730_v38, %v639_v11 }
 0x104   : > { %v768_v16 = vadd.f32 %v1730_v38, %v767_v12  ;;  %v836_v17 = vmax.f32 %v648_v9, 0.0  ;;  %v868_v18 = vmax.f32 %v776_v10, 0.0  ;;  %v1522_v19 = vpop.f32.mrf.mxu0  ;;  %v1554_v20 = vpop.f32.mrf.mxu1 }
 0x105   : > { %1152 = vst.msk [vmem:[%s1741_s27 + $0x44] sm:$0xf] %vm1134_vm3, %v1414_v13  ;;  %1184 = vst.msk [vmem:[%s1741_s27 + $0xc4] sm:$0xf] %vm1134_vm3, %v1446_v14  ;;  %v834_v21 = vmax.f32 %v640_v15, 0.0  ;;  %v651_v23 = vadd.f32 %v1522_v19, %v1730_v38  ;;  %v779_v24 = vadd.f32 %v1554_v20, %v1730_v38 }
 0x106   : > { %v866_v22 = vmax.f32 %v768_v16, 0.0  ;;  %v1419_v25 = vpack.c.bf16 %v836_v17, %v836_v17  ;;  %v1451_v26 = vpack.c.bf16 %v868_v18, %v868_v18  ;;  %v642_v27 = vpop.f32.mrf.mxu0  ;;  %v770_v28 = vpop.f32.mrf.mxu1 }
 0x107   : > { %v1417_v29 = vpack.c.bf16 %v834_v21, %v834_v21  ;;  %v837_v31 = vmax.f32 %v651_v23, 0.0  ;;  %v869_v32 = vmax.f32 %v779_v24, 0.0  ;;  %v643_v33 = vadd.f32 %v1730_v38, %v642_v27 }
 0x108   : > { %v1449_v30 = vpack.c.bf16 %v866_v22, %v866_v22  ;;  %1157 = vst.msk [vmem:[%s1741_s27 + $0x58] sm:$0xf] %vm1134_vm3, %v1419_v25  ;;  %1189 = vst.msk [vmem:[%s1741_s27 + $0xd8] sm:$0xf] %vm1134_vm3, %v1451_v26  ;;  %v771_v34 = vadd.f32 %v1730_v38, %v770_v28  ;;  %v1525_v35 = vpop.f32.mrf.mxu0  ;;  %v1557_v36 = vpop.f32.mrf.mxu1 }
 0x109   : > { %1155 = vst.msk [vmem:[%s1741_s27 + $0x50] sm:$0xf] %vm1134_vm3, %v1417_v29  ;;  %v1420_v37 = vpack.c.bf16 %v837_v31, %v837_v31  ;;  %v1452_v39 = vpack.c.bf16 %v869_v32, %v869_v32  ;;  %v664_v40 = vadd.f32 %v1525_v35, %v1730_v38  ;;  %v792_v41 = vadd.f32 %v1557_v36, %v1730_v38 }
 0x10a   : > { %1187 = vst.msk [vmem:[%s1741_s27 + $0xd0] sm:$0xf] %vm1134_vm3, %v1449_v30  ;;  %v835_v42 = vmax.f32 %v643_v33, 0.0  ;;  %v867_v43 = vmax.f32 %v771_v34, 0.0  ;;  %v655_v44 = vpop.f32.mrf.mxu0  ;;  %v783_v45 = vpop.f32.mrf.mxu1 }
 0x10b   : > { %1158 = vst.msk [vmem:[%s1741_s27 + $0x5c] sm:$0xf] %vm1134_vm3, %v1420_v37  ;;  %1190 = vst.msk [vmem:[%s1741_s27 + $0xdc] sm:$0xf] %vm1134_vm3, %v1452_v39  ;;  %v840_v46 = vmax.f32 %v664_v40, 0.0  ;;  %v872_v47 = vmax.f32 %v792_v41, 0.0  ;;  %v656_v48 = vadd.f32 %v1730_v38, %v655_v44  ;;  %v784_v49 = vadd.f32 %v1730_v38, %v783_v45 }
 0x10c   : > { %v1418_v50 = vpack.c.bf16 %v835_v42, %v835_v42  ;;  %v1450_v51 = vpack.c.bf16 %v867_v43, %v867_v43  ;;  %v1526_v52 = vpop.f32.mrf.mxu0  ;;  %v1558_v53 = vpop.f32.mrf.mxu1 }
 0x10d   : > { %v1423_v54 = vpack.c.bf16 %v840_v46, %v840_v46  ;;  %v1455_v55 = vpack.c.bf16 %v872_v47, %v872_v47  ;;  %v838_v56 = vmax.f32 %v656_v48, 0.0  ;;  %v870_v57 = vmax.f32 %v784_v49, 0.0 }
 0x10e   : > { %1156 = vst.msk [vmem:[%s1741_s27 + $0x54] sm:$0xf] %vm1134_vm3, %v1418_v50  ;;  %1188 = vst.msk [vmem:[%s1741_s27 + $0xd4] sm:$0xf] %vm1134_vm3, %v1450_v51  ;;  %v667_v58 = vadd.f32 %v1526_v52, %v1730_v38  ;;  %v795_v59 = vadd.f32 %v1558_v53, %v1730_v38  ;;  %v658_v60 = vpop.f32.mrf.mxu0  ;;  %v786_v61 = vpop.f32.mrf.mxu1 }
 0x10f   : > { %1161 = vst.msk [vmem:[%s1741_s27 + $0x68] sm:$0xf] %vm1134_vm3, %v1423_v54  ;;  %1193 = vst.msk [vmem:[%s1741_s27 + $0xe8] sm:$0xf] %vm1134_vm3, %v1455_v55  ;;  %v1421_v62 = vpack.c.bf16 %v838_v56, %v838_v56  ;;  %v1453_v63 = vpack.c.bf16 %v870_v57, %v870_v57  ;;  %v659_v0 = vadd.f32 %v1730_v38, %v658_v60 }
 0x110   : > { %v787_v1 = vadd.f32 %v1730_v38, %v786_v61  ;;  %v841_v2 = vmax.f32 %v667_v58, 0.0  ;;  %v873_v3 = vmax.f32 %v795_v59, 0.0  ;;  %v1529_v4 = vpop.f32.mrf.mxu0  ;;  %v1561_v5 = vpop.f32.mrf.mxu1 }
 0x111   : > { %1159 = vst.msk [vmem:[%s1741_s27 + $0x60] sm:$0xf] %vm1134_vm3, %v1421_v62  ;;  %1191 = vst.msk [vmem:[%s1741_s27 + $0xe0] sm:$0xf] %vm1134_vm3, %v1453_v63  ;;  %v839_v6 = vmax.f32 %v659_v0, 0.0  ;;  %v680_v8 = vadd.f32 %v1529_v4, %v1730_v38  ;;  %v808_v9 = vadd.f32 %v1561_v5, %v1730_v38 }
 0x112   : > { %v871_v7 = vmax.f32 %v787_v1, 0.0  ;;  %v1424_v10 = vpack.c.bf16 %v841_v2, %v841_v2  ;;  %v1456_v11 = vpack.c.bf16 %v873_v3, %v873_v3  ;;  %v671_v12 = vpop.f32.mrf.mxu0  ;;  %v799_v13 = vpop.f32.mrf.mxu1 }
 0x113   : > { %v1422_v14 = vpack.c.bf16 %v839_v6, %v839_v6  ;;  %v844_v16 = vmax.f32 %v680_v8, 0.0  ;;  %v876_v17 = vmax.f32 %v808_v9, 0.0  ;;  %v672_v18 = vadd.f32 %v1730_v38, %v671_v12 }
 0x114   : > { %v1454_v15 = vpack.c.bf16 %v871_v7, %v871_v7  ;;  %1162 = vst.msk [vmem:[%s1741_s27 + $0x6c] sm:$0xf] %vm1134_vm3, %v1424_v10  ;;  %1194 = vst.msk [vmem:[%s1741_s27 + $0xec] sm:$0xf] %vm1134_vm3, %v1456_v11  ;;  %v800_v19 = vadd.f32 %v1730_v38, %v799_v13  ;;  %v1530_v20 = vpop.f32.mrf.mxu0  ;;  %v1562_v21 = vpop.f32.mrf.mxu1 }
 0x115   : > { %1160 = vst.msk [vmem:[%s1741_s27 + $0x64] sm:$0xf] %vm1134_vm3, %v1422_v14  ;;  %v1427_v22 = vpack.c.bf16 %v844_v16, %v844_v16  ;;  %v1459_v23 = vpack.c.bf16 %v876_v17, %v876_v17  ;;  %v683_v24 = vadd.f32 %v1530_v20, %v1730_v38  ;;  %v811_v25 = vadd.f32 %v1562_v21, %v1730_v38 }
 0x116   : > { %1192 = vst.msk [vmem:[%s1741_s27 + $0xe4] sm:$0xf] %vm1134_vm3, %v1454_v15  ;;  %v842_v26 = vmax.f32 %v672_v18, 0.0  ;;  %v874_v27 = vmax.f32 %v800_v19, 0.0  ;;  %v674_v28 = vpop.f32.mrf.mxu0  ;;  %v802_v29 = vpop.f32.mrf.mxu1 }
 0x117   : > { %1165 = vst.msk [vmem:[%s1741_s27 + $0x78] sm:$0xf] %vm1134_vm3, %v1427_v22  ;;  %1197 = vst.msk [vmem:[%s1741_s27 + $0xf8] sm:$0xf] %vm1134_vm3, %v1459_v23  ;;  %v845_v30 = vmax.f32 %v683_v24, 0.0  ;;  %v877_v31 = vmax.f32 %v811_v25, 0.0  ;;  %v675_v32 = vadd.f32 %v1730_v38, %v674_v28  ;;  %v803_v33 = vadd.f32 %v1730_v38, %v802_v29 }
 0x118   : > { %v1425_v34 = vpack.c.bf16 %v842_v26, %v842_v26  ;;  %v1457_v35 = vpack.c.bf16 %v874_v27, %v874_v27 }
 0x119   : > { %v1428_v36 = vpack.c.bf16 %v845_v30, %v845_v30  ;;  %v1460_v37 = vpack.c.bf16 %v877_v31, %v877_v31  ;;  %v843_v39 = vmax.f32 %v675_v32, 0.0  ;;  %v875_v40 = vmax.f32 %v803_v33, 0.0 }
 0x11a   : > { %1163 = vst.msk [vmem:[%s1741_s27 + $0x70] sm:$0xf] %vm1134_vm3, %v1425_v34  ;;  %1195 = vst.msk [vmem:[%s1741_s27 + $0xf0] sm:$0xf] %vm1134_vm3, %v1457_v35 }
 0x11b   : > { %1166 = vst.msk [vmem:[%s1741_s27 + $0x7c] sm:$0xf] %vm1134_vm3, %v1428_v36  ;;  %1198 = vst.msk [vmem:[%s1741_s27 + $0xfc] sm:$0xf] %vm1134_vm3, %v1460_v37  ;;  %v1426_v41 = vpack.c.bf16 %v843_v39, %v843_v39  ;;  %v1458_v42 = vpack.c.bf16 %v875_v40, %v875_v40 }
 0x11d   : > { %1164 = vst.msk [vmem:[%s1741_s27 + $0x74] sm:$0xf] %vm1134_vm3, %v1426_v41  ;;  %1196 = vst.msk [vmem:[%s1741_s27 + $0xf4] sm:$0xf] %vm1134_vm3, %v1458_v42 }
 0x11e PF: > { %s13_s12 = sadd.s32 1, %s1616_s12  }
 0x11f   : > { %p10_p4 = scmp.ge.s32.totalorder %s13_s12, 6  }
 0x121   :  { %12 = sbr.rel (!%p10_p4) target bundleno = 1 (0x1), region = 62 }

// kernel: joint_embedding2_forward.6
= control target key start
LH: loop header
LB: loop body
LE: loop exit
PB: predicated region body
PF: predicated region fallthrough
CT: control target
= control target key end

     0   :  { %s975_s10 = smov 112   ;;  %vm841_vm0 = vcmask 125952   ;;  %s2458_s0 = inlined_call_operand.vmem [shape: bf16[32,2,16,32], index: 0, kind: input, shape index: {}]   ;;  %s2459_s1 = inlined_call_operand.vmem [shape: bf16[32,16,16], index: 1, kind: output, shape index: {}]  }
   0x1   :  { %v989_v0 = vld [vmem:[%s2458_s0 + $0x10] sm:$0xf]  ;;  %v994_v1 = vld [vmem:[%s2458_s0] sm:$0xf]  ;;  %v1003_v2 = vld [vmem:[%s2458_s0 + $0x14] sm:$0xf] }
   0x2   :  { %205 = vrot.lane.b32.xlu1 %v989_v0, %s975_s10  ;;  %201 = vrot.lane.b32.xlu0 %v994_v1, %s975_s10  ;;  %v1008_v3 = vld [vmem:[%s2458_s0 + $0x4] sm:$0xf]  ;;  %v1022_v5 = vld [vmem:[%s2458_s0 + $0x20] sm:$0xf] }
   0x3   :  { %v1017_v4 = vld [vmem:[%s2458_s0 + $0x24] sm:$0xf]  ;;  %v1031_v6 = vld [vmem:[%s2458_s0 + $0x34] sm:$0xf]  ;;  %v1036_v7 = vld [vmem:[%s2458_s0 + $0x30] sm:$0xf] }
   0x4   :  { %v1045_v8 = vld [vmem:[%s2458_s0 + $0x44] sm:$0xf]  ;;  %v1050_v9 = vld [vmem:[%s2458_s0 + $0x40] sm:$0xf]  ;;  %v1059_v10 = vld [vmem:[%s2458_s0 + $0x54] sm:$0xf] }
   0x5   :  { %v1064_v11 = vld [vmem:[%s2458_s0 + $0x50] sm:$0xf]  ;;  %v1073_v12 = vld [vmem:[%s2458_s0 + $0x64] sm:$0xf]  ;;  %v1078_v13 = vld [vmem:[%s2458_s0 + $0x60] sm:$0xf] }
   0x6   :  { %207 = vrot.lane.b32.xlu1 %v1003_v2, %s975_s10  ;;  %203 = vrot.lane.b32.xlu0 %v1008_v3, %s975_s10  ;;  %v1087_v14 = vld [vmem:[%s2458_s0 + $0x74] sm:$0xf]  ;;  %v1092_v15 = vld [vmem:[%s2458_s0 + $0x70] sm:$0xf] }
   0x7   :  { %v1101_v16 = vld [vmem:[%s2458_s0 + $0x84] sm:$0xf]  ;;  %v1106_v17 = vld [vmem:[%s2458_s0 + $0x80] sm:$0xf]  ;;  %v1115_v18 = vld [vmem:[%s2458_s0 + $0x94] sm:$0xf] }
   0x8   :  { %2546 = vst [vmem:[#allocation2_spill] sm:$0xff] %v1115_v18  ;;  %v1120_v19 = vld [vmem:[%s2458_s0 + $0x90] sm:$0xf]  ;;  %v1129_v20 = vld [vmem:[%s2458_s0 + $0xa4] sm:$0xf] }
   0x9   :  { %2547 = vst [vmem:[#allocation3_spill] sm:$0xff] %v1120_v19  ;;  %2548 = vst [vmem:[#allocation4_spill] sm:$0xff] %v1129_v20  ;;  %v1134_v21 = vld [vmem:[%s2458_s0 + $0xa0] sm:$0xf]  ;;  %v1143_v22 = vld [vmem:[%s2458_s0 + $0xb4] sm:$0xf] }
   0xa   :  { %211 = vrot.lane.b32.xlu1 %v1017_v4, %s975_s10  ;;  %209 = vrot.lane.b32.xlu0 %v1022_v5, %s975_s10  ;;  %2549 = vst [vmem:[#allocation5_spill] sm:$0xff] %v1134_v21  ;;  %2550 = vst [vmem:[#allocation6_spill] sm:$0xff] %v1143_v22  ;;  %v1148_v23 = vld [vmem:[%s2458_s0 + $0xb0] sm:$0xf]  ;;  %v1157_v24 = vld [vmem:[%s2458_s0 + $0xc4] sm:$0xf] }
   0xb   :  { %2551 = vst [vmem:[#allocation7_spill] sm:$0xff] %v1148_v23  ;;  %2552 = vst [vmem:[#allocation8_spill] sm:$0xff] %v1157_v24  ;;  %v1162_v25 = vld [vmem:[%s2458_s0 + $0xc0] sm:$0xf]  ;;  %v1171_v26 = vld [vmem:[%s2458_s0 + $0xd4] sm:$0xf] }
   0xc   :  { %2553 = vst [vmem:[#allocation9_spill] sm:$0xff] %v1162_v25  ;;  %2554 = vst [vmem:[#allocation10_spill] sm:$0xff] %v1171_v26  ;;  %v1176_v27 = vld [vmem:[%s2458_s0 + $0xd0] sm:$0xf]  ;;  %v1185_v28 = vld [vmem:[%s2458_s0 + $0xe4] sm:$0xf] }
   0xd   :  { %2555 = vst [vmem:[#allocation11_spill] sm:$0xff] %v1176_v27  ;;  %2556 = vst [vmem:[#allocation12_spill] sm:$0xff] %v1185_v28  ;;  %v1190_v29 = vld [vmem:[%s2458_s0 + $0xe0] sm:$0xf]  ;;  %v1199_v30 = vld [vmem:[%s2458_s0 + $0xf4] sm:$0xf] }
   0xe   :  { %215 = vrot.lane.b32.xlu1 %v1031_v6, %s975_s10  ;;  %213 = vrot.lane.b32.xlu0 %v1036_v7, %s975_s10  ;;  %2557 = vst [vmem:[#allocation13_spill] sm:$0xff] %v1190_v29  ;;  %2558 = vst [vmem:[#allocation14_spill] sm:$0xff] %v1199_v30  ;;  %v1204_v31 = vld [vmem:[%s2458_s0 + $0xf0] sm:$0xf]  ;;  %v1213_v32 = vld [vmem:[%s2458_s0 + $0x104] sm:$0xf] }
   0xf   :  { %2559 = vst [vmem:[#allocation15_spill] sm:$0xff] %v1204_v31  ;;  %2560 = vst [vmem:[#allocation16_spill] sm:$0xff] %v1213_v32  ;;  %v1218_v33 = vld [vmem:[%s2458_s0 + $0x100] sm:$0xf]  ;;  %v1227_v34 = vld [vmem:[%s2458_s0 + $0x114] sm:$0xf] }
  0x10   :  { %2561 = vst [vmem:[#allocation17_spill] sm:$0xff] %v1218_v33  ;;  %2562 = vst [vmem:[#allocation18_spill] sm:$0xff] %v1227_v34  ;;  %v1232_v35 = vld [vmem:[%s2458_s0 + $0x110] sm:$0xf]  ;;  %v1241_v36 = vld [vmem:[%s2458_s0 + $0x124] sm:$0xf] }
  0x11   :  { %2563 = vst [vmem:[#allocation19_spill] sm:$0xff] %v1232_v35  ;;  %2564 = vst [vmem:[#allocation20_spill] sm:$0xff] %v1241_v36  ;;  %v1246_v37 = vld [vmem:[%s2458_s0 + $0x120] sm:$0xf]  ;;  %v1255_v38 = vld [vmem:[%s2458_s0 + $0x134] sm:$0xf] }
  0x12   :  { %219 = vrot.lane.b32.xlu1 %v1045_v8, %s975_s10  ;;  %217 = vrot.lane.b32.xlu0 %v1050_v9, %s975_s10  ;;  %2565 = vst [vmem:[#allocation21_spill] sm:$0xff] %v1246_v37  ;;  %2566 = vst [vmem:[#allocation22_spill] sm:$0xff] %v1255_v38  ;;  %v1260_v39 = vld [vmem:[%s2458_s0 + $0x130] sm:$0xf]  ;;  %v1269_v40 = vld [vmem:[%s2458_s0 + $0x144] sm:$0xf] }
  0x13   :  { %2567 = vst [vmem:[#allocation23_spill] sm:$0xff] %v1260_v39  ;;  %2568 = vst [vmem:[#allocation24_spill] sm:$0xff] %v1269_v40  ;;  %v1274_v41 = vld [vmem:[%s2458_s0 + $0x140] sm:$0xf]  ;;  %v1283_v42 = vld [vmem:[%s2458_s0 + $0x154] sm:$0xf] }
  0x14   :  { %2569 = vst [vmem:[#allocation25_spill] sm:$0xff] %v1274_v41  ;;  %2570 = vst [vmem:[#allocation26_spill] sm:$0xff] %v1283_v42  ;;  %v1288_v43 = vld [vmem:[%s2458_s0 + $0x150] sm:$0xf]  ;;  %v1297_v44 = vld [vmem:[%s2458_s0 + $0x164] sm:$0xf] }
  0x15   :  { %2571 = vst [vmem:[#allocation27_spill] sm:$0xff] %v1288_v43  ;;  %2572 = vst [vmem:[#allocation28_spill] sm:$0xff] %v1297_v44  ;;  %v1302_v45 = vld [vmem:[%s2458_s0 + $0x160] sm:$0xf]  ;;  %v1311_v46 = vld [vmem:[%s2458_s0 + $0x174] sm:$0xf] }
  0x16   :  { %223 = vrot.lane.b32.xlu1 %v1059_v10, %s975_s10  ;;  %221 = vrot.lane.b32.xlu0 %v1064_v11, %s975_s10  ;;  %2573 = vst [vmem:[#allocation29_spill] sm:$0xff] %v1302_v45  ;;  %2574 = vst [vmem:[#allocation30_spill] sm:$0xff] %v1311_v46  ;;  %v1316_v47 = vld [vmem:[%s2458_s0 + $0x170] sm:$0xf]  ;;  %v1325_v48 = vld [vmem:[%s2458_s0 + $0x184] sm:$0xf] }
  0x17   :  { %2575 = vst [vmem:[#allocation31_spill] sm:$0xff] %v1316_v47  ;;  %2576 = vst [vmem:[#allocation32_spill] sm:$0xff] %v1325_v48  ;;  %v1330_v49 = vld [vmem:[%s2458_s0 + $0x180] sm:$0xf]  ;;  %v1339_v50 = vld [vmem:[%s2458_s0 + $0x194] sm:$0xf] }
  0x18   :  { %2577 = vst [vmem:[#allocation33_spill] sm:$0xff] %v1330_v49  ;;  %2578 = vst [vmem:[#allocation34_spill] sm:$0xff] %v1339_v50  ;;  %v1344_v51 = vld [vmem:[%s2458_s0 + $0x190] sm:$0xf]  ;;  %v1353_v52 = vld [vmem:[%s2458_s0 + $0x1a4] sm:$0xf] }
  0x19   :  { %2579 = vst [vmem:[#allocation35_spill] sm:$0xff] %v1344_v51  ;;  %2580 = vst [vmem:[#allocation36_spill] sm:$0xff] %v1353_v52  ;;  %v1358_v53 = vld [vmem:[%s2458_s0 + $0x1a0] sm:$0xf]  ;;  %v1367_v54 = vld [vmem:[%s2458_s0 + $0x1b4] sm:$0xf] }
  0x1a   :  { %227 = vrot.lane.b32.xlu1 %v1073_v12, %s975_s10  ;;  %225 = vrot.lane.b32.xlu0 %v1078_v13, %s975_s10  ;;  %2581 = vst [vmem:[#allocation37_spill] sm:$0xff] %v1358_v53  ;;  %2582 = vst [vmem:[#allocation38_spill] sm:$0xff] %v1367_v54  ;;  %v1372_v55 = vld [vmem:[%s2458_s0 + $0x1b0] sm:$0xf]  ;;  %v1381_v56 = vld [vmem:[%s2458_s0 + $0x1c4] sm:$0xf] }
  0x1b   :  { %2583 = vst [vmem:[#allocation39_spill] sm:$0xff] %v1372_v55  ;;  %2584 = vst [vmem:[#allocation40_spill] sm:$0xff] %v1381_v56  ;;  %v1386_v57 = vld [vmem:[%s2458_s0 + $0x1c0] sm:$0xf]  ;;  %v1395_v58 = vld [vmem:[%s2458_s0 + $0x1d4] sm:$0xf] }
  0x1c   :  { %2585 = vst [vmem:[#allocation41_spill] sm:$0xff] %v1386_v57  ;;  %2586 = vst [vmem:[#allocation42_spill] sm:$0xff] %v1395_v58  ;;  %v1400_v59 = vld [vmem:[%s2458_s0 + $0x1d0] sm:$0xf]  ;;  %v1413_v62 = vld [vmem:[%s2458_s0 + $0x1e4] sm:$0xf] }
  0x1d   :  { %2587 = vst [vmem:[#allocation43_spill] sm:$0xff] %v1400_v59  ;;  %2588 = vst [vmem:[#allocation44_spill] sm:$0xff] %v1413_v62  ;;  %v1418_v63 = vld [vmem:[%s2458_s0 + $0x1e0] sm:$0xf] }
  0x1e   :  { %231 = vrot.lane.b32.xlu1 %v1087_v14, %s975_s10  ;;  %229 = vrot.lane.b32.xlu0 %v1092_v15, %s975_s10  ;;  %2589 = vst [vmem:[#allocation45_spill] sm:$0xff] %v1418_v63 }
  0x22   :  { %235 = vrot.lane.b32.xlu1 %v1101_v16, %s975_s10  ;;  %233 = vrot.lane.b32.xlu0 %v1106_v17, %s975_s10 }
  0x26   :  { %239 = vrot.lane.b32.xlu1 %v1115_v18, %s975_s10  ;;  %237 = vrot.lane.b32.xlu0 %v1120_v19, %s975_s10 }
  0x2a   :  { %243 = vrot.lane.b32.xlu1 %v1129_v20, %s975_s10  ;;  %241 = vrot.lane.b32.xlu0 %v1134_v21, %s975_s10  ;;  %v1616_v21 = vld [vmem:[%s2458_s0 + $0x98] sm:$0xf]  ;;  %v1634_v20 = vld [vmem:[%s2458_s0 + $0xa8] sm:$0xf] }
  0x2b   :  { %2599 = vst [vmem:[#allocation55_spill] sm:$0xff] %v1616_v21  ;;  %2603 = vst [vmem:[#allocation59_spill] sm:$0xff] %v1634_v20 }
  0x2e   :  { %247 = vrot.lane.b32.xlu1 %v1143_v22, %s975_s10  ;;  %245 = vrot.lane.b32.xlu0 %v1148_v23, %s975_s10 }
  0x32   :  { %251 = vrot.lane.b32.xlu1 %v1157_v24, %s975_s10  ;;  %249 = vrot.lane.b32.xlu0 %v1162_v25, %s975_s10  ;;  %v1593_v25 = vld [vmem:[%s2458_s0 + $0x8c] sm:$0xf]  ;;  %v1598_v24 = vld [vmem:[%s2458_s0 + $0x88] sm:$0xf] }
  0x36   :  { %255 = vrot.lane.b32.xlu1 %v1171_v26, %s975_s10  ;;  %253 = vrot.lane.b32.xlu0 %v1176_v27, %s975_s10 }
  0x3a   :  { %259 = vrot.lane.b32.xlu1 %v1185_v28, %s975_s10  ;;  %257 = vrot.lane.b32.xlu0 %v1190_v29, %s975_s10  ;;  %v1575_v29 = vld [vmem:[%s2458_s0 + $0x7c] sm:$0xf]  ;;  %v1580_v28 = vld [vmem:[%s2458_s0 + $0x78] sm:$0xf] }
  0x3e   :  { %263 = vrot.lane.b32.xlu1 %v1199_v30, %s975_s10  ;;  %261 = vrot.lane.b32.xlu0 %v1204_v31, %s975_s10 }
  0x42   :  { %267 = vrot.lane.b32.xlu1 %v1213_v32, %s975_s10  ;;  %265 = vrot.lane.b32.xlu0 %v1218_v33, %s975_s10  ;;  %v1557_v33 = vld [vmem:[%s2458_s0 + $0x6c] sm:$0xf]  ;;  %v1562_v32 = vld [vmem:[%s2458_s0 + $0x68] sm:$0xf] }
  0x46   :  { %271 = vrot.lane.b32.xlu1 %v1227_v34, %s975_s10  ;;  %269 = vrot.lane.b32.xlu0 %v1232_v35, %s975_s10 }
  0x4a   :  { %275 = vrot.lane.b32.xlu1 %v1241_v36, %s975_s10  ;;  %273 = vrot.lane.b32.xlu0 %v1246_v37, %s975_s10  ;;  %v1539_v37 = vld [vmem:[%s2458_s0 + $0x5c] sm:$0xf]  ;;  %v1544_v36 = vld [vmem:[%s2458_s0 + $0x58] sm:$0xf] }
  0x4e   :  { %279 = vrot.lane.b32.xlu1 %v1255_v38, %s975_s10  ;;  %277 = vrot.lane.b32.xlu0 %v1260_v39, %s975_s10 }
  0x52   :  { %283 = vrot.lane.b32.xlu1 %v1269_v40, %s975_s10  ;;  %281 = vrot.lane.b32.xlu0 %v1274_v41, %s975_s10  ;;  %v1521_v41 = vld [vmem:[%s2458_s0 + $0x4c] sm:$0xf]  ;;  %v1526_v40 = vld [vmem:[%s2458_s0 + $0x48] sm:$0xf] }
  0x56   :  { %287 = vrot.lane.b32.xlu1 %v1283_v42, %s975_s10  ;;  %285 = vrot.lane.b32.xlu0 %v1288_v43, %s975_s10 }
  0x5a   :  { %291 = vrot.lane.b32.xlu1 %v1297_v44, %s975_s10  ;;  %289 = vrot.lane.b32.xlu0 %v1302_v45, %s975_s10  ;;  %v1503_v45 = vld [vmem:[%s2458_s0 + $0x3c] sm:$0xf]  ;;  %v1508_v44 = vld [vmem:[%s2458_s0 + $0x38] sm:$0xf] }
  0x5e   :  { %295 = vrot.lane.b32.xlu1 %v1311_v46, %s975_s10  ;;  %293 = vrot.lane.b32.xlu0 %v1316_v47, %s975_s10 }
  0x62   :  { %299 = vrot.lane.b32.xlu1 %v1325_v48, %s975_s10  ;;  %297 = vrot.lane.b32.xlu0 %v1330_v49, %s975_s10  ;;  %v1485_v49 = vld [vmem:[%s2458_s0 + $0x2c] sm:$0xf]  ;;  %v1490_v48 = vld [vmem:[%s2458_s0 + $0x28] sm:$0xf] }
  0x66   :  { %303 = vrot.lane.b32.xlu1 %v1339_v50, %s975_s10  ;;  %301 = vrot.lane.b32.xlu0 %v1344_v51, %s975_s10 }
  0x6a   :  { %307 = vrot.lane.b32.xlu1 %v1353_v52, %s975_s10  ;;  %305 = vrot.lane.b32.xlu0 %v1358_v53, %s975_s10 }
  0x6e   :  { %311 = vrot.lane.b32.xlu1 %v1367_v54, %s975_s10  ;;  %309 = vrot.lane.b32.xlu0 %v1372_v55, %s975_s10 }
  0x72   :  { %315 = vrot.lane.b32.xlu1 %v1381_v56, %s975_s10  ;;  %313 = vrot.lane.b32.xlu0 %v1386_v57, %s975_s10 }
  0x74   :  { %v1402_v60 = vpop.permute.xlu1 %205  ;;  %v1404_v61 = vpop.permute.xlu0 %201 }
  0x76   :  { %319 = vrot.lane.b32.xlu1 %v1395_v58, %s975_s10  ;;  %317 = vrot.lane.b32.xlu0 %v1400_v59, %s975_s10  ;;  %v1431_v59 = vld [vmem:[%s2458_s0 + $0x1f4] sm:$0xf]  ;;  %v1436_v58 = vld [vmem:[%s2458_s0 + $0x1f0] sm:$0xf] }
  0x77   :  { %2590 = vst [vmem:[#allocation46_spill] sm:$0xff] %v1431_v59  ;;  %2591 = vst [vmem:[#allocation47_spill] sm:$0xff] %v1436_v58 }
  0x78   :  { %v1420_v57 = vpop.permute.xlu1 %207  ;;  %v1422_v56 = vpop.permute.xlu0 %203 }
  0x7a   :  { %323 = vrot.lane.b32.xlu1 %v1413_v62, %s975_s10  ;;  %321 = vrot.lane.b32.xlu0 %v1418_v63, %s975_s10  ;;  %v1449_v63 = vld [vmem:[%s2458_s0 + $0xc] sm:$0xf]  ;;  %v1454_v62 = vld [vmem:[%s2458_s0 + $0x8] sm:$0xf] }
  0x7c   :  { %v1438_v55 = vpop.permute.xlu1 %211  ;;  %v1440_v54 = vpop.permute.xlu0 %209 }
  0x7e   :  { %327 = vrot.lane.b32.xlu1 %v1431_v59, %s975_s10  ;;  %325 = vrot.lane.b32.xlu0 %v1436_v58, %s975_s10  ;;  %v1467_v58 = vld [vmem:[%s2458_s0 + $0x1c] sm:$0xf]  ;;  %v1472_v59 = vld [vmem:[%s2458_s0 + $0x18] sm:$0xf] }
  0x80   :  { %v1456_v53 = vpop.permute.xlu1 %215  ;;  %v1458_v52 = vpop.permute.xlu0 %213 }
  0x82   :  { %523 = vrot.lane.b32.xlu1 %v1449_v63, %s975_s10  ;;  %521 = vrot.lane.b32.xlu0 %v1454_v62, %s975_s10 }
  0x84   :  { %v1474_v51 = vpop.permute.xlu1 %219  ;;  %v1476_v50 = vpop.permute.xlu0 %217 }
  0x86   :  { %527 = vrot.lane.b32.xlu1 %v1467_v58, %s975_s10  ;;  %525 = vrot.lane.b32.xlu0 %v1472_v59, %s975_s10 }
  0x88   :  { %v1492_v47 = vpop.permute.xlu1 %223  ;;  %v1494_v46 = vpop.permute.xlu0 %221 }
  0x8a   :  { %531 = vrot.lane.b32.xlu1 %v1485_v49, %s975_s10  ;;  %529 = vrot.lane.b32.xlu0 %v1490_v48, %s975_s10 }
  0x8c   :  { %v1510_v43 = vpop.permute.xlu1 %227  ;;  %v1512_v42 = vpop.permute.xlu0 %225 }
  0x8e   :  { %535 = vrot.lane.b32.xlu1 %v1503_v45, %s975_s10  ;;  %533 = vrot.lane.b32.xlu0 %v1508_v44, %s975_s10 }
  0x90   :  { %v1528_v39 = vpop.permute.xlu1 %231  ;;  %v1530_v38 = vpop.permute.xlu0 %229 }
  0x92   :  { %539 = vrot.lane.b32.xlu1 %v1521_v41, %s975_s10  ;;  %537 = vrot.lane.b32.xlu0 %v1526_v40, %s975_s10 }
  0x94   :  { %v1546_v35 = vpop.permute.xlu1 %235  ;;  %v1548_v34 = vpop.permute.xlu0 %233 }
  0x96   :  { %543 = vrot.lane.b32.xlu1 %v1539_v37, %s975_s10  ;;  %541 = vrot.lane.b32.xlu0 %v1544_v36, %s975_s10 }
  0x98   :  { %v1564_v31 = vpop.permute.xlu1 %239  ;;  %v1566_v30 = vpop.permute.xlu0 %237 }
  0x99   :  { %2592 = vst [vmem:[#allocation48_spill] sm:$0xff] %v1564_v31  ;;  %2593 = vst [vmem:[#allocation49_spill] sm:$0xff] %v1566_v30 }
  0x9a   :  { %547 = vrot.lane.b32.xlu1 %v1557_v33, %s975_s10  ;;  %545 = vrot.lane.b32.xlu0 %v1562_v32, %s975_s10 }
  0x9c   :  { %v1582_v27 = vpop.permute.xlu1 %243  ;;  %v1584_v26 = vpop.permute.xlu0 %241 }
  0x9d   :  { %2594 = vst [vmem:[#allocation50_spill] sm:$0xff] %v1582_v27  ;;  %2595 = vst [vmem:[#allocation51_spill] sm:$0xff] %v1584_v26  ;;  %v1611_v26 = vld [vmem:[%s2458_s0 + $0x9c] sm:$0xf] }
  0x9e   :  { %551 = vrot.lane.b32.xlu1 %v1575_v29, %s975_s10  ;;  %549 = vrot.lane.b32.xlu0 %v1580_v28, %s975_s10  ;;  %2598 = vst [vmem:[#allocation54_spill] sm:$0xff] %v1611_v26 }
  0xa0   :  { %v1600_v23 = vpop.permute.xlu1 %247  ;;  %v1602_v22 = vpop.permute.xlu0 %245 }
  0xa1   :  { %2596 = vst [vmem:[#allocation52_spill] sm:$0xff] %v1600_v23  ;;  %2597 = vst [vmem:[#allocation53_spill] sm:$0xff] %v1602_v22  ;;  %v1629_v22 = vld [vmem:[%s2458_s0 + $0xac] sm:$0xf] }
  0xa2   :  { %555 = vrot.lane.b32.xlu1 %v1593_v25, %s975_s10  ;;  %553 = vrot.lane.b32.xlu0 %v1598_v24, %s975_s10  ;;  %2602 = vst [vmem:[#allocation58_spill] sm:$0xff] %v1629_v22 }
  0xa4   :  { %v1618_v27 = vpop.permute.xlu1 %251  ;;  %v1620_v23 = vpop.permute.xlu0 %249 }
  0xa5   :  { %2600 = vst [vmem:[#allocation56_spill] sm:$0xff] %v1618_v27  ;;  %2601 = vst [vmem:[#allocation57_spill] sm:$0xff] %v1620_v23  ;;  %v1647_v23 = vld [vmem:[%s2458_s0 + $0xbc] sm:$0xf] }
  0xa6   :  { %559 = vrot.lane.b32.xlu1 %v1611_v26, %s975_s10  ;;  %557 = vrot.lane.b32.xlu0 %v1616_v21, %s975_s10  ;;  %2606 = vst [vmem:[#allocation62_spill] sm:$0xff] %v1647_v23  ;;  %v1652_v21 = vld [vmem:[%s2458_s0 + $0xb8] sm:$0xf] }
  0xa7   :  { %2607 = vst [vmem:[#allocation63_spill] sm:$0xff] %v1652_v21 }
  0xa8   :  { %v1636_v30 = vpop.permute.xlu1 %255  ;;  %v1638_v27 = vpop.permute.xlu0 %253 }
  0xa9   :  { %2604 = vst [vmem:[#allocation60_spill] sm:$0xff] %v1636_v30  ;;  %2605 = vst [vmem:[#allocation61_spill] sm:$0xff] %v1638_v27  ;;  %v1665_v27 = vld [vmem:[%s2458_s0 + $0xcc] sm:$0xf] }
  0xaa   :  { %563 = vrot.lane.b32.xlu1 %v1629_v22, %s975_s10  ;;  %561 = vrot.lane.b32.xlu0 %v1634_v20, %s975_s10  ;;  %2610 = vst [vmem:[#allocation66_spill] sm:$0xff] %v1665_v27  ;;  %v1670_v20 = vld [vmem:[%s2458_s0 + $0xc8] sm:$0xf] }
  0xab   :  { %2611 = vst [vmem:[#allocation67_spill] sm:$0xff] %v1670_v20 }
  0xac   :  { %v1654_v26 = vpop.permute.xlu1 %259  ;;  %v1656_v30 = vpop.permute.xlu0 %257 }
  0xad   :  { %2608 = vst [vmem:[#allocation64_spill] sm:$0xff] %v1654_v26  ;;  %2609 = vst [vmem:[#allocation65_spill] sm:$0xff] %v1656_v30  ;;  %v1683_v30 = vld [vmem:[%s2458_s0 + $0xdc] sm:$0xf] }
  0xae   :  { %567 = vrot.lane.b32.xlu1 %v1647_v23, %s975_s10  ;;  %565 = vrot.lane.b32.xlu0 %v1652_v21, %s975_s10  ;;  %2614 = vst [vmem:[#allocation70_spill] sm:$0xff] %v1683_v30  ;;  %v1688_v21 = vld [vmem:[%s2458_s0 + $0xd8] sm:$0xf] }
  0xaf   :  { %2615 = vst [vmem:[#allocation71_spill] sm:$0xff] %v1688_v21 }
  0xb0   :  { %v1672_v22 = vpop.permute.xlu1 %263  ;;  %v1674_v26 = vpop.permute.xlu0 %261 }
  0xb1   :  { %2612 = vst [vmem:[#allocation68_spill] sm:$0xff] %v1672_v22  ;;  %2613 = vst [vmem:[#allocation69_spill] sm:$0xff] %v1674_v26  ;;  %v1701_v26 = vld [vmem:[%s2458_s0 + $0xec] sm:$0xf] }
  0xb2   :  { %571 = vrot.lane.b32.xlu1 %v1665_v27, %s975_s10  ;;  %569 = vrot.lane.b32.xlu0 %v1670_v20, %s975_s10  ;;  %2618 = vst [vmem:[#allocation74_spill] sm:$0xff] %v1701_v26  ;;  %v1706_v20 = vld [vmem:[%s2458_s0 + $0xe8] sm:$0xf] }
  0xb3   :  { %2619 = vst [vmem:[#allocation75_spill] sm:$0xff] %v1706_v20 }
  0xb4   :  { %v1690_v23 = vpop.permute.xlu1 %267  ;;  %v1692_v22 = vpop.permute.xlu0 %265 }
  0xb5   :  { %2616 = vst [vmem:[#allocation72_spill] sm:$0xff] %v1690_v23  ;;  %2617 = vst [vmem:[#allocation73_spill] sm:$0xff] %v1692_v22  ;;  %v1719_v22 = vld [vmem:[%s2458_s0 + $0xfc] sm:$0xf] }
  0xb6   :  { %575 = vrot.lane.b32.xlu1 %v1683_v30, %s975_s10  ;;  %573 = vrot.lane.b32.xlu0 %v1688_v21, %s975_s10  ;;  %2622 = vst [vmem:[#allocation78_spill] sm:$0xff] %v1719_v22  ;;  %v1724_v21 = vld [vmem:[%s2458_s0 + $0xf8] sm:$0xf] }
  0xb7   :  { %2623 = vst [vmem:[#allocation79_spill] sm:$0xff] %v1724_v21 }
  0xb8   :  { %v1708_v27 = vpop.permute.xlu1 %271  ;;  %v1710_v23 = vpop.permute.xlu0 %269 }
  0xb9   :  { %2620 = vst [vmem:[#allocation76_spill] sm:$0xff] %v1708_v27  ;;  %2621 = vst [vmem:[#allocation77_spill] sm:$0xff] %v1710_v23  ;;  %v1737_v23 = vld [vmem:[%s2458_s0 + $0x10c] sm:$0xf] }
  0xba   :  { %579 = vrot.lane.b32.xlu1 %v1701_v26, %s975_s10  ;;  %577 = vrot.lane.b32.xlu0 %v1706_v20, %s975_s10  ;;  %2626 = vst [vmem:[#allocation82_spill] sm:$0xff] %v1737_v23  ;;  %v1742_v20 = vld [vmem:[%s2458_s0 + $0x108] sm:$0xf] }
  0xbb   :  { %2627 = vst [vmem:[#allocation83_spill] sm:$0xff] %v1742_v20 }
  0xbc   :  { %v1726_v30 = vpop.permute.xlu1 %275  ;;  %v1728_v27 = vpop.permute.xlu0 %273 }
  0xbd   :  { %2624 = vst [vmem:[#allocation80_spill] sm:$0xff] %v1726_v30  ;;  %2625 = vst [vmem:[#allocation81_spill] sm:$0xff] %v1728_v27  ;;  %v1755_v27 = vld [vmem:[%s2458_s0 + $0x11c] sm:$0xf] }
  0xbe   :  { %583 = vrot.lane.b32.xlu1 %v1719_v22, %s975_s10  ;;  %581 = vrot.lane.b32.xlu0 %v1724_v21, %s975_s10  ;;  %2630 = vst [vmem:[#allocation86_spill] sm:$0xff] %v1755_v27  ;;  %v1760_v21 = vld [vmem:[%s2458_s0 + $0x118] sm:$0xf] }
  0xbf   :  { %2631 = vst [vmem:[#allocation87_spill] sm:$0xff] %v1760_v21 }
  0xc0   :  { %v1744_v26 = vpop.permute.xlu1 %279  ;;  %v1746_v30 = vpop.permute.xlu0 %277 }
  0xc1   :  { %2628 = vst [vmem:[#allocation84_spill] sm:$0xff] %v1744_v26  ;;  %2629 = vst [vmem:[#allocation85_spill] sm:$0xff] %v1746_v30  ;;  %v1773_v30 = vld [vmem:[%s2458_s0 + $0x12c] sm:$0xf] }
  0xc2   :  { %587 = vrot.lane.b32.xlu1 %v1737_v23, %s975_s10  ;;  %585 = vrot.lane.b32.xlu0 %v1742_v20, %s975_s10  ;;  %2634 = vst [vmem:[#allocation90_spill] sm:$0xff] %v1773_v30  ;;  %v1778_v20 = vld [vmem:[%s2458_s0 + $0x128] sm:$0xf] }
  0xc3   :  { %2635 = vst [vmem:[#allocation91_spill] sm:$0xff] %v1778_v20 }
  0xc4   :  { %v1762_v22 = vpop.permute.xlu1 %283  ;;  %v1764_v26 = vpop.permute.xlu0 %281 }
  0xc5   :  { %2632 = vst [vmem:[#allocation88_spill] sm:$0xff] %v1762_v22  ;;  %2633 = vst [vmem:[#allocation89_spill] sm:$0xff] %v1764_v26  ;;  %v1791_v26 = vld [vmem:[%s2458_s0 + $0x13c] sm:$0xf] }
  0xc6   :  { %591 = vrot.lane.b32.xlu1 %v1755_v27, %s975_s10  ;;  %589 = vrot.lane.b32.xlu0 %v1760_v21, %s975_s10  ;;  %2638 = vst [vmem:[#allocation94_spill] sm:$0xff] %v1791_v26  ;;  %v1796_v21 = vld [vmem:[%s2458_s0 + $0x138] sm:$0xf] }
  0xc7   :  { %2639 = vst [vmem:[#allocation95_spill] sm:$0xff] %v1796_v21 }
  0xc8   :  { %v1780_v23 = vpop.permute.xlu1 %287  ;;  %v1782_v22 = vpop.permute.xlu0 %285 }
  0xc9   :  { %2636 = vst [vmem:[#allocation92_spill] sm:$0xff] %v1780_v23  ;;  %2637 = vst [vmem:[#allocation93_spill] sm:$0xff] %v1782_v22  ;;  %v1809_v22 = vld [vmem:[%s2458_s0 + $0x14c] sm:$0xf] }
  0xca   :  { %595 = vrot.lane.b32.xlu1 %v1773_v30, %s975_s10  ;;  %593 = vrot.lane.b32.xlu0 %v1778_v20, %s975_s10  ;;  %2642 = vst [vmem:[#allocation98_spill] sm:$0xff] %v1809_v22  ;;  %v1814_v20 = vld [vmem:[%s2458_s0 + $0x148] sm:$0xf] }
  0xcb   :  { %2643 = vst [vmem:[#allocation99_spill] sm:$0xff] %v1814_v20 }
  0xcc   :  { %v1798_v27 = vpop.permute.xlu1 %291  ;;  %v1800_v23 = vpop.permute.xlu0 %289 }
  0xcd   :  { %2640 = vst [vmem:[#allocation96_spill] sm:$0xff] %v1798_v27  ;;  %2641 = vst [vmem:[#allocation97_spill] sm:$0xff] %v1800_v23  ;;  %v1827_v23 = vld [vmem:[%s2458_s0 + $0x15c] sm:$0xf] }
  0xce   :  { %599 = vrot.lane.b32.xlu1 %v1791_v26, %s975_s10  ;;  %597 = vrot.lane.b32.xlu0 %v1796_v21, %s975_s10  ;;  %2646 = vst [vmem:[#allocation102_spill] sm:$0xff] %v1827_v23  ;;  %v1832_v21 = vld [vmem:[%s2458_s0 + $0x158] sm:$0xf] }
  0xcf   :  { %2647 = vst [vmem:[#allocation103_spill] sm:$0xff] %v1832_v21 }
  0xd0   :  { %v1816_v30 = vpop.permute.xlu1 %295  ;;  %v1818_v27 = vpop.permute.xlu0 %293 }
  0xd1   :  { %2644 = vst [vmem:[#allocation100_spill] sm:$0xff] %v1816_v30  ;;  %2645 = vst [vmem:[#allocation101_spill] sm:$0xff] %v1818_v27  ;;  %v1845_v27 = vld [vmem:[%s2458_s0 + $0x16c] sm:$0xf] }
  0xd2   :  { %603 = vrot.lane.b32.xlu1 %v1809_v22, %s975_s10  ;;  %601 = vrot.lane.b32.xlu0 %v1814_v20, %s975_s10  ;;  %2650 = vst [vmem:[#allocation106_spill] sm:$0xff] %v1845_v27  ;;  %v1850_v20 = vld [vmem:[%s2458_s0 + $0x168] sm:$0xf] }
  0xd3   :  { %2651 = vst [vmem:[#allocation107_spill] sm:$0xff] %v1850_v20 }
  0xd4   :  { %v1834_v26 = vpop.permute.xlu1 %299  ;;  %v1836_v30 = vpop.permute.xlu0 %297 }
  0xd5   :  { %2648 = vst [vmem:[#allocation104_spill] sm:$0xff] %v1834_v26  ;;  %2649 = vst [vmem:[#allocation105_spill] sm:$0xff] %v1836_v30  ;;  %v1863_v30 = vld [vmem:[%s2458_s0 + $0x17c] sm:$0xf] }
  0xd6   :  { %607 = vrot.lane.b32.xlu1 %v1827_v23, %s975_s10  ;;  %605 = vrot.lane.b32.xlu0 %v1832_v21, %s975_s10  ;;  %2654 = vst [vmem:[#allocation110_spill] sm:$0xff] %v1863_v30  ;;  %v1868_v21 = vld [vmem:[%s2458_s0 + $0x178] sm:$0xf] }
  0xd7   :  { %2655 = vst [vmem:[#allocation111_spill] sm:$0xff] %v1868_v21 }
  0xd8   :  { %v1852_v22 = vpop.permute.xlu1 %303  ;;  %v1854_v26 = vpop.permute.xlu0 %301 }
  0xd9   :  { %2652 = vst [vmem:[#allocation108_spill] sm:$0xff] %v1852_v22  ;;  %2653 = vst [vmem:[#allocation109_spill] sm:$0xff] %v1854_v26  ;;  %v1881_v26 = vld [vmem:[%s2458_s0 + $0x18c] sm:$0xf] }
  0xda   :  { %611 = vrot.lane.b32.xlu1 %v1845_v27, %s975_s10  ;;  %609 = vrot.lane.b32.xlu0 %v1850_v20, %s975_s10  ;;  %2658 = vst [vmem:[#allocation114_spill] sm:$0xff] %v1881_v26  ;;  %v1886_v20 = vld [vmem:[%s2458_s0 + $0x188] sm:$0xf] }
  0xdb   :  { %2659 = vst [vmem:[#allocation115_spill] sm:$0xff] %v1886_v20 }
  0xdc   :  { %v1870_v23 = vpop.permute.xlu1 %307  ;;  %v1872_v22 = vpop.permute.xlu0 %305 }
  0xdd   :  { %2656 = vst [vmem:[#allocation112_spill] sm:$0xff] %v1870_v23  ;;  %2657 = vst [vmem:[#allocation113_spill] sm:$0xff] %v1872_v22  ;;  %v1899_v22 = vld [vmem:[%s2458_s0 + $0x19c] sm:$0xf] }
  0xde   :  { %615 = vrot.lane.b32.xlu1 %v1863_v30, %s975_s10  ;;  %613 = vrot.lane.b32.xlu0 %v1868_v21, %s975_s10  ;;  %2662 = vst [vmem:[#allocation118_spill] sm:$0xff] %v1899_v22  ;;  %v1904_v21 = vld [vmem:[%s2458_s0 + $0x198] sm:$0xf] }
  0xdf   :  { %2663 = vst [vmem:[#allocation119_spill] sm:$0xff] %v1904_v21 }
  0xe0   :  { %v1888_v27 = vpop.permute.xlu1 %311  ;;  %v1890_v23 = vpop.permute.xlu0 %309 }
  0xe1   :  { %2660 = vst [vmem:[#allocation116_spill] sm:$0xff] %v1888_v27  ;;  %2661 = vst [vmem:[#allocation117_spill] sm:$0xff] %v1890_v23  ;;  %v1917_v23 = vld [vmem:[%s2458_s0 + $0x1ac] sm:$0xf] }
  0xe2   :  { %619 = vrot.lane.b32.xlu1 %v1881_v26, %s975_s10  ;;  %617 = vrot.lane.b32.xlu0 %v1886_v20, %s975_s10  ;;  %2666 = vst [vmem:[#allocation122_spill] sm:$0xff] %v1917_v23  ;;  %v1922_v20 = vld [vmem:[%s2458_s0 + $0x1a8] sm:$0xf] }
  0xe3   :  { %2667 = vst [vmem:[#allocation123_spill] sm:$0xff] %v1922_v20 }
  0xe4   :  { %v1906_v30 = vpop.permute.xlu1 %315  ;;  %v1908_v27 = vpop.permute.xlu0 %313 }
  0xe5   :  { %2664 = vst [vmem:[#allocation120_spill] sm:$0xff] %v1906_v30  ;;  %2665 = vst [vmem:[#allocation121_spill] sm:$0xff] %v1908_v27  ;;  %v1935_v27 = vld [vmem:[%s2458_s0 + $0x1bc] sm:$0xf] }
  0xe6   :  { %623 = vrot.lane.b32.xlu1 %v1899_v22, %s975_s10  ;;  %621 = vrot.lane.b32.xlu0 %v1904_v21, %s975_s10  ;;  %2670 = vst [vmem:[#allocation126_spill] sm:$0xff] %v1935_v27  ;;  %v1940_v21 = vld [vmem:[%s2458_s0 + $0x1b8] sm:$0xf] }
  0xe7   :  { %2671 = vst [vmem:[#allocation127_spill] sm:$0xff] %v1940_v21 }
  0xe8   :  { %v1924_v26 = vpop.permute.xlu1 %319  ;;  %v1926_v30 = vpop.permute.xlu0 %317 }
  0xe9   :  { %2668 = vst [vmem:[#allocation124_spill] sm:$0xff] %v1924_v26  ;;  %2669 = vst [vmem:[#allocation125_spill] sm:$0xff] %v1926_v30  ;;  %v1953_v30 = vld [vmem:[%s2458_s0 + $0x1cc] sm:$0xf] }
  0xea   :  { %627 = vrot.lane.b32.xlu1 %v1917_v23, %s975_s10  ;;  %625 = vrot.lane.b32.xlu0 %v1922_v20, %s975_s10  ;;  %2674 = vst [vmem:[#allocation130_spill] sm:$0xff] %v1953_v30  ;;  %v1958_v20 = vld [vmem:[%s2458_s0 + $0x1c8] sm:$0xf] }
  0xeb   :  { %2675 = vst [vmem:[#allocation131_spill] sm:$0xff] %v1958_v20 }
  0xec   :  { %v1942_v22 = vpop.permute.xlu1 %323  ;;  %v1944_v26 = vpop.permute.xlu0 %321 }
  0xed   :  { %2672 = vst [vmem:[#allocation128_spill] sm:$0xff] %v1942_v22  ;;  %2673 = vst [vmem:[#allocation129_spill] sm:$0xff] %v1944_v26  ;;  %v1971_v26 = vld [vmem:[%s2458_s0 + $0x1dc] sm:$0xf] }
  0xee   :  { %631 = vrot.lane.b32.xlu1 %v1935_v27, %s975_s10  ;;  %629 = vrot.lane.b32.xlu0 %v1940_v21, %s975_s10  ;;  %v1976_v21 = vld [vmem:[%s2458_s0 + $0x1d8] sm:$0xf] }
  0xf0   :  { %v1960_v23 = vpop.permute.xlu1 %327  ;;  %v1962_v22 = vpop.permute.xlu0 %325 }
  0xf1   :  { %2676 = vst [vmem:[#allocation132_spill] sm:$0xff] %v1960_v23  ;;  %2677 = vst [vmem:[#allocation133_spill] sm:$0xff] %v1962_v22  ;;  %v393_v22 = vmax.bf16 %v1404_v61, %v994_v1  ;;  %v1991_v1 = vld [vmem:[%s2458_s0 + $0x1ec] sm:$0xf]  ;;  %v396_v61 = vmax.bf16 %v1420_v57, %v1003_v2  ;;  %v398_v57 = vmax.bf16 %v1438_v55, %v1017_v4 }
  0xf2   :  { %635 = vrot.lane.b32.xlu1 %v1953_v30, %s975_s10  ;;  %633 = vrot.lane.b32.xlu0 %v1958_v20, %s975_s10  ;;  %v394_v30 = vmax.bf16 %v1422_v56, %v1008_v3  ;;  %v1996_v3 = vld [vmem:[%s2458_s0 + $0x1e8] sm:$0xf]  ;;  %v395_v56 = vmax.bf16 %v1402_v60, %v989_v0 }
  0xf4   :  { %v524_v27 = vpop.permute.xlu1 %523  ;;  %v522_v23 = vpop.permute.xlu0 %521 }
  0xf5   :  { %v714_v20 = vmax.bf16 %v1449_v63, %v524_v27  ;;  %v713_v19 = vmax.bf16 %v1454_v62, %v522_v23  ;;  %v400_v62 = vmax.bf16 %v1456_v53, %v1031_v6  ;;  %v399_v63 = vmax.bf16 %v1458_v52, %v1036_v7 }
  0xf6   :  { %639 = vrot.lane.b32.xlu1 %v1971_v26, %s975_s10  ;;  %637 = vrot.lane.b32.xlu0 %v1976_v21, %s975_s10  ;;  %v402_v7 = vmax.bf16 %v1474_v51, %v1045_v8  ;;  %v401_v52 = vmax.bf16 %v1476_v50, %v1050_v9  ;;  %v404_v9 = vmax.bf16 %v1492_v47, %v1059_v10 }
  0xf7   :  { %v778_v31 = vmax.bf16 %v714_v20, %v394_v30  ;;  %v777_v18 = vmax.bf16 %v713_v19, %v393_v22  ;;  %v2019_v22 = vld [vmem:[%s2458_s0 + $0x1fc] sm:$0xf]  ;;  %v403_v50 = vmax.bf16 %v1494_v46, %v1064_v11  ;;  %v406_v11 = vmax.bf16 %v1510_v43, %v1073_v12 }
  0xf8   :  { %v528_v23 = vpop.permute.xlu1 %527  ;;  %v526_v27 = vpop.permute.xlu0 %525  ;;  %v405_v46 = vmax.bf16 %v1512_v42, %v1078_v13  ;;  %v408_v13 = vmax.bf16 %v1528_v39, %v1087_v14  ;;  %v407_v42 = vmax.bf16 %v1530_v38, %v1092_v15  ;;  %v410_v15 = vmax.bf16 %v1546_v35, %v1101_v16 }
  0xf9   :  { %843 = vst.msk [vmem:[%s2459_s1 + $0x4] sm:$0xf] %vm841_vm0, %v778_v31  ;;  %842 = vst.msk [vmem:[%s2459_s1] sm:$0xf] %vm841_vm0, %v777_v18  ;;  %v716_v19 = vmax.bf16 %v1467_v58, %v528_v23  ;;  %v715_v20 = vmax.bf16 %v1472_v59, %v526_v27  ;;  %v2024_v18 = vld [vmem:[%s2458_s0 + $0x1f8] sm:$0xf]  ;;  %v397_v58 = vmax.bf16 %v1440_v54, %v1022_v5 }
  0xfa   :  { %643 = vrot.lane.b32.xlu1 %v1991_v1, %s975_s10  ;;  %641 = vrot.lane.b32.xlu0 %v1996_v3, %s975_s10  ;;  %v409_v38 = vmax.bf16 %v1548_v34, %v1106_v17  ;;  %v2679_v17 = vld [vmem:[#allocation48_spill] sm:$0xff] }
  0xfb   :  { %v780_v0 = vmax.bf16 %v716_v19, %v396_v61  ;;  %v779_v2 = vmax.bf16 %v715_v20, %v395_v56 }
  0xfc   :  { %v532_v30 = vpop.permute.xlu1 %531  ;;  %v530_v31 = vpop.permute.xlu0 %529 }
  0xfd   :  { %845 = vst.msk [vmem:[%s2459_s1 + $0xc] sm:$0xf] %vm841_vm0, %v780_v0  ;;  %844 = vst.msk [vmem:[%s2459_s1 + $0x8] sm:$0xf] %vm841_vm0, %v779_v2  ;;  %v718_v59 = vmax.bf16 %v1485_v49, %v532_v30  ;;  %v717_v60 = vmax.bf16 %v1490_v48, %v530_v31 }
  0xfe   :  { %647 = vrot.lane.b32.xlu1 %v2019_v22, %s975_s10  ;;  %645 = vrot.lane.b32.xlu0 %v2024_v18, %s975_s10 }
  0xff   :  { %v782_v4 = vmax.bf16 %v718_v59, %v398_v57  ;;  %v781_v5 = vmax.bf16 %v717_v60, %v397_v58  ;;  %v2678_v59 = vld [vmem:[#allocation2_spill] sm:$0xff]  ;;  %v2680_v60 = vld [vmem:[#allocation3_spill] sm:$0xff] }
 0x100   :  { %v536_v54 = vpop.permute.xlu1 %535  ;;  %v534_v55 = vpop.permute.xlu0 %533  ;;  %v412_v34 = vmax.bf16 %v2679_v17, %v2678_v59  ;;  %v2704_v17 = vld [vmem:[#allocation11_spill] sm:$0xff] }
 0x101   :  { %847 = vst.msk [vmem:[%s2459_s1 + $0x14] sm:$0xf] %vm841_vm0, %v782_v4  ;;  %846 = vst.msk [vmem:[%s2459_s1 + $0x10] sm:$0xf] %vm841_vm0, %v781_v5  ;;  %v720_v48 = vmax.bf16 %v1503_v45, %v536_v54  ;;  %v719_v49 = vmax.bf16 %v1508_v44, %v534_v55  ;;  %v2681_v4 = vld [vmem:[#allocation49_spill] sm:$0xff]  ;;  %v2683_v54 = vld [vmem:[#allocation55_spill] sm:$0xff] }
 0x102   :  { %v411_v5 = vmax.bf16 %v2681_v4, %v2680_v60  ;;  %v2706_v4 = vld [vmem:[#allocation70_spill] sm:$0xff] }
 0x103   :  { %v784_v23 = vmax.bf16 %v720_v48, %v400_v62  ;;  %v783_v27 = vmax.bf16 %v719_v49, %v399_v63 }
 0x104   :  { %v540_v6 = vpop.permute.xlu1 %539  ;;  %v538_v53 = vpop.permute.xlu0 %537 }
 0x105   :  { %849 = vst.msk [vmem:[%s2459_s1 + $0x1c] sm:$0xf] %vm841_vm0, %v784_v23  ;;  %848 = vst.msk [vmem:[%s2459_s1 + $0x18] sm:$0xf] %vm841_vm0, %v783_v27  ;;  %v722_v44 = vmax.bf16 %v1521_v41, %v540_v6  ;;  %v721_v45 = vmax.bf16 %v1526_v40, %v538_v53  ;;  %v2684_v23 = vld [vmem:[#allocation4_spill] sm:$0xff]  ;;  %v2685_v27 = vld [vmem:[#allocation50_spill] sm:$0xff] }
 0x106   :  { %v414_v6 = vmax.bf16 %v2685_v27, %v2684_v23  ;;  %v2686_v53 = vld [vmem:[#allocation5_spill] sm:$0xff] }
 0x107   :  { %v786_v56 = vmax.bf16 %v722_v44, %v402_v7  ;;  %v785_v61 = vmax.bf16 %v721_v45, %v401_v52  ;;  %v2687_v7 = vld [vmem:[#allocation51_spill] sm:$0xff]  ;;  %v2688_v44 = vld [vmem:[#allocation58_spill] sm:$0xff]  ;;  %v2710_v27 = vld [vmem:[#allocation13_spill] sm:$0xff] }
 0x108   :  { %v544_v8 = vpop.permute.xlu1 %543  ;;  %v542_v51 = vpop.permute.xlu0 %541  ;;  %v413_v52 = vmax.bf16 %v2687_v7, %v2686_v53  ;;  %v2712_v7 = vld [vmem:[#allocation74_spill] sm:$0xff] }
 0x109   :  { %851 = vst.msk [vmem:[%s2459_s1 + $0x24] sm:$0xf] %vm841_vm0, %v786_v56  ;;  %850 = vst.msk [vmem:[%s2459_s1 + $0x20] sm:$0xf] %vm841_vm0, %v785_v61  ;;  %v724_v40 = vmax.bf16 %v1539_v37, %v544_v8  ;;  %v723_v41 = vmax.bf16 %v1544_v36, %v542_v51  ;;  %v2689_v56 = vld [vmem:[#allocation59_spill] sm:$0xff] }
 0x10b   :  { %v788_v19 = vmax.bf16 %v724_v40, %v404_v9  ;;  %v787_v20 = vmax.bf16 %v723_v41, %v403_v50  ;;  %v2690_v40 = vld [vmem:[#allocation6_spill] sm:$0xff]  ;;  %v2691_v41 = vld [vmem:[#allocation52_spill] sm:$0xff] }
 0x10c   :  { %v548_v10 = vpop.permute.xlu1 %547  ;;  %v546_v47 = vpop.permute.xlu0 %545 }
 0x10d   :  { %853 = vst.msk [vmem:[%s2459_s1 + $0x2c] sm:$0xf] %vm841_vm0, %v788_v19  ;;  %852 = vst.msk [vmem:[%s2459_s1 + $0x28] sm:$0xf] %vm841_vm0, %v787_v20  ;;  %v726_v36 = vmax.bf16 %v1557_v33, %v548_v10  ;;  %v725_v37 = vmax.bf16 %v1562_v32, %v546_v47  ;;  %v416_v19 = vmax.bf16 %v2691_v41, %v2690_v40  ;;  %v2692_v20 = vld [vmem:[#allocation7_spill] sm:$0xff]  ;;  %v2693_v10 = vld [vmem:[#allocation53_spill] sm:$0xff] }
 0x10e   :  { %v415_v47 = vmax.bf16 %v2693_v10, %v2692_v20  ;;  %v2716_v41 = vld [vmem:[#allocation15_spill] sm:$0xff]  ;;  %v2718_v10 = vld [vmem:[#allocation78_spill] sm:$0xff] }
 0x10f   :  { %v790_v0 = vmax.bf16 %v726_v36, %v406_v11  ;;  %v789_v2 = vmax.bf16 %v725_v37, %v405_v46  ;;  %v2694_v11 = vld [vmem:[#allocation62_spill] sm:$0xff]  ;;  %v2695_v36 = vld [vmem:[#allocation63_spill] sm:$0xff] }
 0x110   :  { %v552_v12 = vpop.permute.xlu1 %551  ;;  %v550_v43 = vpop.permute.xlu0 %549 }
 0x111   :  { %855 = vst.msk [vmem:[%s2459_s1 + $0x34] sm:$0xf] %vm841_vm0, %v790_v0  ;;  %854 = vst.msk [vmem:[%s2459_s1 + $0x30] sm:$0xf] %vm841_vm0, %v789_v2  ;;  %v728_v32 = vmax.bf16 %v1575_v29, %v552_v12  ;;  %v727_v33 = vmax.bf16 %v1580_v28, %v550_v43 }
 0x113   :  { %v792_v30 = vmax.bf16 %v728_v32, %v408_v13  ;;  %v791_v31 = vmax.bf16 %v727_v33, %v407_v42  ;;  %v2696_v13 = vld [vmem:[#allocation8_spill] sm:$0xff]  ;;  %v2698_v33 = vld [vmem:[#allocation9_spill] sm:$0xff] }
 0x114   :  { %v556_v14 = vpop.permute.xlu1 %555  ;;  %v554_v39 = vpop.permute.xlu0 %553  ;;  %v2697_v42 = vld [vmem:[#allocation56_spill] sm:$0xff] }
 0x115   :  { %857 = vst.msk [vmem:[%s2459_s1 + $0x3c] sm:$0xf] %vm841_vm0, %v792_v30  ;;  %856 = vst.msk [vmem:[%s2459_s1 + $0x38] sm:$0xf] %vm841_vm0, %v791_v31  ;;  %v730_v28 = vmax.bf16 %v1593_v25, %v556_v14  ;;  %v729_v29 = vmax.bf16 %v1598_v24, %v554_v39  ;;  %v2682_v24 = vld [vmem:[#allocation54_spill] sm:$0xff]  ;;  %v418_v32 = vmax.bf16 %v2697_v42, %v2696_v13  ;;  %v2699_v30 = vld [vmem:[#allocation57_spill] sm:$0xff] }
 0x116   :  { %v417_v31 = vmax.bf16 %v2699_v30, %v2698_v33  ;;  %v2700_v14 = vld [vmem:[#allocation66_spill] sm:$0xff]  ;;  %v2722_v42 = vld [vmem:[#allocation17_spill] sm:$0xff] }
 0x117   :  { %v794_v57 = vmax.bf16 %v730_v28, %v410_v15  ;;  %v793_v58 = vmax.bf16 %v729_v29, %v409_v38  ;;  %v2701_v15 = vld [vmem:[#allocation67_spill] sm:$0xff]  ;;  %v2724_v30 = vld [vmem:[#allocation82_spill] sm:$0xff] }
 0x118   :  { %v560_v16 = vpop.permute.xlu1 %559  ;;  %v558_v35 = vpop.permute.xlu0 %557 }
 0x119   :  { %859 = vst.msk [vmem:[%s2459_s1 + $0x44] sm:$0xf] %vm841_vm0, %v794_v57  ;;  %858 = vst.msk [vmem:[%s2459_s1 + $0x40] sm:$0xf] %vm841_vm0, %v793_v58  ;;  %v732_v25 = vmax.bf16 %v2682_v24, %v560_v16  ;;  %v731_v55 = vmax.bf16 %v2683_v54, %v558_v35  ;;  %v2702_v16 = vld [vmem:[#allocation10_spill] sm:$0xff]  ;;  %v2703_v35 = vld [vmem:[#allocation60_spill] sm:$0xff] }
 0x11a   :  { %v420_v59 = vmax.bf16 %v2703_v35, %v2702_v16  ;;  %v2707_v24 = vld [vmem:[#allocation71_spill] sm:$0xff] }
 0x11b   :  { %v796_v62 = vmax.bf16 %v732_v25, %v412_v34  ;;  %v795_v63 = vmax.bf16 %v731_v55, %v411_v5  ;;  %v2705_v34 = vld [vmem:[#allocation61_spill] sm:$0xff]  ;;  %v2728_v35 = vld [vmem:[#allocation19_spill] sm:$0xff] }
 0x11c   :  { %v564_v48 = vpop.permute.xlu1 %563  ;;  %v562_v49 = vpop.permute.xlu0 %561  ;;  %v419_v60 = vmax.bf16 %v2705_v34, %v2704_v17  ;;  %v2730_v34 = vld [vmem:[#allocation86_spill] sm:$0xff] }
 0x11d   :  { %861 = vst.msk [vmem:[%s2459_s1 + $0x4c] sm:$0xf] %vm841_vm0, %v796_v62  ;;  %860 = vst.msk [vmem:[%s2459_s1 + $0x48] sm:$0xf] %vm841_vm0, %v795_v63  ;;  %v734_v45 = vmax.bf16 %v2688_v44, %v564_v48  ;;  %v733_v61 = vmax.bf16 %v2689_v56, %v562_v49  ;;  %v2708_v48 = vld [vmem:[#allocation12_spill] sm:$0xff]  ;;  %v2713_v44 = vld [vmem:[#allocation75_spill] sm:$0xff] }
 0x11e   :  { %v2709_v49 = vld [vmem:[#allocation64_spill] sm:$0xff] }
 0x11f   :  { %v798_v8 = vmax.bf16 %v734_v45, %v414_v6  ;;  %v797_v51 = vmax.bf16 %v733_v61, %v413_v52  ;;  %v422_v23 = vmax.bf16 %v2709_v49, %v2708_v48  ;;  %v2711_v6 = vld [vmem:[#allocation65_spill] sm:$0xff] }
 0x120   :  { %v568_v9 = vpop.permute.xlu1 %567  ;;  %v566_v50 = vpop.permute.xlu0 %565  ;;  %v421_v53 = vmax.bf16 %v2711_v6, %v2710_v27  ;;  %v2734_v49 = vld [vmem:[#allocation21_spill] sm:$0xff]  ;;  %v2736_v6 = vld [vmem:[#allocation90_spill] sm:$0xff] }
 0x121   :  { %863 = vst.msk [vmem:[%s2459_s1 + $0x54] sm:$0xf] %vm841_vm0, %v798_v8  ;;  %862 = vst.msk [vmem:[%s2459_s1 + $0x50] sm:$0xf] %vm841_vm0, %v797_v51  ;;  %v736_v46 = vmax.bf16 %v2694_v11, %v568_v9  ;;  %v735_v37 = vmax.bf16 %v2695_v36, %v566_v50  ;;  %v2714_v9 = vld [vmem:[#allocation14_spill] sm:$0xff]  ;;  %v2715_v50 = vld [vmem:[#allocation68_spill] sm:$0xff] }
 0x122   :  { %v424_v40 = vmax.bf16 %v2715_v50, %v2714_v9  ;;  %v2719_v11 = vld [vmem:[#allocation79_spill] sm:$0xff] }
 0x123   :  { %v800_v0 = vmax.bf16 %v736_v46, %v416_v19  ;;  %v799_v2 = vmax.bf16 %v735_v37, %v415_v47  ;;  %v2717_v19 = vld [vmem:[#allocation69_spill] sm:$0xff]  ;;  %v2740_v50 = vld [vmem:[#allocation23_spill] sm:$0xff] }
 0x124   :  { %v572_v12 = vpop.permute.xlu1 %571  ;;  %v570_v43 = vpop.permute.xlu0 %569  ;;  %v423_v20 = vmax.bf16 %v2717_v19, %v2716_v41  ;;  %v2742_v19 = vld [vmem:[#allocation94_spill] sm:$0xff] }
 0x125   :  { %865 = vst.msk [vmem:[%s2459_s1 + $0x5c] sm:$0xf] %vm841_vm0, %v800_v0  ;;  %864 = vst.msk [vmem:[%s2459_s1 + $0x58] sm:$0xf] %vm841_vm0, %v799_v2  ;;  %v738_v39 = vmax.bf16 %v2700_v14, %v572_v12  ;;  %v737_v38 = vmax.bf16 %v2701_v15, %v570_v43  ;;  %v2720_v12 = vld [vmem:[#allocation16_spill] sm:$0xff]  ;;  %v2725_v14 = vld [vmem:[#allocation83_spill] sm:$0xff] }
 0x126   :  { %v2721_v43 = vld [vmem:[#allocation72_spill] sm:$0xff] }
 0x127   :  { %v802_v28 = vmax.bf16 %v738_v39, %v418_v32  ;;  %v801_v29 = vmax.bf16 %v737_v38, %v417_v31  ;;  %v426_v13 = vmax.bf16 %v2721_v43, %v2720_v12  ;;  %v2723_v32 = vld [vmem:[#allocation73_spill] sm:$0xff] }
 0x128   :  { %v576_v57 = vpop.permute.xlu1 %575  ;;  %v574_v58 = vpop.permute.xlu0 %573  ;;  %v425_v33 = vmax.bf16 %v2723_v32, %v2722_v42  ;;  %v2746_v43 = vld [vmem:[#allocation25_spill] sm:$0xff]  ;;  %v2748_v32 = vld [vmem:[#allocation98_spill] sm:$0xff] }
 0x129   :  { %867 = vst.msk [vmem:[%s2459_s1 + $0x64] sm:$0xf] %vm841_vm0, %v802_v28  ;;  %866 = vst.msk [vmem:[%s2459_s1 + $0x60] sm:$0xf] %vm841_vm0, %v801_v29  ;;  %v740_v5 = vmax.bf16 %v2706_v4, %v576_v57  ;;  %v739_v25 = vmax.bf16 %v2707_v24, %v574_v58  ;;  %v2726_v57 = vld [vmem:[#allocation18_spill] sm:$0xff]  ;;  %v2727_v58 = vld [vmem:[#allocation76_spill] sm:$0xff] }
 0x12a   :  { %v428_v16 = vmax.bf16 %v2727_v58, %v2726_v57  ;;  %v2731_v4 = vld [vmem:[#allocation87_spill] sm:$0xff] }
 0x12b   :  { %v804_v54 = vmax.bf16 %v740_v5, %v420_v59  ;;  %v803_v55 = vmax.bf16 %v739_v25, %v419_v60  ;;  %v2729_v59 = vld [vmem:[#allocation77_spill] sm:$0xff]  ;;  %v2752_v58 = vld [vmem:[#allocation27_spill] sm:$0xff] }
 0x12c   :  { %v580_v62 = vpop.permute.xlu1 %579  ;;  %v578_v63 = vpop.permute.xlu0 %577  ;;  %v427_v17 = vmax.bf16 %v2729_v59, %v2728_v35  ;;  %v2754_v59 = vld [vmem:[#allocation102_spill] sm:$0xff] }
 0x12d   :  { %869 = vst.msk [vmem:[%s2459_s1 + $0x6c] sm:$0xf] %vm841_vm0, %v804_v54  ;;  %868 = vst.msk [vmem:[%s2459_s1 + $0x68] sm:$0xf] %vm841_vm0, %v803_v55  ;;  %v742_v52 = vmax.bf16 %v2712_v7, %v580_v62  ;;  %v741_v45 = vmax.bf16 %v2713_v44, %v578_v63  ;;  %v2732_v62 = vld [vmem:[#allocation20_spill] sm:$0xff]  ;;  %v2737_v7 = vld [vmem:[#allocation91_spill] sm:$0xff] }
 0x12e   :  { %v2733_v63 = vld [vmem:[#allocation80_spill] sm:$0xff] }
 0x12f   :  { %v806_v56 = vmax.bf16 %v742_v52, %v422_v23  ;;  %v805_v61 = vmax.bf16 %v741_v45, %v421_v53  ;;  %v430_v48 = vmax.bf16 %v2733_v63, %v2732_v62  ;;  %v2735_v23 = vld [vmem:[#allocation81_spill] sm:$0xff] }
 0x130   :  { %v584_v8 = vpop.permute.xlu1 %583  ;;  %v582_v51 = vpop.permute.xlu0 %581  ;;  %v429_v27 = vmax.bf16 %v2735_v23, %v2734_v49  ;;  %v2758_v63 = vld [vmem:[#allocation29_spill] sm:$0xff]  ;;  %v2760_v23 = vld [vmem:[#allocation106_spill] sm:$0xff] }
 0x131   :  { %871 = vst.msk [vmem:[%s2459_s1 + $0x74] sm:$0xf] %vm841_vm0, %v806_v56  ;;  %870 = vst.msk [vmem:[%s2459_s1 + $0x70] sm:$0xf] %vm841_vm0, %v805_v61  ;;  %v744_v47 = vmax.bf16 %v2718_v10, %v584_v8  ;;  %v743_v46 = vmax.bf16 %v2719_v11, %v582_v51  ;;  %v2738_v8 = vld [vmem:[#allocation22_spill] sm:$0xff]  ;;  %v2739_v51 = vld [vmem:[#allocation84_spill] sm:$0xff] }
 0x132   :  { %v432_v9 = vmax.bf16 %v2739_v51, %v2738_v8  ;;  %v2743_v10 = vld [vmem:[#allocation95_spill] sm:$0xff] }
 0x133   :  { %v808_v36 = vmax.bf16 %v744_v47, %v424_v40  ;;  %v807_v37 = vmax.bf16 %v743_v46, %v423_v20  ;;  %v2741_v40 = vld [vmem:[#allocation85_spill] sm:$0xff]  ;;  %v2764_v51 = vld [vmem:[#allocation31_spill] sm:$0xff] }
 0x134   :  { %v588_v0 = vpop.permute.xlu1 %587  ;;  %v586_v2 = vpop.permute.xlu0 %585  ;;  %v431_v41 = vmax.bf16 %v2741_v40, %v2740_v50  ;;  %v2766_v40 = vld [vmem:[#allocation110_spill] sm:$0xff] }
 0x135   :  { %873 = vst.msk [vmem:[%s2459_s1 + $0x7c] sm:$0xf] %vm841_vm0, %v808_v36  ;;  %872 = vst.msk [vmem:[%s2459_s1 + $0x78] sm:$0xf] %vm841_vm0, %v807_v37  ;;  %v746_v31 = vmax.bf16 %v2724_v30, %v588_v0  ;;  %v745_v39 = vmax.bf16 %v2725_v14, %v586_v2  ;;  %v2744_v0 = vld [vmem:[#allocation24_spill] sm:$0xff]  ;;  %v2749_v30 = vld [vmem:[#allocation99_spill] sm:$0xff] }
 0x136   :  { %v2745_v2 = vld [vmem:[#allocation88_spill] sm:$0xff] }
 0x137   :  { %v810_v15 = vmax.bf16 %v746_v31, %v426_v13  ;;  %v809_v38 = vmax.bf16 %v745_v39, %v425_v33  ;;  %v434_v12 = vmax.bf16 %v2745_v2, %v2744_v0  ;;  %v2747_v13 = vld [vmem:[#allocation89_spill] sm:$0xff] }
 0x138   :  { %v592_v28 = vpop.permute.xlu1 %591  ;;  %v590_v29 = vpop.permute.xlu0 %589  ;;  %v433_v42 = vmax.bf16 %v2747_v13, %v2746_v43  ;;  %v2770_v2 = vld [vmem:[#allocation33_spill] sm:$0xff]  ;;  %v2772_v13 = vld [vmem:[#allocation114_spill] sm:$0xff] }
 0x139   :  { %875 = vst.msk [vmem:[%s2459_s1 + $0x84] sm:$0xf] %vm841_vm0, %v810_v15  ;;  %874 = vst.msk [vmem:[%s2459_s1 + $0x80] sm:$0xf] %vm841_vm0, %v809_v38  ;;  %v748_v60 = vmax.bf16 %v2730_v34, %v592_v28  ;;  %v747_v5 = vmax.bf16 %v2731_v4, %v590_v29  ;;  %v2750_v28 = vld [vmem:[#allocation26_spill] sm:$0xff]  ;;  %v2751_v29 = vld [vmem:[#allocation92_spill] sm:$0xff] }
 0x13a   :  { %v436_v57 = vmax.bf16 %v2751_v29, %v2750_v28  ;;  %v2755_v34 = vld [vmem:[#allocation103_spill] sm:$0xff] }
 0x13b   :  { %v812_v24 = vmax.bf16 %v748_v60, %v428_v16  ;;  %v811_v25 = vmax.bf16 %v747_v5, %v427_v17  ;;  %v2753_v16 = vld [vmem:[#allocation93_spill] sm:$0xff]  ;;  %v2776_v29 = vld [vmem:[#allocation35_spill] sm:$0xff] }
 0x13c   :  { %v596_v54 = vpop.permute.xlu1 %595  ;;  %v594_v55 = vpop.permute.xlu0 %593  ;;  %v435_v35 = vmax.bf16 %v2753_v16, %v2752_v58  ;;  %v2778_v16 = vld [vmem:[#allocation118_spill] sm:$0xff] }
 0x13d   :  { %877 = vst.msk [vmem:[%s2459_s1 + $0x8c] sm:$0xf] %vm841_vm0, %v812_v24  ;;  %876 = vst.msk [vmem:[%s2459_s1 + $0x88] sm:$0xf] %vm841_vm0, %v811_v25  ;;  %v750_v53 = vmax.bf16 %v2736_v6, %v596_v54  ;;  %v749_v52 = vmax.bf16 %v2737_v7, %v594_v55  ;;  %v2756_v54 = vld [vmem:[#allocation28_spill] sm:$0xff]  ;;  %v2761_v6 = vld [vmem:[#allocation107_spill] sm:$0xff] }
 0x13e   :  { %v2757_v55 = vld [vmem:[#allocation96_spill] sm:$0xff] }
 0x13f   :  { %v814_v44 = vmax.bf16 %v750_v53, %v430_v48  ;;  %v813_v45 = vmax.bf16 %v749_v52, %v429_v27  ;;  %v438_v62 = vmax.bf16 %v2757_v55, %v2756_v54  ;;  %v2759_v48 = vld [vmem:[#allocation97_spill] sm:$0xff] }
 0x140   :  { %v600_v56 = vpop.permute.xlu1 %599  ;;  %v598_v61 = vpop.permute.xlu0 %597  ;;  %v437_v49 = vmax.bf16 %v2759_v48, %v2758_v63  ;;  %v2782_v55 = vld [vmem:[#allocation37_spill] sm:$0xff]  ;;  %v2784_v48 = vld [vmem:[#allocation122_spill] sm:$0xff] }
 0x141   :  { %879 = vst.msk [vmem:[%s2459_s1 + $0x94] sm:$0xf] %vm841_vm0, %v814_v44  ;;  %878 = vst.msk [vmem:[%s2459_s1 + $0x90] sm:$0xf] %vm841_vm0, %v813_v45  ;;  %v752_v20 = vmax.bf16 %v2742_v19, %v600_v56  ;;  %v751_v47 = vmax.bf16 %v2743_v10, %v598_v61  ;;  %v2762_v56 = vld [vmem:[#allocation30_spill] sm:$0xff]  ;;  %v2763_v61 = vld [vmem:[#allocation100_spill] sm:$0xff] }
 0x142   :  { %v440_v8 = vmax.bf16 %v2763_v61, %v2762_v56  ;;  %v2767_v19 = vld [vmem:[#allocation111_spill] sm:$0xff] }
 0x143   :  { %v816_v11 = vmax.bf16 %v752_v20, %v432_v9  ;;  %v815_v46 = vmax.bf16 %v751_v47, %v431_v41  ;;  %v2765_v9 = vld [vmem:[#allocation101_spill] sm:$0xff]  ;;  %v2788_v61 = vld [vmem:[#allocation39_spill] sm:$0xff] }
 0x144   :  { %v604_v36 = vpop.permute.xlu1 %603  ;;  %v602_v37 = vpop.permute.xlu0 %601  ;;  %v439_v50 = vmax.bf16 %v2765_v9, %v2764_v51  ;;  %v2790_v9 = vld [vmem:[#allocation126_spill] sm:$0xff] }
 0x145   :  { %881 = vst.msk [vmem:[%s2459_s1 + $0x9c] sm:$0xf] %vm841_vm0, %v816_v11  ;;  %880 = vst.msk [vmem:[%s2459_s1 + $0x98] sm:$0xf] %vm841_vm0, %v815_v46  ;;  %v754_v33 = vmax.bf16 %v2748_v32, %v604_v36  ;;  %v753_v31 = vmax.bf16 %v2749_v30, %v602_v37  ;;  %v2768_v36 = vld [vmem:[#allocation32_spill] sm:$0xff]  ;;  %v2773_v32 = vld [vmem:[#allocation115_spill] sm:$0xff] }
 0x146   :  { %v2769_v37 = vld [vmem:[#allocation104_spill] sm:$0xff] }
 0x147   :  { %v818_v14 = vmax.bf16 %v754_v33, %v434_v12  ;;  %v817_v39 = vmax.bf16 %v753_v31, %v433_v42  ;;  %v442_v0 = vmax.bf16 %v2769_v37, %v2768_v36  ;;  %v2771_v12 = vld [vmem:[#allocation105_spill] sm:$0xff] }
 0x148   :  { %v608_v15 = vpop.permute.xlu1 %607  ;;  %v606_v38 = vpop.permute.xlu0 %605  ;;  %v441_v43 = vmax.bf16 %v2771_v12, %v2770_v2  ;;  %v2794_v37 = vld [vmem:[#allocation41_spill] sm:$0xff]  ;;  %v2796_v12 = vld [vmem:[#allocation130_spill] sm:$0xff] }
 0x149   :  { %883 = vst.msk [vmem:[%s2459_s1 + $0xa4] sm:$0xf] %vm841_vm0, %v818_v14  ;;  %882 = vst.msk [vmem:[%s2459_s1 + $0xa0] sm:$0xf] %vm841_vm0, %v817_v39  ;;  %v756_v17 = vmax.bf16 %v2754_v59, %v608_v15  ;;  %v755_v60 = vmax.bf16 %v2755_v34, %v606_v38  ;;  %v2774_v15 = vld [vmem:[#allocation34_spill] sm:$0xff]  ;;  %v2775_v38 = vld [vmem:[#allocation108_spill] sm:$0xff] }
 0x14a   :  { %v444_v28 = vmax.bf16 %v2775_v38, %v2774_v15  ;;  %v2779_v59 = vld [vmem:[#allocation119_spill] sm:$0xff] }
 0x14b   :  { %v820_v4 = vmax.bf16 %v756_v17, %v436_v57  ;;  %v819_v5 = vmax.bf16 %v755_v60, %v435_v35  ;;  %v2777_v57 = vld [vmem:[#allocation109_spill] sm:$0xff]  ;;  %v2800_v38 = vld [vmem:[#allocation43_spill] sm:$0xff] }
 0x14c   :  { %v612_v24 = vpop.permute.xlu1 %611  ;;  %v610_v25 = vpop.permute.xlu0 %609  ;;  %v443_v58 = vmax.bf16 %v2777_v57, %v2776_v29 }
 0x14d   :  { %885 = vst.msk [vmem:[%s2459_s1 + $0xac] sm:$0xf] %vm841_vm0, %v820_v4  ;;  %884 = vst.msk [vmem:[%s2459_s1 + $0xa8] sm:$0xf] %vm841_vm0, %v819_v5  ;;  %v758_v27 = vmax.bf16 %v2760_v23, %v612_v24  ;;  %v757_v53 = vmax.bf16 %v2761_v6, %v610_v25  ;;  %v2780_v24 = vld [vmem:[#allocation36_spill] sm:$0xff]  ;;  %v2785_v23 = vld [vmem:[#allocation123_spill] sm:$0xff] }
 0x14e   :  { %v2781_v25 = vld [vmem:[#allocation112_spill] sm:$0xff] }
 0x14f   :  { %v822_v7 = vmax.bf16 %v758_v27, %v438_v62  ;;  %v821_v52 = vmax.bf16 %v757_v53, %v437_v49  ;;  %v446_v54 = vmax.bf16 %v2781_v25, %v2780_v24  ;;  %v2783_v62 = vld [vmem:[#allocation113_spill] sm:$0xff] }
 0x150   :  { %v616_v44 = vpop.permute.xlu1 %615  ;;  %v614_v45 = vpop.permute.xlu0 %613  ;;  %v445_v63 = vmax.bf16 %v2783_v62, %v2782_v55  ;;  %v2805_v24 = vld [vmem:[#allocation129_spill] sm:$0xff] }
 0x151   :  { %887 = vst.msk [vmem:[%s2459_s1 + $0xb4] sm:$0xf] %vm841_vm0, %v822_v7  ;;  %886 = vst.msk [vmem:[%s2459_s1 + $0xb0] sm:$0xf] %vm841_vm0, %v821_v52  ;;  %v760_v41 = vmax.bf16 %v2766_v40, %v616_v44  ;;  %v759_v20 = vmax.bf16 %v2767_v19, %v614_v45  ;;  %v2786_v44 = vld [vmem:[#allocation38_spill] sm:$0xff]  ;;  %v2787_v45 = vld [vmem:[#allocation116_spill] sm:$0xff] }
 0x152   :  { %v448_v56 = vmax.bf16 %v2787_v45, %v2786_v44  ;;  %v2791_v40 = vld [vmem:[#allocation127_spill] sm:$0xff] }
 0x153   :  { %v824_v10 = vmax.bf16 %v760_v41, %v440_v8  ;;  %v823_v47 = vmax.bf16 %v759_v20, %v439_v50  ;;  %v2789_v8 = vld [vmem:[#allocation117_spill] sm:$0xff] }
 0x154   :  { %v620_v11 = vpop.permute.xlu1 %619  ;;  %v618_v46 = vpop.permute.xlu0 %617  ;;  %v447_v51 = vmax.bf16 %v2789_v8, %v2788_v61 }
 0x155   :  { %889 = vst.msk [vmem:[%s2459_s1 + $0xbc] sm:$0xf] %vm841_vm0, %v824_v10  ;;  %888 = vst.msk [vmem:[%s2459_s1 + $0xb8] sm:$0xf] %vm841_vm0, %v823_v47  ;;  %v762_v42 = vmax.bf16 %v2772_v13, %v620_v11  ;;  %v761_v33 = vmax.bf16 %v2773_v32, %v618_v46  ;;  %v2792_v11 = vld [vmem:[#allocation40_spill] sm:$0xff]  ;;  %v2797_v13 = vld [vmem:[#allocation131_spill] sm:$0xff] }
 0x156   :  { %v2793_v46 = vld [vmem:[#allocation120_spill] sm:$0xff] }
 0x157   :  { %v826_v30 = vmax.bf16 %v762_v42, %v442_v0  ;;  %v825_v31 = vmax.bf16 %v761_v33, %v441_v43  ;;  %v450_v36 = vmax.bf16 %v2793_v46, %v2792_v11  ;;  %v2795_v0 = vld [vmem:[#allocation121_spill] sm:$0xff] }
 0x158   :  { %v624_v14 = vpop.permute.xlu1 %623  ;;  %v622_v39 = vpop.permute.xlu0 %621  ;;  %v449_v2 = vmax.bf16 %v2795_v0, %v2794_v37 }
 0x159   :  { %891 = vst.msk [vmem:[%s2459_s1 + $0xc4] sm:$0xf] %vm841_vm0, %v826_v30  ;;  %890 = vst.msk [vmem:[%s2459_s1 + $0xc0] sm:$0xf] %vm841_vm0, %v825_v31  ;;  %v764_v35 = vmax.bf16 %v2778_v16, %v624_v14  ;;  %v763_v17 = vmax.bf16 %v2779_v59, %v622_v39  ;;  %v2798_v14 = vld [vmem:[#allocation42_spill] sm:$0xff]  ;;  %v2799_v39 = vld [vmem:[#allocation124_spill] sm:$0xff] }
 0x15a   :  { %v452_v15 = vmax.bf16 %v2799_v39, %v2798_v14 }
 0x15b   :  { %v828_v34 = vmax.bf16 %v764_v35, %v444_v28  ;;  %v827_v60 = vmax.bf16 %v763_v17, %v443_v58  ;;  %v2801_v28 = vld [vmem:[#allocation125_spill] sm:$0xff] }
 0x15c   :  { %v628_v4 = vpop.permute.xlu1 %627  ;;  %v626_v5 = vpop.permute.xlu0 %625  ;;  %v451_v29 = vmax.bf16 %v2801_v28, %v2800_v38 }
 0x15d   :  { %893 = vst.msk [vmem:[%s2459_s1 + $0xcc] sm:$0xf] %vm841_vm0, %v828_v34  ;;  %892 = vst.msk [vmem:[%s2459_s1 + $0xc8] sm:$0xf] %vm841_vm0, %v827_v60  ;;  %v766_v49 = vmax.bf16 %v2784_v48, %v628_v4  ;;  %v765_v27 = vmax.bf16 %v2785_v23, %v626_v5  ;;  %v2802_v34 = vld [vmem:[#allocation44_spill] sm:$0xff]  ;;  %v2804_v5 = vld [vmem:[#allocation45_spill] sm:$0xff] }
 0x15e   :  { %v2803_v60 = vld [vmem:[#allocation128_spill] sm:$0xff]  ;;  %v453_v25 = vmax.bf16 %v2805_v24, %v2804_v5  ;;  %v2806_v48 = vld [vmem:[#allocation46_spill] sm:$0xff] }
 0x15f   :  { %v830_v6 = vmax.bf16 %v766_v49, %v446_v54  ;;  %v829_v53 = vmax.bf16 %v765_v27, %v445_v63  ;;  %v454_v4 = vmax.bf16 %v2803_v60, %v2802_v34  ;;  %v2807_v49 = vld [vmem:[#allocation132_spill] sm:$0xff]  ;;  %v2808_v27 = vld [vmem:[#allocation47_spill] sm:$0xff] }
 0x160   :  { %v632_v7 = vpop.permute.xlu1 %631  ;;  %v630_v52 = vpop.permute.xlu0 %629  ;;  %v456_v23 = vmax.bf16 %v2807_v49, %v2806_v48 }
 0x161   :  { %895 = vst.msk [vmem:[%s2459_s1 + $0xd4] sm:$0xf] %vm841_vm0, %v830_v6  ;;  %894 = vst.msk [vmem:[%s2459_s1 + $0xd0] sm:$0xf] %vm841_vm0, %v829_v53  ;;  %v768_v50 = vmax.bf16 %v2790_v9, %v632_v7  ;;  %v767_v41 = vmax.bf16 %v2791_v40, %v630_v52  ;;  %v2809_v6 = vld [vmem:[#allocation133_spill] sm:$0xff] }
 0x162   :  { %v455_v53 = vmax.bf16 %v2809_v6, %v2808_v27 }
 0x163   :  { %v832_v19 = vmax.bf16 %v768_v50, %v448_v56  ;;  %v831_v20 = vmax.bf16 %v767_v41, %v447_v51 }
 0x164   :  { %v636_v10 = vpop.permute.xlu1 %635  ;;  %v634_v47 = vpop.permute.xlu0 %633 }
 0x165   :  { %897 = vst.msk [vmem:[%s2459_s1 + $0xdc] sm:$0xf] %vm841_vm0, %v832_v19  ;;  %896 = vst.msk [vmem:[%s2459_s1 + $0xd8] sm:$0xf] %vm841_vm0, %v831_v20  ;;  %v770_v43 = vmax.bf16 %v2796_v12, %v636_v10  ;;  %v769_v42 = vmax.bf16 %v2797_v13, %v634_v47 }
 0x167   :  { %v834_v32 = vmax.bf16 %v770_v43, %v450_v36  ;;  %v833_v33 = vmax.bf16 %v769_v42, %v449_v2 }
 0x168   :  { %v640_v30 = vpop.permute.xlu1 %639  ;;  %v638_v31 = vpop.permute.xlu0 %637 }
 0x169   :  { %899 = vst.msk [vmem:[%s2459_s1 + $0xe4] sm:$0xf] %vm841_vm0, %v834_v32  ;;  %898 = vst.msk [vmem:[%s2459_s1 + $0xe0] sm:$0xf] %vm841_vm0, %v833_v33  ;;  %v772_v57 = vmax.bf16 %v1971_v26, %v640_v30  ;;  %v771_v58 = vmax.bf16 %v1976_v21, %v638_v31 }
 0x16b   :  { %v836_v16 = vmax.bf16 %v772_v57, %v452_v15  ;;  %v835_v35 = vmax.bf16 %v771_v58, %v451_v29 }
 0x16c   :  { %v644_v59 = vpop.permute.xlu1 %643  ;;  %v642_v17 = vpop.permute.xlu0 %641 }
 0x16d   :  { %901 = vst.msk [vmem:[%s2459_s1 + $0xec] sm:$0xf] %vm841_vm0, %v836_v16  ;;  %900 = vst.msk [vmem:[%s2459_s1 + $0xe8] sm:$0xf] %vm841_vm0, %v835_v35  ;;  %v774_v21 = vmax.bf16 %v1991_v1, %v644_v59  ;;  %v773_v26 = vmax.bf16 %v1996_v3, %v642_v17 }
 0x16f   :  { %v838_v54 = vmax.bf16 %v774_v21, %v454_v4  ;;  %v837_v55 = vmax.bf16 %v773_v26, %v453_v25 }
 0x170   :  { %v648_v62 = vpop.permute.xlu1 %647  ;;  %v646_v63 = vpop.permute.xlu0 %645 }
 0x171   :  { %903 = vst.msk [vmem:[%s2459_s1 + $0xf4] sm:$0xf] %vm841_vm0, %v838_v54  ;;  %902 = vst.msk [vmem:[%s2459_s1 + $0xf0] sm:$0xf] %vm841_vm0, %v837_v55  ;;  %v776_v1 = vmax.bf16 %v2019_v22, %v648_v62  ;;  %v775_v3 = vmax.bf16 %v2024_v18, %v646_v63 }
 0x173   :  { %v840_v7 = vmax.bf16 %v776_v1, %v456_v23  ;;  %v839_v52 = vmax.bf16 %v775_v3, %v455_v53 }
 0x175   :  { %905 = vst.msk [vmem:[%s2459_s1 + $0xfc] sm:$0xf] %vm841_vm0, %v840_v7  ;;  %904 = vst.msk [vmem:[%s2459_s1 + $0xf8] sm:$0xf] %vm841_vm0, %v839_v52 }

// kernel: joint_embedding2_forward.8
= control target key start
LH: loop header
LB: loop body
LE: loop exit
PB: predicated region body
PF: predicated region fallthrough
CT: control target
= control target key end

     0   :  { %s255_s10 = smov 96   ;;  %vm217_vm0 = vcmask 257024   ;;  %s596_s0 = inlined_call_operand.vmem [shape: bf16[16,2,8,64], index: 0, kind: input, shape index: {}]   ;;  %s597_s1 = inlined_call_operand.vmem [shape: bf16[16,8,32], index: 1, kind: output, shape index: {}]  }
   0x1   :  { %v269_v0 = vld [vmem:[%s596_s0 + $0x10] sm:$0xf]  ;;  %v274_v1 = vld [vmem:[%s596_s0] sm:$0xf]  ;;  %v283_v2 = vld [vmem:[%s596_s0 + $0x18] sm:$0xf] }
   0x2   :  { %61 = vrot.lane.b32.xlu1 %v269_v0, %s255_s10  ;;  %57 = vrot.lane.b32.xlu0 %v274_v1, %s255_s10  ;;  %v288_v3 = vld [vmem:[%s596_s0 + $0x8] sm:$0xf]  ;;  %v302_v5 = vld [vmem:[%s596_s0 + $0x20] sm:$0xf] }
   0x3   :  { %v297_v4 = vld [vmem:[%s596_s0 + $0x28] sm:$0xf]  ;;  %v311_v6 = vld [vmem:[%s596_s0 + $0x38] sm:$0xf]  ;;  %v316_v7 = vld [vmem:[%s596_s0 + $0x30] sm:$0xf] }
   0x4   :  { %v325_v8 = vld [vmem:[%s596_s0 + $0x48] sm:$0xf]  ;;  %v330_v9 = vld [vmem:[%s596_s0 + $0x40] sm:$0xf]  ;;  %v339_v10 = vld [vmem:[%s596_s0 + $0x58] sm:$0xf] }
   0x5   :  { %v344_v11 = vld [vmem:[%s596_s0 + $0x50] sm:$0xf]  ;;  %v353_v12 = vld [vmem:[%s596_s0 + $0x68] sm:$0xf]  ;;  %v358_v13 = vld [vmem:[%s596_s0 + $0x60] sm:$0xf] }
   0x6   :  { %63 = vrot.lane.b32.xlu1 %v283_v2, %s255_s10  ;;  %59 = vrot.lane.b32.xlu0 %v288_v3, %s255_s10  ;;  %v367_v14 = vld [vmem:[%s596_s0 + $0x78] sm:$0xf]  ;;  %v372_v15 = vld [vmem:[%s596_s0 + $0x70] sm:$0xf] }
   0x7   :  { %v239_v16 = vld [vmem:[%s596_s0 + $0xc] sm:$0xf]  ;;  %v238_v17 = vld [vmem:[%s596_s0 + $0x4] sm:$0xf]  ;;  %v389_v18 = vld [vmem:[%s596_s0 + $0x1c] sm:$0xf] }
   0x8   :  { %v394_v19 = vld [vmem:[%s596_s0 + $0x14] sm:$0xf]  ;;  %v403_v20 = vld [vmem:[%s596_s0 + $0x2c] sm:$0xf]  ;;  %v408_v21 = vld [vmem:[%s596_s0 + $0x24] sm:$0xf] }
   0x9   :  { %v417_v22 = vld [vmem:[%s596_s0 + $0x3c] sm:$0xf]  ;;  %v422_v23 = vld [vmem:[%s596_s0 + $0x34] sm:$0xf]  ;;  %v431_v24 = vld [vmem:[%s596_s0 + $0x4c] sm:$0xf] }
   0xa   :  { %67 = vrot.lane.b32.xlu1 %v297_v4, %s255_s10  ;;  %65 = vrot.lane.b32.xlu0 %v302_v5, %s255_s10  ;;  %v436_v25 = vld [vmem:[%s596_s0 + $0x44] sm:$0xf]  ;;  %v445_v26 = vld [vmem:[%s596_s0 + $0x5c] sm:$0xf] }
   0xb   :  { %v450_v27 = vld [vmem:[%s596_s0 + $0x54] sm:$0xf]  ;;  %v459_v28 = vld [vmem:[%s596_s0 + $0x6c] sm:$0xf]  ;;  %v464_v29 = vld [vmem:[%s596_s0 + $0x64] sm:$0xf] }
   0xc   :  { %v473_v30 = vld [vmem:[%s596_s0 + $0x7c] sm:$0xf]  ;;  %v478_v31 = vld [vmem:[%s596_s0 + $0x74] sm:$0xf] }
   0xe   :  { %71 = vrot.lane.b32.xlu1 %v311_v6, %s255_s10  ;;  %69 = vrot.lane.b32.xlu0 %v316_v7, %s255_s10 }
  0x12   :  { %75 = vrot.lane.b32.xlu1 %v325_v8, %s255_s10  ;;  %73 = vrot.lane.b32.xlu0 %v330_v9, %s255_s10 }
  0x16   :  { %79 = vrot.lane.b32.xlu1 %v339_v10, %s255_s10  ;;  %77 = vrot.lane.b32.xlu0 %v344_v11, %s255_s10 }
  0x1a   :  { %83 = vrot.lane.b32.xlu1 %v353_v12, %s255_s10  ;;  %81 = vrot.lane.b32.xlu0 %v358_v13, %s255_s10 }
  0x1e   :  { %87 = vrot.lane.b32.xlu1 %v367_v14, %s255_s10  ;;  %85 = vrot.lane.b32.xlu0 %v372_v15, %s255_s10 }
  0x22   :  { %139 = vrot.lane.b32.xlu1 %v239_v16, %s255_s10  ;;  %137 = vrot.lane.b32.xlu0 %v238_v17, %s255_s10 }
  0x26   :  { %143 = vrot.lane.b32.xlu1 %v389_v18, %s255_s10  ;;  %141 = vrot.lane.b32.xlu0 %v394_v19, %s255_s10 }
  0x2a   :  { %147 = vrot.lane.b32.xlu1 %v403_v20, %s255_s10  ;;  %145 = vrot.lane.b32.xlu0 %v408_v21, %s255_s10 }
  0x2e   :  { %151 = vrot.lane.b32.xlu1 %v417_v22, %s255_s10  ;;  %149 = vrot.lane.b32.xlu0 %v422_v23, %s255_s10 }
  0x32   :  { %155 = vrot.lane.b32.xlu1 %v431_v24, %s255_s10  ;;  %153 = vrot.lane.b32.xlu0 %v436_v25, %s255_s10 }
  0x36   :  { %159 = vrot.lane.b32.xlu1 %v445_v26, %s255_s10  ;;  %157 = vrot.lane.b32.xlu0 %v450_v27, %s255_s10 }
  0x3a   :  { %163 = vrot.lane.b32.xlu1 %v459_v28, %s255_s10  ;;  %161 = vrot.lane.b32.xlu0 %v464_v29, %s255_s10 }
  0x3e   :  { %167 = vrot.lane.b32.xlu1 %v473_v30, %s255_s10  ;;  %165 = vrot.lane.b32.xlu0 %v478_v31, %s255_s10 }
  0x74   :  { %v62_v32 = vpop.permute.xlu1 %61  ;;  %v58_v33 = vpop.permute.xlu0 %57 }
  0x75   :  { %v105_v50 = vmax.bf16 %v58_v33, %v274_v1  ;;  %v107_v58 = vmax.bf16 %v62_v32, %v269_v0 }
  0x78   :  { %v64_v34 = vpop.permute.xlu1 %63  ;;  %v60_v35 = vpop.permute.xlu0 %59 }
  0x79   :  { %v106_v51 = vmax.bf16 %v60_v35, %v288_v3  ;;  %v108_v59 = vmax.bf16 %v64_v34, %v283_v2 }
  0x7c   :  { %v68_v36 = vpop.permute.xlu1 %67  ;;  %v66_v37 = vpop.permute.xlu0 %65 }
  0x7d   :  { %v110_v2 = vmax.bf16 %v68_v36, %v297_v4  ;;  %v109_v3 = vmax.bf16 %v66_v37, %v302_v5 }
  0x80   :  { %v72_v38 = vpop.permute.xlu1 %71  ;;  %v70_v39 = vpop.permute.xlu0 %69 }
  0x81   :  { %v112_v5 = vmax.bf16 %v72_v38, %v311_v6  ;;  %v111_v33 = vmax.bf16 %v70_v39, %v316_v7 }
  0x84   :  { %v76_v40 = vpop.permute.xlu1 %75  ;;  %v74_v41 = vpop.permute.xlu0 %73 }
  0x85   :  { %v114_v7 = vmax.bf16 %v76_v40, %v325_v8  ;;  %v113_v37 = vmax.bf16 %v74_v41, %v330_v9 }
  0x88   :  { %v484_v42 = vpop.permute.xlu1 %79  ;;  %v486_v43 = vpop.permute.xlu0 %77 }
  0x89   :  { %v116_v9 = vmax.bf16 %v484_v42, %v339_v10  ;;  %v115_v40 = vmax.bf16 %v486_v43, %v344_v11 }
  0x8c   :  { %v488_v44 = vpop.permute.xlu1 %83  ;;  %v490_v45 = vpop.permute.xlu0 %81 }
  0x8d   :  { %v118_v11 = vmax.bf16 %v488_v44, %v353_v12  ;;  %v117_v43 = vmax.bf16 %v490_v45, %v358_v13 }
  0x90   :  { %v492_v46 = vpop.permute.xlu1 %87  ;;  %v494_v47 = vpop.permute.xlu0 %85 }
  0x91   :  { %v120_v13 = vmax.bf16 %v492_v46, %v367_v14  ;;  %v119_v45 = vmax.bf16 %v494_v47, %v372_v15 }
  0x94   :  { %v140_v48 = vpop.permute.xlu1 %139  ;;  %v138_v49 = vpop.permute.xlu0 %137 }
  0x95   :  { %v186_v52 = vmax.bf16 %v239_v16, %v140_v48  ;;  %v185_v53 = vmax.bf16 %v238_v17, %v138_v49 }
  0x97   :  { %v202_v54 = vmax.bf16 %v186_v52, %v106_v51  ;;  %v201_v55 = vmax.bf16 %v185_v53, %v105_v50 }
  0x98   :  { %v144_v56 = vpop.permute.xlu1 %143  ;;  %v142_v57 = vpop.permute.xlu0 %141 }
  0x99   :  { %219 = vst.msk [vmem:[%s597_s1 + $0x4] sm:$0xf] %vm217_vm0, %v202_v54  ;;  %218 = vst.msk [vmem:[%s597_s1] sm:$0xf] %vm217_vm0, %v201_v55  ;;  %v188_v60 = vmax.bf16 %v389_v18, %v144_v56  ;;  %v187_v61 = vmax.bf16 %v394_v19, %v142_v57 }
  0x9b   :  { %v204_v62 = vmax.bf16 %v188_v60, %v108_v59  ;;  %v203_v63 = vmax.bf16 %v187_v61, %v107_v58 }
  0x9c   :  { %v148_v1 = vpop.permute.xlu1 %147  ;;  %v146_v0 = vpop.permute.xlu0 %145 }
  0x9d   :  { %221 = vst.msk [vmem:[%s597_s1 + $0xc] sm:$0xf] %vm217_vm0, %v204_v62  ;;  %220 = vst.msk [vmem:[%s597_s1 + $0x8] sm:$0xf] %vm217_vm0, %v203_v63  ;;  %v190_v16 = vmax.bf16 %v403_v20, %v148_v1  ;;  %v189_v17 = vmax.bf16 %v408_v21, %v146_v0 }
  0x9f   :  { %v206_v18 = vmax.bf16 %v190_v16, %v110_v2  ;;  %v205_v19 = vmax.bf16 %v189_v17, %v109_v3 }
  0xa0   :  { %v152_v32 = vpop.permute.xlu1 %151  ;;  %v150_v4 = vpop.permute.xlu0 %149 }
  0xa1   :  { %223 = vst.msk [vmem:[%s597_s1 + $0x14] sm:$0xf] %vm217_vm0, %v206_v18  ;;  %222 = vst.msk [vmem:[%s597_s1 + $0x10] sm:$0xf] %vm217_vm0, %v205_v19  ;;  %v192_v20 = vmax.bf16 %v417_v22, %v152_v32  ;;  %v191_v21 = vmax.bf16 %v422_v23, %v150_v4 }
  0xa3   :  { %v208_v34 = vmax.bf16 %v192_v20, %v112_v5  ;;  %v207_v35 = vmax.bf16 %v191_v21, %v111_v33 }
  0xa4   :  { %v156_v36 = vpop.permute.xlu1 %155  ;;  %v154_v6 = vpop.permute.xlu0 %153 }
  0xa5   :  { %225 = vst.msk [vmem:[%s597_s1 + $0x1c] sm:$0xf] %vm217_vm0, %v208_v34  ;;  %224 = vst.msk [vmem:[%s597_s1 + $0x18] sm:$0xf] %vm217_vm0, %v207_v35  ;;  %v194_v22 = vmax.bf16 %v431_v24, %v156_v36  ;;  %v193_v23 = vmax.bf16 %v436_v25, %v154_v6 }
  0xa7   :  { %v210_v38 = vmax.bf16 %v194_v22, %v114_v7  ;;  %v209_v39 = vmax.bf16 %v193_v23, %v113_v37 }
  0xa8   :  { %v160_v48 = vpop.permute.xlu1 %159  ;;  %v158_v8 = vpop.permute.xlu0 %157 }
  0xa9   :  { %227 = vst.msk [vmem:[%s597_s1 + $0x24] sm:$0xf] %vm217_vm0, %v210_v38  ;;  %226 = vst.msk [vmem:[%s597_s1 + $0x20] sm:$0xf] %vm217_vm0, %v209_v39  ;;  %v196_v24 = vmax.bf16 %v445_v26, %v160_v48  ;;  %v195_v25 = vmax.bf16 %v450_v27, %v158_v8 }
  0xab   :  { %v212_v41 = vmax.bf16 %v196_v24, %v116_v9  ;;  %v211_v49 = vmax.bf16 %v195_v25, %v115_v40 }
  0xac   :  { %v164_v10 = vpop.permute.xlu1 %163  ;;  %v162_v42 = vpop.permute.xlu0 %161 }
  0xad   :  { %229 = vst.msk [vmem:[%s597_s1 + $0x2c] sm:$0xf] %vm217_vm0, %v212_v41  ;;  %228 = vst.msk [vmem:[%s597_s1 + $0x28] sm:$0xf] %vm217_vm0, %v211_v49  ;;  %v198_v26 = vmax.bf16 %v459_v28, %v164_v10  ;;  %v197_v27 = vmax.bf16 %v464_v29, %v162_v42 }
  0xaf   :  { %v214_v50 = vmax.bf16 %v198_v26, %v118_v11  ;;  %v213_v51 = vmax.bf16 %v197_v27, %v117_v43 }
  0xb0   :  { %v168_v12 = vpop.permute.xlu1 %167  ;;  %v166_v44 = vpop.permute.xlu0 %165 }
  0xb1   :  { %231 = vst.msk [vmem:[%s597_s1 + $0x34] sm:$0xf] %vm217_vm0, %v214_v50  ;;  %230 = vst.msk [vmem:[%s597_s1 + $0x30] sm:$0xf] %vm217_vm0, %v213_v51  ;;  %v200_v28 = vmax.bf16 %v473_v30, %v168_v12  ;;  %v199_v29 = vmax.bf16 %v478_v31, %v166_v44 }
  0xb3   :  { %v216_v52 = vmax.bf16 %v200_v28, %v120_v13  ;;  %v215_v53 = vmax.bf16 %v199_v29, %v119_v45 }
  0xb5   :  { %233 = vst.msk [vmem:[%s597_s1 + $0x3c] sm:$0xf] %vm217_vm0, %v216_v52  ;;  %232 = vst.msk [vmem:[%s597_s1 + $0x38] sm:$0xf] %vm217_vm0, %v215_v53 }

// kernel: joint_embedding2_forward.7
= control target key start
LH: loop header
LB: loop body
LE: loop exit
PB: predicated region body
PF: predicated region fallthrough
CT: control target
= control target key end

     0   :  { %v2544_v0 = vmov 0   ;;  %vm958_vm0 = vcmask 130048   ;;  %vm1953_vm1 = vcmask 257024   ;;  %s3483_s1 = inlined_call_operand.vmem [shape: bf16[400,32], index: 1, kind: input, shape index: {}]   ;;  %s3484_s0 = inlined_call_operand.vmem [shape: bf16[512,400], index: 0, kind: input, shape index: {}]   ;;  %s3485_s2 = inlined_call_operand.vmem [shape: f32[1,32], index: 2, kind: input, shape index: {}]   ;;  %s3486_s3 = inlined_call_operand.vmem [shape: bf16[512,32], index: 3, kind: output, shape index: {}]  }
   0x1   :  { %1055 = vmatprep.subr.bf16.mxu0 %v2544_v0  ;;  %v2337_v1 = vld [vmem:[%s3483_s1 + $0x38] sm:$0xff]   ;;  %1344 = vmatprep.subr.bf16.mxu1 %v2544_v0  ;;  %v2338_v2 = vld [vmem:[%s3483_s1 + $0x30] sm:$0xff]   ;;  %v2339_v3 = vld [vmem:[%s3483_s1 + $0x28] sm:$0xff]  }
   0x2   :  { %1056 = vmatpush1.bf16.msra.mxu0 %v2337_v1  ;;  %v2344_v4 = vld [vmem:[%s3483_s1 + $0xb8] sm:$0xff]   ;;  %v2346_v5 = vld [vmem:[%s3483_s1 + $0xb0] sm:$0xff]   ;;  %v2340_v6 = vld [vmem:[%s3483_s1 + $0x20] sm:$0xff]  }
   0x3   :  { %1057 = vmatprep.subr.bf16.mxu0 %v2544_v0  ;;  %1345 = vmatpush1.bf16.msra.mxu1 %v2344_v4  ;;  %v2348_v7 = vld [vmem:[%s3483_s1 + $0xa8] sm:$0xff]   ;;  %v2341_v8 = vld [vmem:[%s3483_s1 + $0x18] sm:$0xff]   ;;  %v2350_v9 = vld [vmem:[%s3483_s1 + $0xa0] sm:$0xff]  }
   0x4   :  { %1346 = vmatprep.subr.bf16.mxu1 %v2544_v0  ;;  %v2342_v10 = vld [vmem:[%s3483_s1 + $0x10] sm:$0xff]   ;;  %v2352_v11 = vld [vmem:[%s3483_s1 + $0x98] sm:$0xff]   ;;  %v2343_v12 = vld [vmem:[%s3483_s1 + $0x8] sm:$0xff]  }
   0x5   :  { %v2354_v13 = vld [vmem:[%s3483_s1 + $0x90] sm:$0xff]   ;;  %v2363_v14 = vld [vmem:[%s3484_s0 + $0xc] ss:$16 sps:$4 sm:$0xff]   ;;  %v2345_v15 = vld [vmem:[%s3483_s1] sm:$0xff]  }
   0x6   :  { %1058 = vmatpush1.bf16.msra.mxu0 %v2338_v2  ;;  %2176 = vmatprep.mubr.msk.bf16.mxu1 %vm958_vm0, %v2363_v14  ;;  %v2367_v16 = vld [vmem:[%s3484_s0 + $0x4] ss:$16 sps:$4 sm:$0xff]   ;;  %v2356_v17 = vld [vmem:[%s3483_s1 + $0x88] sm:$0xff]   ;;  %v2347_v18 = vld [vmem:[%s3483_s1 + $0x78] sm:$0xff]  }
   0x7   :  { %1059 = vmatprep.subr.bf16.mxu0 %v2544_v0  ;;  %1347 = vmatpush1.bf16.msra.mxu1 %v2346_v5  ;;  %v2358_v19 = vld [vmem:[%s3483_s1 + $0x80] sm:$0xff]   ;;  %v2349_v20 = vld [vmem:[%s3483_s1 + $0x70] sm:$0xff]   ;;  %v2351_v22 = vld [vmem:[%s3483_s1 + $0x68] sm:$0xff]  }
   0x8   :  { %1348 = vmatprep.subr.bf16.mxu1 %v2544_v0  ;;  %1087 = vmatprep.mubr.bf16.mxu0 %v2367_v16  ;;  %v2360_v21 = vld [vmem:[%s3483_s1 + $0xc0] sm:$0xff]   ;;  %v2361_v23 = vld [vmem:[%s3484_s0 + $0x8] ss:$16 sps:$4 sm:$0xff]   ;;  %v2368_v24 = vld [vmem:[%s3484_s0 + $0x2c] ss:$16 sps:$4 sm:$0xff]  }
   0x9   :  { %v2353_v25 = vld [vmem:[%s3483_s1 + $0x60] sm:$0xff]   ;;  %v2355_v26 = vld [vmem:[%s3483_s1 + $0x58] sm:$0xff]   ;;  %v2357_v29 = vld [vmem:[%s3483_s1 + $0x50] sm:$0xff]  }
   0xa   :  { %1060 = vmatpush1.bf16.msra.mxu0 %v2339_v3  ;;  %v2370_v27 = vld [vmem:[%s3484_s0 + $0x28] ss:$16 sps:$4 sm:$0xff]   ;;  %v2374_v28 = vld [vmem:[%s3484_s0 + $0x4c] ss:$16 sps:$4 sm:$0xff]   ;;  %v2364_v33 = vld [vmem:[%s3483_s1 + $0x40] sm:$0xff]  }
   0xb   :  { %1061 = vmatprep.subr.bf16.mxu0 %v2544_v0  ;;  %1349 = vmatpush1.bf16.msra.mxu1 %v2348_v7  ;;  %v2359_v30 = vld [vmem:[%s3483_s1 + $0x48] sm:$0xff]   ;;  %v2365_v34 = vld [vmem:[%s3484_s0] ss:$16 sps:$4 sm:$0xff]   ;;  %v2371_v35 = vld [vmem:[%s3484_s0 + $0x24] ss:$16 sps:$4 sm:$0xff]  }
   0xc   :  { %1350 = vmatprep.subr.bf16.mxu1 %v2544_v0  ;;  %v2376_v31 = vld [vmem:[%s3484_s0 + $0x48] ss:$16 sps:$4 sm:$0xff]   ;;  %v2380_v32 = vld [vmem:[%s3484_s0 + $0x6c] ss:$16 sps:$4 sm:$0xff]   ;;  %v2373_v38 = vld [vmem:[%s3484_s0 + $0x20] ss:$16 sps:$4 sm:$0xff]  }
   0xd   :  { %v2382_v36 = vld [vmem:[%s3484_s0 + $0x68] ss:$16 sps:$4 sm:$0xff]   ;;  %v2386_v37 = vld [vmem:[%s3484_s0 + $0x8c] ss:$16 sps:$4 sm:$0xff]   ;;  %v2377_v39 = vld [vmem:[%s3484_s0 + $0x44] ss:$16 sps:$4 sm:$0xff]  }
   0xe   :  { %1062 = vmatpush1.bf16.msra.mxu0 %v2340_v6  ;;  %v2388_v40 = vld [vmem:[%s3484_s0 + $0x88] ss:$16 sps:$4 sm:$0xff]   ;;  %v2392_v41 = vld [vmem:[%s3484_s0 + $0xac] ss:$16 sps:$4 sm:$0xff]   ;;  %v2379_v42 = vld [vmem:[%s3484_s0 + $0x40] ss:$16 sps:$4 sm:$0xff]  }
   0xf   :  { %1063 = vmatprep.subr.bf16.mxu0 %v2544_v0  ;;  %1351 = vmatpush1.bf16.msra.mxu1 %v2350_v9  ;;  %v2383_v43 = vld [vmem:[%s3484_s0 + $0x64] ss:$16 sps:$4 sm:$0xff]   ;;  %v2394_v44 = vld [vmem:[%s3484_s0 + $0xa8] ss:$16 sps:$4 sm:$0xff]   ;;  %v2398_v45 = vld [vmem:[%s3484_s0 + $0xcc] ss:$16 sps:$4 sm:$0xff]  }
  0x10   :  { %1352 = vmatprep.subr.bf16.mxu1 %v2544_v0  ;;  %v2385_v46 = vld [vmem:[%s3484_s0 + $0x60] ss:$16 sps:$4 sm:$0xff]   ;;  %v2389_v47 = vld [vmem:[%s3484_s0 + $0x84] ss:$16 sps:$4 sm:$0xff]   ;;  %v2400_v48 = vld [vmem:[%s3484_s0 + $0xc8] ss:$16 sps:$4 sm:$0xff]  }
  0x11   :  { %v2404_v49 = vld [vmem:[%s3484_s0 + $0xec] ss:$16 sps:$4 sm:$0xff]   ;;  %v2391_v50 = vld [vmem:[%s3484_s0 + $0x80] ss:$16 sps:$4 sm:$0xff]   ;;  %v2395_v51 = vld [vmem:[%s3484_s0 + $0xa4] ss:$16 sps:$4 sm:$0xff]  }
  0x12   :  { %1064 = vmatpush1.bf16.msra.mxu0 %v2341_v8  ;;  %v2406_v52 = vld [vmem:[%s3484_s0 + $0xe8] ss:$16 sps:$4 sm:$0xff]   ;;  %v2410_v53 = vld [vmem:[%s3484_s0 + $0x10c] ss:$16 sps:$4 sm:$0xff]   ;;  %v2397_v54 = vld [vmem:[%s3484_s0 + $0xa0] ss:$16 sps:$4 sm:$0xff]  }
  0x13   :  { %1065 = vmatprep.subr.bf16.mxu0 %v2544_v0  ;;  %1353 = vmatpush1.bf16.msra.mxu1 %v2352_v11  ;;  %v2401_v55 = vld [vmem:[%s3484_s0 + $0xc4] ss:$16 sps:$4 sm:$0xff]   ;;  %v2412_v56 = vld [vmem:[%s3484_s0 + $0x108] ss:$16 sps:$4 sm:$0xff]   ;;  %v2416_v57 = vld [vmem:[%s3484_s0 + $0x12c] ss:$16 sps:$4 sm:$0xff]  }
  0x14   :  { %1354 = vmatprep.subr.bf16.mxu1 %v2544_v0  ;;  %v2403_v58 = vld [vmem:[%s3484_s0 + $0xc0] ss:$16 sps:$4 sm:$0xff]   ;;  %v2407_v59 = vld [vmem:[%s3484_s0 + $0xe4] ss:$16 sps:$4 sm:$0xff]   ;;  %v2418_v60 = vld [vmem:[%s3484_s0 + $0x128] ss:$16 sps:$4 sm:$0xff]  }
  0x15   :  { %v2422_v61 = vld [vmem:[%s3484_s0 + $0x14c] ss:$16 sps:$4 sm:$0xff]   ;;  %v2409_v62 = vld [vmem:[%s3484_s0 + $0xe0] ss:$16 sps:$4 sm:$0xff]   ;;  %v2413_v63 = vld [vmem:[%s3484_s0 + $0x104] ss:$16 sps:$4 sm:$0xff]  }
  0x16   :  { %1066 = vmatpush1.bf16.msra.mxu0 %v2342_v10  ;;  %v2428_v1 = vld [vmem:[%s3484_s0 + $0x16c] ss:$16 sps:$4 sm:$0xff]   ;;  %v2415_v2 = vld [vmem:[%s3484_s0 + $0x100] ss:$16 sps:$4 sm:$0xff]   ;;  %v2419_v3 = vld [vmem:[%s3484_s0 + $0x124] ss:$16 sps:$4 sm:$0xff]  }
  0x17   :  { %1067 = vmatprep.subr.bf16.mxu0 %v2544_v0  ;;  %1355 = vmatpush1.bf16.msra.mxu1 %v2354_v13  ;;  %v2430_v4 = vld [vmem:[%s3484_s0 + $0x168] ss:$16 sps:$4 sm:$0xff]   ;;  %v2434_v5 = vld [vmem:[%s3484_s0 + $0x18c] ss:$16 sps:$4 sm:$0xff]   ;;  %v2421_v6 = vld [vmem:[%s3484_s0 + $0x120] ss:$16 sps:$4 sm:$0xff]  }
  0x18   :  { %1356 = vmatprep.subr.bf16.mxu1 %v2544_v0  ;;  %v2425_v7 = vld [vmem:[%s3484_s0 + $0x144] ss:$16 sps:$4 sm:$0xff]   ;;  %v2436_v8 = vld [vmem:[%s3484_s0 + $0x188] ss:$16 sps:$4 sm:$0xff]   ;;  %v2440_v9 = vld [vmem:[%s3484_s0 + $0x1ac] ss:$16 sps:$4 sm:$0xff]  }
  0x19   :  { %v2427_v10 = vld [vmem:[%s3484_s0 + $0x140] ss:$16 sps:$4 sm:$0xff]   ;;  %v2431_v11 = vld [vmem:[%s3484_s0 + $0x164] ss:$16 sps:$4 sm:$0xff]   ;;  %v2446_v13 = vld [vmem:[%s3484_s0 + $0x1cc] ss:$16 sps:$4 sm:$0xff]  }
  0x1a   :  { %1068 = vmatpush1.bf16.msra.mxu0 %v2343_v12  ;;  %v2442_v12 = vld [vmem:[%s3484_s0 + $0x1a8] ss:$16 sps:$4 sm:$0xff]   ;;  %v2433_v14 = vld [vmem:[%s3484_s0 + $0x160] ss:$16 sps:$4 sm:$0xff]  }
  0x1b   :  { %1069 = vmatprep.subr.bf16.mxu0 %v2544_v0  ;;  %1357 = vmatpush1.bf16.msra.mxu1 %v2356_v17  ;;  %v2448_v16 = vld [vmem:[%s3484_s0 + $0x1c8] ss:$16 sps:$4 sm:$0xff]   ;;  %v2452_v17 = vld [vmem:[%s3484_s0 + $0x1ec] ss:$16 sps:$4 sm:$0xff]  }
  0x1c   :  { %1358 = vmatprep.subr.bf16.mxu1 %v2544_v0 }
  0x1e   :  { %1070 = vmatpush1.bf16.msra.mxu0 %v2345_v15  ;;  %v2437_v15 = vld [vmem:[%s3484_s0 + $0x184] ss:$16 sps:$4 sm:$0xff]  }
  0x1f   :  { %1071 = vmatprep.subr.bf16.mxu0 %v2544_v0  ;;  %1359 = vmatpush1.bf16.msra.mxu1 %v2358_v19  ;;  %v2443_v19 = vld [vmem:[%s3484_s0 + $0x1a4] ss:$16 sps:$4 sm:$0xff]  }
  0x20   :  { %1374 = vmatprep.subr.bf16.mxu1 %v2544_v0 }
  0x22   :  { %1072 = vmatpush2.bf16.msra.mxu0 %v2347_v18  ;;  %v2439_v18 = vld [vmem:[%s3484_s0 + $0x180] ss:$16 sps:$4 sm:$0xff]  }
  0x23   :  { %1073 = vmatprep.subr.bf16.mxu0 %v2544_v0  ;;  %1375 = vmatpush2.bf16.msra.mxu1 %v2360_v21  ;;  %v2458_v21 = vld [vmem:[%s3484_s0 + $0x20c] ss:$16 sps:$4 sm:$0xff]  }
  0x26   :  { %1074 = vmatpush2.bf16.msra.mxu0 %v2349_v20  ;;  %1377 = vmatmul.mubr.bf16.vlgmr.msra.gmra.mxu1 %v2361_v23  ;;  %v2454_v20 = vld [vmem:[%s3484_s0 + $0x1e8] ss:$16 sps:$4 sm:$0xff]   ;;  %v2449_v23 = vld [vmem:[%s3484_s0 + $0x1c4] ss:$16 sps:$4 sm:$0xff]  }
  0x27   :  { %1075 = vmatprep.subr.bf16.mxu0 %v2544_v0  ;;  %2177 = vmatprep.mubr.msk.bf16.mxu1 %vm958_vm0, %v2368_v24  ;;  %v2460_v24 = vld [vmem:[%s3484_s0 + $0x208] ss:$16 sps:$4 sm:$0xff]  }
  0x2a   :  { %1076 = vmatpush2.bf16.msra.mxu0 %v2351_v22  ;;  %v2445_v22 = vld [vmem:[%s3484_s0 + $0x1a0] ss:$16 sps:$4 sm:$0xff]  }
  0x2b   :  { %1077 = vmatprep.subr.bf16.mxu0 %v2544_v0 }
  0x2e   :  { %1078 = vmatpush2.bf16.msra.mxu0 %v2353_v25  ;;  %1385 = vmatmul.mubr.bf16.gmra.mxu1 %v2370_v27  ;;  %v2464_v25 = vld [vmem:[%s3484_s0 + $0x22c] ss:$16 sps:$4 sm:$0xff]   ;;  %v2455_v27 = vld [vmem:[%s3484_s0 + $0x1e4] ss:$16 sps:$4 sm:$0xff]  }
  0x2f   :  { %1079 = vmatprep.subr.bf16.mxu0 %v2544_v0  ;;  %2178 = vmatprep.mubr.msk.bf16.mxu1 %vm958_vm0, %v2374_v28  ;;  %v2466_v28 = vld [vmem:[%s3484_s0 + $0x228] ss:$16 sps:$4 sm:$0xff]  }
  0x32   :  { %1080 = vmatpush2.bf16.msra.mxu0 %v2355_v26  ;;  %v2451_v26 = vld [vmem:[%s3484_s0 + $0x1c0] ss:$16 sps:$4 sm:$0xff]  }
  0x33   :  { %1081 = vmatprep.subr.bf16.mxu0 %v2544_v0 }
  0x36   :  { %1082 = vmatpush2.bf16.msra.mxu0 %v2357_v29  ;;  %1393 = vmatmul.mubr.bf16.gmra.mxu1 %v2376_v31  ;;  %v2470_v29 = vld [vmem:[%s3484_s0 + $0x24c] ss:$16 sps:$4 sm:$0xff]   ;;  %v2461_v31 = vld [vmem:[%s3484_s0 + $0x204] ss:$16 sps:$4 sm:$0xff]  }
  0x37   :  { %1083 = vmatprep.subr.bf16.mxu0 %v2544_v0  ;;  %2179 = vmatprep.mubr.msk.bf16.mxu1 %vm958_vm0, %v2380_v32  ;;  %v2472_v32 = vld [vmem:[%s3484_s0 + $0x248] ss:$16 sps:$4 sm:$0xff]  }
  0x3a   :  { %1084 = vmatpush2.bf16.msra.mxu0 %v2359_v30  ;;  %v2457_v30 = vld [vmem:[%s3484_s0 + $0x1e0] ss:$16 sps:$4 sm:$0xff]  }
  0x3b   :  { %1085 = vmatprep.subr.bf16.mxu0 %v2544_v0  ;;  %v2424_v0 = vld [vmem:[%s3484_s0 + $0x148] ss:$16 sps:$4 sm:$0xff]  }
  0x3e   :  { %1086 = vmatpush2.bf16.msra.mxu0 %v2364_v33  ;;  %1401 = vmatmul.mubr.bf16.gmra.mxu1 %v2382_v36  ;;  %v2476_v33 = vld [vmem:[%s3484_s0 + $0x26c] ss:$16 sps:$4 sm:$0xff]   ;;  %v2478_v36 = vld [vmem:[%s3484_s0 + $0x268] ss:$16 sps:$4 sm:$0xff]  }
  0x3f   :  { %2180 = vmatprep.mubr.msk.bf16.mxu1 %vm958_vm0, %v2386_v37  ;;  %v2482_v37 = vld [vmem:[%s3484_s0 + $0x28c] ss:$16 sps:$4 sm:$0xff]  }
  0x41   :  { %1088 = vmatmul.mubr.bf16.vlgmr.msra.gmra.mxu0 %v2365_v34  ;;  %v2463_v34 = vld [vmem:[%s3484_s0 + $0x200] ss:$16 sps:$4 sm:$0xff]  }
  0x42   :  { %1095 = vmatprep.mubr.bf16.mxu0 %v2371_v35  ;;  %v2467_v35 = vld [vmem:[%s3484_s0 + $0x224] ss:$16 sps:$4 sm:$0xff]  }
  0x46   :  { %1409 = vmatmul.mubr.bf16.gmra.mxu1 %v2388_v40  ;;  %v2484_v40 = vld [vmem:[%s3484_s0 + $0x288] ss:$16 sps:$4 sm:$0xff]  }
  0x47   :  { %2181 = vmatprep.mubr.msk.bf16.mxu1 %vm958_vm0, %v2392_v41  ;;  %v2488_v41 = vld [vmem:[%s3484_s0 + $0x2ac] ss:$16 sps:$4 sm:$0xff]  }
  0x49   :  { %1096 = vmatmul.mubr.bf16.gmra.mxu0 %v2373_v38  ;;  %v2469_v38 = vld [vmem:[%s3484_s0 + $0x220] ss:$16 sps:$4 sm:$0xff]  }
  0x4a   :  { %1103 = vmatprep.mubr.bf16.mxu0 %v2377_v39  ;;  %v2473_v39 = vld [vmem:[%s3484_s0 + $0x244] ss:$16 sps:$4 sm:$0xff]  }
  0x4e   :  { %1417 = vmatmul.mubr.bf16.gmra.mxu1 %v2394_v44  ;;  %v2490_v44 = vld [vmem:[%s3484_s0 + $0x2a8] ss:$16 sps:$4 sm:$0xff]  }
  0x4f   :  { %2182 = vmatprep.mubr.msk.bf16.mxu1 %vm958_vm0, %v2398_v45  ;;  %v2494_v45 = vld [vmem:[%s3484_s0 + $0x2cc] ss:$16 sps:$4 sm:$0xff]  }
  0x51   :  { %1104 = vmatmul.mubr.bf16.gmra.mxu0 %v2379_v42  ;;  %v2475_v42 = vld [vmem:[%s3484_s0 + $0x240] ss:$16 sps:$4 sm:$0xff]  }
  0x52   :  { %1111 = vmatprep.mubr.bf16.mxu0 %v2383_v43  ;;  %v2479_v43 = vld [vmem:[%s3484_s0 + $0x264] ss:$16 sps:$4 sm:$0xff]  }
  0x56   :  { %1425 = vmatmul.mubr.bf16.gmra.mxu1 %v2400_v48  ;;  %v2496_v48 = vld [vmem:[%s3484_s0 + $0x2c8] ss:$16 sps:$4 sm:$0xff]  }
  0x57   :  { %2183 = vmatprep.mubr.msk.bf16.mxu1 %vm958_vm0, %v2404_v49  ;;  %v2500_v49 = vld [vmem:[%s3484_s0 + $0x2ec] ss:$16 sps:$4 sm:$0xff]  }
  0x59   :  { %1112 = vmatmul.mubr.bf16.gmra.mxu0 %v2385_v46  ;;  %v2481_v46 = vld [vmem:[%s3484_s0 + $0x260] ss:$16 sps:$4 sm:$0xff]  }
  0x5a   :  { %1119 = vmatprep.mubr.bf16.mxu0 %v2389_v47  ;;  %v2485_v47 = vld [vmem:[%s3484_s0 + $0x284] ss:$16 sps:$4 sm:$0xff]  }
  0x5e   :  { %1433 = vmatmul.mubr.bf16.gmra.mxu1 %v2406_v52  ;;  %v2502_v52 = vld [vmem:[%s3484_s0 + $0x2e8] ss:$16 sps:$4 sm:$0xff]  }
  0x5f   :  { %2184 = vmatprep.mubr.msk.bf16.mxu1 %vm958_vm0, %v2410_v53  ;;  %v2506_v53 = vld [vmem:[%s3484_s0 + $0x30c] ss:$16 sps:$4 sm:$0xff]  }
  0x61   :  { %1120 = vmatmul.mubr.bf16.gmra.mxu0 %v2391_v50  ;;  %v2487_v50 = vld [vmem:[%s3484_s0 + $0x280] ss:$16 sps:$4 sm:$0xff]  }
  0x62   :  { %1127 = vmatprep.mubr.bf16.mxu0 %v2395_v51  ;;  %v2491_v51 = vld [vmem:[%s3484_s0 + $0x2a4] ss:$16 sps:$4 sm:$0xff]  }
  0x66   :  { %1441 = vmatmul.mubr.bf16.gmra.mxu1 %v2412_v56  ;;  %v2508_v56 = vld [vmem:[%s3484_s0 + $0x308] ss:$16 sps:$4 sm:$0xff]  }
  0x67   :  { %2185 = vmatprep.mubr.msk.bf16.mxu1 %vm958_vm0, %v2416_v57  ;;  %v2511_v57 = vld [vmem:[%s3484_s0 + $0x32c] ss:$16 sps:$4 sm:$0xff]  }
  0x69   :  { %1128 = vmatmul.mubr.bf16.gmra.mxu0 %v2397_v54  ;;  %v2493_v54 = vld [vmem:[%s3484_s0 + $0x2a0] ss:$16 sps:$4 sm:$0xff]  }
  0x6a   :  { %1135 = vmatprep.mubr.bf16.mxu0 %v2401_v55  ;;  %v2497_v55 = vld [vmem:[%s3484_s0 + $0x2c4] ss:$16 sps:$4 sm:$0xff]  }
  0x6e   :  { %1449 = vmatmul.mubr.bf16.gmra.mxu1 %v2418_v60  ;;  %v116_v60 = vld [vmem:[%s3484_s0 + $0x328] sm:$0xff] }
  0x6f   :  { %2186 = vmatprep.mubr.msk.bf16.mxu1 %vm958_vm0, %v2422_v61  ;;  %v118_v61 = vld [vmem:[%s3484_s0 + $0x338] sm:$0xff] }
  0x71   :  { %1136 = vmatmul.mubr.bf16.gmra.mxu0 %v2403_v58 }
  0x72   :  { %1143 = vmatprep.mubr.bf16.mxu0 %v2407_v59  ;;  %v2499_v59 = vld [vmem:[%s3484_s0 + $0x2c0] ss:$16 sps:$4 sm:$0xff]  }
  0x76   :  { %1457 = vmatmul.mubr.bf16.gmra.mxu1 %v2424_v0 }
  0x77   :  { %2187 = vmatprep.mubr.msk.bf16.mxu1 %vm958_vm0, %v2428_v1  ;;  %v2125_v1 = vcombine.low %v116_v60, %v118_v61  ;;  %v132_v60 = vld [vmem:[%s3484_s0 + $0x3a8] sm:$0xff]  ;;  %v134_v61 = vld [vmem:[%s3484_s0 + $0x3b8] sm:$0xff] }
  0x79   :  { %1144 = vmatmul.mubr.bf16.gmra.mxu0 %v2409_v62  ;;  %v2503_v62 = vld [vmem:[%s3484_s0 + $0x2e4] ss:$16 sps:$4 sm:$0xff]  }
  0x7a   :  { %1151 = vmatprep.mubr.bf16.mxu0 %v2413_v63 }
  0x7e   :  { %1465 = vmatmul.mubr.bf16.gmra.mxu1 %v2430_v4 }
  0x7f   :  { %2188 = vmatprep.mubr.msk.bf16.mxu1 %vm958_vm0, %v2434_v5  ;;  %v2505_v5 = vld [vmem:[%s3484_s0 + $0x2e0] ss:$16 sps:$4 sm:$0xff]  }
  0x81   :  { %1152 = vmatmul.mubr.bf16.gmra.mxu0 %v2415_v2  ;;  %v2515_v2 = vld [vmem:[%s3484_s0 + $0x34c] ss:$16 sps:$4 sm:$0xff]  }
  0x82   :  { %1159 = vmatprep.mubr.bf16.mxu0 %v2419_v3 }
  0x86   :  { %1473 = vmatmul.mubr.bf16.gmra.mxu1 %v2436_v8  ;;  %v2509_v8 = vld [vmem:[%s3484_s0 + $0x304] ss:$16 sps:$4 sm:$0xff]  }
  0x87   :  { %2189 = vmatprep.mubr.msk.bf16.mxu1 %vm958_vm0, %v2440_v9 }
  0x89   :  { %1160 = vmatmul.mubr.bf16.gmra.mxu0 %v2421_v6  ;;  %v120_v6 = vld [vmem:[%s3484_s0 + $0x348] sm:$0xff] }
  0x8a   :  { %1167 = vmatprep.mubr.bf16.mxu0 %v2425_v7  ;;  %v122_v7 = vld [vmem:[%s3484_s0 + $0x358] sm:$0xff] }
  0x8e   :  { %1481 = vmatmul.mubr.bf16.gmra.mxu1 %v2442_v12  ;;  %v2519_v12 = vld [vmem:[%s3484_s0 + $0x36c] ss:$16 sps:$4 sm:$0xff]  }
  0x8f   :  { %2190 = vmatprep.mubr.msk.bf16.mxu1 %vm958_vm0, %v2446_v13  ;;  %v111_v13 = vld [vmem:[%s3484_s0 + $0x300] sm:$0xff] }
  0x91   :  { %1168 = vmatmul.mubr.bf16.gmra.mxu0 %v2427_v10 }
  0x92   :  { %1175 = vmatprep.mubr.bf16.mxu0 %v2431_v11  ;;  %v2129_v11 = vcombine.low %v120_v6, %v122_v7  ;;  %v2141_v6 = vcombine.low %v132_v60, %v134_v61 }
  0x96   :  { %1489 = vmatmul.mubr.bf16.gmra.mxu1 %v2448_v16 }
  0x97   :  { %2191 = vmatprep.mubr.msk.bf16.mxu1 %vm958_vm0, %v2452_v17 }
  0x99   :  { %1176 = vmatmul.mubr.bf16.gmra.mxu0 %v2433_v14  ;;  %v113_v14 = vld [vmem:[%s3484_s0 + $0x310] sm:$0xff] }
  0x9a   :  { %1183 = vmatprep.mubr.bf16.mxu0 %v2437_v15  ;;  %v2119_v17 = vcombine.low %v111_v13, %v113_v14 }
  0x9e   :  { %1497 = vmatmul.mubr.bf16.gmra.mxu1 %v2454_v20  ;;  %v2513_v20 = vld [vmem:[%s3484_s0 + $0x324] ss:$16 sps:$4 sm:$0xff]  }
  0x9f   :  { %2192 = vmatprep.mubr.msk.bf16.mxu1 %vm958_vm0, %v2458_v21 }
  0xa1   :  { %1184 = vmatmul.mubr.bf16.gmra.mxu0 %v2439_v18  ;;  %v124_v18 = vld [vmem:[%s3484_s0 + $0x368] sm:$0xff] }
  0xa2   :  { %1191 = vmatprep.mubr.bf16.mxu0 %v2443_v19  ;;  %v126_v19 = vld [vmem:[%s3484_s0 + $0x378] sm:$0xff] }
  0xa6   :  { %1505 = vmatmul.mubr.bf16.gmra.mxu1 %v2460_v24  ;;  %v2133_v24 = vcombine.low %v124_v18, %v126_v19 }
  0xa7   :  { %2193 = vmatprep.mubr.msk.bf16.mxu1 %vm958_vm0, %v2464_v25 }
  0xa9   :  { %1192 = vmatmul.mubr.bf16.gmra.mxu0 %v2445_v22  ;;  %v3035_v22 = vld [vmem:[%s3485_s2] ss:$0 sm:$0xff] }
  0xaa   :  { %1199 = vmatprep.mubr.bf16.mxu0 %v2449_v23 }
  0xae   :  { %1513 = vmatmul.mubr.bf16.gmra.mxu1 %v2466_v28  ;;  %v115_v28 = vld [vmem:[%s3484_s0 + $0x320] sm:$0xff] }
  0xaf   :  { %2194 = vmatprep.mubr.msk.bf16.mxu1 %vm958_vm0, %v2470_v29  ;;  %v117_v29 = vld [vmem:[%s3484_s0 + $0x330] sm:$0xff] }
  0xb1   :  { %1200 = vmatmul.mubr.bf16.gmra.mxu0 %v2451_v26  ;;  %v2523_v26 = vld [vmem:[%s3484_s0 + $0x38c] ss:$16 sps:$4 sm:$0xff]  }
  0xb2   :  { %1207 = vmatprep.mubr.bf16.mxu0 %v2455_v27 }
  0xb6   :  { %1521 = vmatmul.mubr.bf16.gmra.mxu1 %v2472_v32 }
  0xb7   :  { %2195 = vmatprep.mubr.msk.bf16.mxu1 %vm958_vm0, %v2476_v33 }
  0xb9   :  { %1208 = vmatmul.mubr.bf16.gmra.mxu0 %v2457_v30 }
  0xba   :  { %1215 = vmatprep.mubr.bf16.mxu0 %v2461_v31 }
  0xbe   :  { %1529 = vmatmul.mubr.bf16.gmra.mxu1 %v2478_v36  ;;  %v128_v36 = vld [vmem:[%s3484_s0 + $0x388] sm:$0xff] }
  0xbf   :  { %2196 = vmatprep.mubr.msk.bf16.mxu1 %vm958_vm0, %v2482_v37  ;;  %v130_v37 = vld [vmem:[%s3484_s0 + $0x398] sm:$0xff] }
  0xc1   :  { %1216 = vmatmul.mubr.bf16.gmra.mxu0 %v2463_v34 }
  0xc2   :  { %1223 = vmatprep.mubr.bf16.mxu0 %v2467_v35  ;;  %v2123_v35 = vcombine.low %v115_v28, %v117_v29 }
  0xc6   :  { %1537 = vmatmul.mubr.bf16.gmra.mxu1 %v2484_v40  ;;  %v2517_v40 = vld [vmem:[%s3484_s0 + $0x344] ss:$16 sps:$4 sm:$0xff]  }
  0xc7   :  { %2197 = vmatprep.mubr.msk.bf16.mxu1 %vm958_vm0, %v2488_v41 }
  0xc9   :  { %1224 = vmatmul.mubr.bf16.gmra.mxu0 %v2469_v38 }
  0xca   :  { %1231 = vmatprep.mubr.bf16.mxu0 %v2473_v39 }
  0xce   :  { %1545 = vmatmul.mubr.bf16.gmra.mxu1 %v2490_v44 }
  0xcf   :  { %2198 = vmatprep.mubr.msk.bf16.mxu1 %vm958_vm0, %v2494_v45 }
  0xd1   :  { %1232 = vmatmul.mubr.bf16.gmra.mxu0 %v2475_v42 }
  0xd2   :  { %1239 = vmatprep.mubr.bf16.mxu0 %v2479_v43 }
  0xd6   :  { %1553 = vmatmul.mubr.bf16.gmra.mxu1 %v2496_v48  ;;  %v2528_v48 = vld [vmem:[%s3484_s0 + $0x3ac] ss:$16 sps:$4 sm:$0xff]  }
  0xd7   :  { %2199 = vmatprep.mubr.msk.bf16.mxu1 %vm958_vm0, %v2500_v49 }
  0xd9   :  { %1240 = vmatmul.mubr.bf16.gmra.mxu0 %v2481_v46  ;;  %v2137_v46 = vcombine.low %v128_v36, %v130_v37 }
  0xda   :  { %1247 = vmatprep.mubr.bf16.mxu0 %v2485_v47 }
  0xde   :  { %1561 = vmatmul.mubr.bf16.gmra.mxu1 %v2502_v52  ;;  %v121_v52 = vld [vmem:[%s3484_s0 + $0x350] sm:$0xff] }
  0xdf   :  { %2200 = vmatprep.mubr.msk.bf16.mxu1 %vm958_vm0, %v2506_v53 }
  0xe1   :  { %1248 = vmatmul.mubr.bf16.gmra.mxu0 %v2487_v50 }
  0xe2   :  { %1255 = vmatprep.mubr.bf16.mxu0 %v2491_v51  ;;  %v119_v51 = vld [vmem:[%s3484_s0 + $0x340] sm:$0xff] }
  0xe6   :  { %v1378_v58 = vpop.f32.mrf.mxu1  ;;  %1569 = vmatmul.mubr.bf16.gmra.mxu1 %v2508_v56 }
  0xe7   :  { %2201 = vmatprep.mubr.msk.bf16.mxu1 %vm958_vm0, %v2511_v57 }
  0xe8   :  { %v1380_v63 = vpop.f32.mrf.mxu1 }
  0xe9   :  { %1256 = vmatmul.mubr.bf16.gmra.mxu0 %v2493_v54 }
  0xea   :  { %1263 = vmatprep.mubr.bf16.mxu0 %v2497_v55  ;;  %v1381_v0 = vpop.f32.mrf.mxu1 }
  0xec   :  { %v1383_v3 = vpop.f32.mrf.mxu1 }
  0xee   :  { %v2994_v4 = vpop.f32.mrf.mxu1  ;;  %1577 = vmatmul.mubr.bf16.gmra.mxu1 %v2125_v1 }
  0xef   :  { %2202 = vmatprep.mubr.msk.bf16.mxu1 %vm958_vm0, %v2515_v2 }
  0xf0   :  { %v1388_v9 = vpop.f32.mrf.mxu1 }
  0xf1   :  { %1264 = vmatmul.mubr.bf16.gmra.mxu0 %v2499_v59  ;;  %v2127_v59 = vcombine.low %v119_v51, %v121_v52 }
  0xf2   :  { %1271 = vmatprep.mubr.bf16.mxu0 %v2503_v62  ;;  %v3009_v10 = vpop.f32.mrf.mxu1 }
  0xf4   :  { %v1391_v15 = vpop.f32.mrf.mxu1 }
  0xf6   :  { %v3020_v16 = vpop.f32.mrf.mxu1  ;;  %1585 = vmatmul.mubr.bf16.gmra.mxu1 %v2129_v11 }
  0xf7   :  { %2203 = vmatprep.mubr.msk.bf16.mxu1 %vm958_vm0, %v2519_v12  ;;  %v125_v12 = vld [vmem:[%s3484_s0 + $0x370] sm:$0xff] }
  0xf8   :  { %v1396_v21 = vpop.f32.mrf.mxu1 }
  0xf9   :  { %1272 = vmatmul.mubr.bf16.gmra.mxu0 %v2505_v5  ;;  %v136_v21 = vld [vmem:[%s3484_s0 + $0x3c8] sm:$0xff] }
  0xfa   :  { %1279 = vmatprep.mubr.bf16.mxu0 %v2509_v8  ;;  %v3037_v23 = vpop.f32.mrf.mxu1  ;;  %v2533_v8 = vld [vmem:[%s3484_s0 + $0x3cc] ss:$16 sps:$4 sm:$0xff]  }
  0xfc   :  { %v1399_v30 = vpop.f32.mrf.mxu1 }
  0xfe   :  { %v3049_v33 = vpop.f32.mrf.mxu1  ;;  %1593 = vmatmul.mubr.bf16.gmra.mxu1 %v2133_v24  ;;  %v138_v24 = vld [vmem:[%s3484_s0 + $0x3d8] sm:$0xff] }
  0xff   :  { %2204 = vmatprep.mubr.msk.bf16.mxu1 %vm958_vm0, %v2523_v26  ;;  %v2527_v26 = vld [vmem:[%s3484_s0 + $0x384] ss:$16 sps:$4 sm:$0xff]  }
 0x100   :  { %v1404_v41 = vpop.f32.mrf.mxu1 }
 0x101   :  { %v1089_v25 = vpop.f32.mrf.mxu0  ;;  %1280 = vmatmul.mubr.bf16.gmra.mxu0 %v2119_v17 }
 0x102   :  { %v1090_v27 = vadd.f32 %v3035_v22, %v1089_v25  ;;  %1287 = vmatprep.mubr.bf16.mxu0 %v2513_v20  ;;  %v3062_v45 = vpop.f32.mrf.mxu1 }
 0x103   :  { %v1091_v31 = vpop.f32.mrf.mxu0 }
 0x104   :  { %v1379_v32 = vadd.f32 %v1378_v58, %v1090_v27  ;;  %v1407_v53 = vpop.f32.mrf.mxu1 }
 0x105   :  { %v1092_v34 = vpop.f32.mrf.mxu0 }
 0x106   :  { %v1633_v38 = vmax.f32 %v1379_v32, 0.0  ;;  %v1093_v39 = vadd.f32 %v3035_v22, %v1092_v34  ;;  %v3079_v57 = vpop.f32.mrf.mxu1  ;;  %1601 = vmatmul.mubr.bf16.gmra.mxu1 %v2137_v46  ;;  %v2145_v32 = vcombine.low %v136_v21, %v138_v24  ;;  %v142_v46 = vld [vmem:[%s3484_s0 + $0x3f8] sm:$0xff]  ;;  %v2542_v24 = vld [vmem:[%s3484_s0 + $0x3e4] ss:$16 sps:$4 sm:$0xff]  }
 0x107   :  { %v1094_v42 = vpop.f32.mrf.mxu0  ;;  %2205 = vmatprep.mubr.msk.bf16.mxu1 %vm958_vm0, %v2528_v48  ;;  %v2532_v48 = vld [vmem:[%s3484_s0 + $0x3a4] ss:$16 sps:$4 sm:$0xff]  }
 0x108   :  { %v2272_v43 = vpack.c.bf16 %v1633_v38, %v1633_v38  ;;  %v1382_v44 = vadd.f32 %v1381_v0, %v1093_v39  ;;  %v2521_v0 = vld [vmem:[%s3484_s0 + $0x364] ss:$16 sps:$4 sm:$0xff]   ;;  %v1412_v1 = vpop.f32.mrf.mxu1 }
 0x109   :  { %v1097_v47 = vpop.f32.mrf.mxu0  ;;  %1288 = vmatmul.mubr.bf16.gmra.mxu0 %v2123_v35  ;;  %v2538_v35 = vld [vmem:[%s3484_s0 + $0x3ec] ss:$16 sps:$4 sm:$0xff]  }
 0x10a   :  { %1954 = vst.msk [vmem:[%s3486_s3] sm:$0xf] %vm1953_vm1, %v2272_v43  ;;  %v1634_v49 = vmax.f32 %v1382_v44, 0.0  ;;  %v1098_v50 = vadd.f32 %v3035_v22, %v1097_v47  ;;  %1295 = vmatprep.mubr.bf16.mxu0 %v2517_v40  ;;  %v3097_v5 = vpop.f32.mrf.mxu1  ;;  %v2525_v43 = vld [vmem:[%s3484_s0 + $0x380] ss:$16 sps:$4 sm:$0xff]   ;;  %v140_v44 = vld [vmem:[%s3484_s0 + $0x3e8] sm:$0xff] }
 0x10b   :  { %v1099_v54 = vpop.f32.mrf.mxu0 }
 0x10c   :  { %v2273_v55 = vpack.c.bf16 %v1634_v49, %v1634_v49  ;;  %v1387_v56 = vadd.f32 %v2994_v4, %v1098_v50  ;;  %v1415_v13 = vpop.f32.mrf.mxu1  ;;  %v2149_v54 = vcombine.low %v140_v44, %v142_v46 }
 0x10d   :  { %v1100_v58 = vpop.f32.mrf.mxu0 }
 0x10e   :  { %1955 = vst.msk [vmem:[%s3486_s3 + $0x4] sm:$0xf] %vm1953_vm1, %v2273_v55  ;;  %v1635_v62 = vmax.f32 %v1387_v56, 0.0  ;;  %v1101_v63 = vadd.f32 %v3035_v22, %v1100_v58  ;;  %v3114_v18 = vpop.f32.mrf.mxu1  ;;  %1609 = vmatmul.mubr.bf16.gmra.mxu1 %v2141_v6 }
 0x10f   :  { %v1102_v2 = vpop.f32.mrf.mxu0  ;;  %2206 = vmatprep.mubr.msk.bf16.mxu1 %vm958_vm0, %v2533_v8 }
 0x110   :  { %v2274_v3 = vpack.c.bf16 %v1635_v62, %v1635_v62  ;;  %v1390_v4 = vadd.f32 %v3009_v10, %v1101_v63  ;;  %v123_v10 = vld [vmem:[%s3484_s0 + $0x360] sm:$0xff]  ;;  %v1420_v27 = vpop.f32.mrf.mxu1 }
 0x111   :  { %v1105_v7 = vpop.f32.mrf.mxu0  ;;  %1296 = vmatmul.mubr.bf16.gmra.mxu0 %v2127_v59  ;;  %v2131_v20 = vcombine.low %v123_v10, %v125_v12 }
 0x112   :  { %1956 = vst.msk [vmem:[%s3486_s3 + $0x8] sm:$0xf] %vm1953_vm1, %v2274_v3  ;;  %v1636_v9 = vmax.f32 %v1390_v4, 0.0  ;;  %v1106_v11 = vadd.f32 %v3035_v22, %v1105_v7  ;;  %1303 = vmatprep.mubr.bf16.mxu0 %v2521_v0  ;;  %v3132_v31 = vpop.f32.mrf.mxu1  ;;  %v2530_v0 = vld [vmem:[%s3484_s0 + $0x3a0] ss:$16 sps:$4 sm:$0xff]  }
 0x113   :  { %v1107_v14 = vpop.f32.mrf.mxu0 }
 0x114   :  { %v2275_v15 = vpack.c.bf16 %v1636_v9, %v1636_v9  ;;  %v1395_v17 = vadd.f32 %v3020_v16, %v1106_v11  ;;  %v1423_v38 = vpop.f32.mrf.mxu1 }
 0x115   :  { %v1108_v19 = vpop.f32.mrf.mxu0 }
 0x116   :  { %1957 = vst.msk [vmem:[%s3486_s3 + $0xc] sm:$0xf] %vm1953_vm1, %v2275_v15  ;;  %v1637_v16 = vmax.f32 %v1395_v17, 0.0  ;;  %v1109_v25 = vadd.f32 %v3035_v22, %v1108_v19  ;;  %v3143_v41 = vpop.f32.mrf.mxu1  ;;  %1617 = vmatmul.mubr.bf16.gmra.mxu1 %v2145_v32 }
 0x117   :  { %v1110_v28 = vpop.f32.mrf.mxu0  ;;  %2207 = vmatprep.mubr.msk.bf16.mxu1 %vm958_vm0, %v2538_v35 }
 0x118   :  { %v2276_v29 = vpack.c.bf16 %v1637_v16, %v1637_v16  ;;  %v1398_v30 = vadd.f32 %v3037_v23, %v1109_v25  ;;  %v1428_v49 = vpop.f32.mrf.mxu1 }
 0x119   :  { %v1113_v34 = vpop.f32.mrf.mxu0  ;;  %1304 = vmatmul.mubr.bf16.gmra.mxu0 %v2131_v20 }
 0x11a   :  { %1958 = vst.msk [vmem:[%s3486_s3 + $0x10] sm:$0xf] %vm1953_vm1, %v2276_v29  ;;  %v1638_v36 = vmax.f32 %v1398_v30, 0.0  ;;  %v1114_v37 = vadd.f32 %v3035_v22, %v1113_v34  ;;  %1311 = vmatprep.mubr.bf16.mxu0 %v2527_v26  ;;  %v3164_v53 = vpop.f32.mrf.mxu1 }
 0x11b   :  { %v1115_v23 = vpop.f32.mrf.mxu0 }
 0x11c   :  { %v2277_v39 = vpack.c.bf16 %v1638_v36, %v1638_v36  ;;  %v1403_v40 = vadd.f32 %v3049_v33, %v1114_v37  ;;  %v1431_v59 = vpop.f32.mrf.mxu1 }
 0x11d   :  { %v1116_v42 = vpop.f32.mrf.mxu0 }
 0x11e   :  { %1959 = vst.msk [vmem:[%s3486_s3 + $0x14] sm:$0xf] %vm1953_vm1, %v2277_v39  ;;  %v1639_v33 = vmax.f32 %v1403_v40, 0.0  ;;  %v1117_v47 = vadd.f32 %v3035_v22, %v1116_v42  ;;  %1625 = vmatmul.mubr.bf16.gmra.mxu1 %v2149_v54 }
 0x11f   :  { %v1118_v50 = vpop.f32.mrf.mxu0 }
 0x120   :  { %v2278_v51 = vpack.c.bf16 %v1639_v33, %v1639_v33  ;;  %v1406_v52 = vadd.f32 %v3062_v45, %v1117_v47  ;;  %v3172_v45 = vpop.f32.mrf.mxu1 }
 0x121   :  { %v1121_v55 = vpop.f32.mrf.mxu0  ;;  %1312 = vmatmul.mubr.bf16.gmra.mxu0 %v2525_v43 }
 0x122   :  { %1960 = vst.msk [vmem:[%s3486_s3 + $0x18] sm:$0xf] %vm1953_vm1, %v2278_v51  ;;  %v1640_v56 = vmax.f32 %v1406_v52, 0.0  ;;  %v1122_v58 = vadd.f32 %v3035_v22, %v1121_v55  ;;  %1319 = vmatprep.mubr.bf16.mxu0 %v2532_v48  ;;  %v1436_v3 = vpop.f32.mrf.mxu1 }
 0x123   :  { %v1123_v60 = vpop.f32.mrf.mxu0 }
 0x124   :  { %v2279_v61 = vpack.c.bf16 %v1640_v56, %v1640_v56  ;;  %v1411_v62 = vadd.f32 %v3079_v57, %v1122_v58  ;;  %v2537_v57 = vld [vmem:[%s3484_s0 + $0x3c4] ss:$16 sps:$4 sm:$0xff]   ;;  %v1437_v8 = vpop.f32.mrf.mxu1 }
 0x125   :  { %v1124_v63 = vpop.f32.mrf.mxu0 }
 0x126   :  { %1961 = vst.msk [vmem:[%s3486_s3 + $0x1c] sm:$0xf] %vm1953_vm1, %v2279_v61  ;;  %v1641_v1 = vmax.f32 %v1411_v62, 0.0  ;;  %v1125_v2 = vadd.f32 %v3035_v22, %v1124_v63  ;;  %v1439_v12 = vpop.f32.mrf.mxu1 }
 0x127   :  { %v1126_v4 = vpop.f32.mrf.mxu0 }
 0x128   :  { %v2280_v6 = vpack.c.bf16 %v1641_v1, %v1641_v1  ;;  %v1414_v7 = vadd.f32 %v3097_v5, %v1125_v2  ;;  %v1442_v17 = vpop.f32.mrf.mxu1  ;;  %v2535_v5 = vld [vmem:[%s3484_s0 + $0x3c0] ss:$16 sps:$4 sm:$0xff]  }
 0x129   :  { %v1129_v9 = vpop.f32.mrf.mxu0  ;;  %1320 = vmatmul.mubr.bf16.gmra.mxu0 %v2530_v0 }
 0x12a   :  { %1962 = vst.msk [vmem:[%s3486_s3 + $0x20] sm:$0xf] %vm1953_vm1, %v2280_v6  ;;  %v1642_v11 = vmax.f32 %v1414_v7, 0.0  ;;  %v1130_v10 = vadd.f32 %v3035_v22, %v1129_v9  ;;  %1327 = vmatprep.mubr.bf16.mxu0 %v2537_v57  ;;  %v1444_v16 = vpop.f32.mrf.mxu1 }
 0x12b   :  { %v1131_v13 = vpop.f32.mrf.mxu0 }
 0x12c   :  { %v2281_v14 = vpack.c.bf16 %v1642_v11, %v1642_v11  ;;  %v1419_v15 = vadd.f32 %v3114_v18, %v1130_v10  ;;  %v1445_v27 = vpop.f32.mrf.mxu1 }
 0x12d   :  { %v1132_v19 = vpop.f32.mrf.mxu0 }
 0x12e   :  { %1963 = vst.msk [vmem:[%s3486_s3 + $0x24] sm:$0xf] %vm1953_vm1, %v2281_v14  ;;  %v1643_v20 = vmax.f32 %v1419_v15, 0.0  ;;  %v1133_v21 = vadd.f32 %v3035_v22, %v1132_v19  ;;  %v1447_v32 = vpop.f32.mrf.mxu1 }
 0x12f   :  { %v1134_v18 = vpop.f32.mrf.mxu0 }
 0x130   :  { %v2282_v25 = vpack.c.bf16 %v1643_v20, %v1643_v20  ;;  %v1422_v26 = vadd.f32 %v3132_v31, %v1133_v21  ;;  %v1450_v37 = vpop.f32.mrf.mxu1  ;;  %v2540_v31 = vld [vmem:[%s3484_s0 + $0x3e0] ss:$16 sps:$4 sm:$0xff]  }
 0x131   :  { %v1137_v28 = vpop.f32.mrf.mxu0  ;;  %1328 = vmatmul.mubr.bf16.gmra.mxu0 %v2535_v5 }
 0x132   :  { %1964 = vst.msk [vmem:[%s3486_s3 + $0x28] sm:$0xf] %vm1953_vm1, %v2282_v25  ;;  %v1644_v29 = vmax.f32 %v1422_v26, 0.0  ;;  %v1138_v30 = vadd.f32 %v3035_v22, %v1137_v28  ;;  %1335 = vmatprep.mubr.bf16.mxu0 %v2542_v24  ;;  %v1452_v40 = vpop.f32.mrf.mxu1 }
 0x133   :  { %v1139_v34 = vpop.f32.mrf.mxu0 }
 0x134   :  { %v2283_v35 = vpack.c.bf16 %v1644_v29, %v1644_v29  ;;  %v1427_v36 = vadd.f32 %v3143_v41, %v1138_v30  ;;  %v1453_v41 = vpop.f32.mrf.mxu1 }
 0x135   :  { %v1140_v38 = vpop.f32.mrf.mxu0 }
 0x136   :  { %1965 = vst.msk [vmem:[%s3486_s3 + $0x2c] sm:$0xf] %vm1953_vm1, %v2283_v35  ;;  %v1645_v23 = vmax.f32 %v1427_v36, 0.0  ;;  %v1141_v39 = vadd.f32 %v3035_v22, %v1140_v38  ;;  %v1455_v48 = vpop.f32.mrf.mxu1 }
 0x137   :  { %v1142_v42 = vpop.f32.mrf.mxu0 }
 0x138   :  { %v2284_v43 = vpack.c.bf16 %v1645_v23, %v1645_v23  ;;  %v1430_v44 = vadd.f32 %v3164_v53, %v1141_v39  ;;  %v1458_v52 = vpop.f32.mrf.mxu1 }
 0x139   :  { %v1145_v46 = vpop.f32.mrf.mxu0  ;;  %1336 = vmatmul.mubr.bf16.gmra.mxu0 %v2540_v31 }
 0x13a   :  { %1966 = vst.msk [vmem:[%s3486_s3 + $0x30] sm:$0xf] %vm1953_vm1, %v2284_v43  ;;  %v1646_v33 = vmax.f32 %v1430_v44, 0.0  ;;  %v1146_v47 = vadd.f32 %v3035_v22, %v1145_v46  ;;  %v1460_v56 = vpop.f32.mrf.mxu1 }
 0x13b   :  { %v1147_v49 = vpop.f32.mrf.mxu0 }
 0x13c   :  { %v2285_v50 = vpack.c.bf16 %v1646_v33, %v1646_v33  ;;  %v1435_v51 = vadd.f32 %v3172_v45, %v1146_v47  ;;  %v1461_v61 = vpop.f32.mrf.mxu1 }
 0x13d   :  { %v1148_v54 = vpop.f32.mrf.mxu0 }
 0x13e   :  { %1967 = vst.msk [vmem:[%s3486_s3 + $0x34] sm:$0xf] %vm1953_vm1, %v2285_v50  ;;  %v1647_v53 = vmax.f32 %v1435_v51, 0.0  ;;  %v1149_v55 = vadd.f32 %v3035_v22, %v1148_v54  ;;  %v1463_v0 = vpop.f32.mrf.mxu1 }
 0x13f   :  { %v1150_v58 = vpop.f32.mrf.mxu0 }
 0x140   :  { %v2286_v59 = vpack.c.bf16 %v1647_v53, %v1647_v53  ;;  %v1438_v60 = vadd.f32 %v1437_v8, %v1149_v55  ;;  %v1466_v3 = vpop.f32.mrf.mxu1 }
 0x141   :  { %v1153_v62 = vpop.f32.mrf.mxu0 }
 0x142   :  { %1968 = vst.msk [vmem:[%s3486_s3 + $0x38] sm:$0xf] %vm1953_vm1, %v2286_v59  ;;  %v1648_v45 = vmax.f32 %v1438_v60, 0.0  ;;  %v1154_v63 = vadd.f32 %v3035_v22, %v1153_v62  ;;  %v1468_v8 = vpop.f32.mrf.mxu1 }
 0x143   :  { %v1155_v1 = vpop.f32.mrf.mxu0 }
 0x144   :  { %v2287_v2 = vpack.c.bf16 %v1648_v45, %v1648_v45  ;;  %v1443_v57 = vadd.f32 %v1442_v17, %v1154_v63  ;;  %v1469_v12 = vpop.f32.mrf.mxu1 }
 0x145   :  { %v1156_v4 = vpop.f32.mrf.mxu0 }
 0x146   :  { %1969 = vst.msk [vmem:[%s3486_s3 + $0x3c] sm:$0xf] %vm1953_vm1, %v2287_v2  ;;  %v1649_v6 = vmax.f32 %v1443_v57, 0.0  ;;  %v1157_v7 = vadd.f32 %v3035_v22, %v1156_v4  ;;  %v1471_v17 = vpop.f32.mrf.mxu1 }
 0x147   :  { %v1158_v9 = vpop.f32.mrf.mxu0 }
 0x148   :  { %v2288_v11 = vpack.c.bf16 %v1649_v6, %v1649_v6  ;;  %v1446_v10 = vadd.f32 %v1445_v27, %v1157_v7  ;;  %v1474_v21 = vpop.f32.mrf.mxu1 }
 0x149   :  { %v1161_v13 = vpop.f32.mrf.mxu0 }
 0x14a   :  { %1970 = vst.msk [vmem:[%s3486_s3 + $0x40] sm:$0xf] %vm1953_vm1, %v2288_v11  ;;  %v1650_v14 = vmax.f32 %v1446_v10, 0.0  ;;  %v1162_v15 = vadd.f32 %v3035_v22, %v1161_v13  ;;  %v1476_v25 = vpop.f32.mrf.mxu1 }
 0x14b   :  { %v1163_v19 = vpop.f32.mrf.mxu0 }
 0x14c   :  { %v2289_v5 = vpack.c.bf16 %v1650_v14, %v1650_v14  ;;  %v1451_v20 = vadd.f32 %v1450_v37, %v1162_v15  ;;  %v1477_v29 = vpop.f32.mrf.mxu1 }
 0x14d   :  { %v1164_v24 = vpop.f32.mrf.mxu0 }
 0x14e   :  { %1971 = vst.msk [vmem:[%s3486_s3 + $0x44] sm:$0xf] %vm1953_vm1, %v2289_v5  ;;  %v1651_v16 = vmax.f32 %v1451_v20, 0.0  ;;  %v1165_v18 = vadd.f32 %v3035_v22, %v1164_v24  ;;  %v1479_v35 = vpop.f32.mrf.mxu1 }
 0x14f   :  { %v1166_v26 = vpop.f32.mrf.mxu0 }
 0x150   :  { %v2290_v27 = vpack.c.bf16 %v1651_v16, %v1651_v16  ;;  %v1454_v28 = vadd.f32 %v1453_v41, %v1165_v18  ;;  %v1482_v31 = vpop.f32.mrf.mxu1 }
 0x151   :  { %v1169_v30 = vpop.f32.mrf.mxu0 }
 0x152   :  { %1972 = vst.msk [vmem:[%s3486_s3 + $0x48] sm:$0xf] %vm1953_vm1, %v2290_v27  ;;  %v1652_v32 = vmax.f32 %v1454_v28, 0.0  ;;  %v1170_v34 = vadd.f32 %v3035_v22, %v1169_v30  ;;  %v1484_v42 = vpop.f32.mrf.mxu1 }
 0x153   :  { %v1171_v36 = vpop.f32.mrf.mxu0 }
 0x154   :  { %v2291_v37 = vpack.c.bf16 %v1652_v32, %v1652_v32  ;;  %v1459_v38 = vadd.f32 %v1458_v52, %v1170_v34  ;;  %v1485_v46 = vpop.f32.mrf.mxu1 }
 0x155   :  { %v1172_v23 = vpop.f32.mrf.mxu0 }
 0x156   :  { %1973 = vst.msk [vmem:[%s3486_s3 + $0x4c] sm:$0xf] %vm1953_vm1, %v2291_v37  ;;  %v1653_v39 = vmax.f32 %v1459_v38, 0.0  ;;  %v1173_v40 = vadd.f32 %v3035_v22, %v1172_v23  ;;  %v1487_v49 = vpop.f32.mrf.mxu1 }
 0x157   :  { %v1174_v43 = vpop.f32.mrf.mxu0 }
 0x158   :  { %v2292_v44 = vpack.c.bf16 %v1653_v39, %v1653_v39  ;;  %v1462_v41 = vadd.f32 %v1461_v61, %v1173_v40  ;;  %v1490_v54 = vpop.f32.mrf.mxu1 }
 0x159   :  { %v1177_v33 = vpop.f32.mrf.mxu0 }
 0x15a   :  { %1974 = vst.msk [vmem:[%s3486_s3 + $0x50] sm:$0xf] %vm1953_vm1, %v2292_v44  ;;  %v1654_v47 = vmax.f32 %v1462_v41, 0.0  ;;  %v1178_v48 = vadd.f32 %v3035_v22, %v1177_v33  ;;  %v1492_v58 = vpop.f32.mrf.mxu1 }
 0x15b   :  { %v1179_v50 = vpop.f32.mrf.mxu0 }
 0x15c   :  { %v2293_v51 = vpack.c.bf16 %v1654_v47, %v1654_v47  ;;  %v1467_v52 = vadd.f32 %v1466_v3, %v1178_v48  ;;  %v1493_v62 = vpop.f32.mrf.mxu1 }
 0x15d   :  { %v1180_v53 = vpop.f32.mrf.mxu0 }
 0x15e   :  { %1975 = vst.msk [vmem:[%s3486_s3 + $0x54] sm:$0xf] %vm1953_vm1, %v2293_v51  ;;  %v1655_v55 = vmax.f32 %v1467_v52, 0.0  ;;  %v1181_v56 = vadd.f32 %v3035_v22, %v1180_v53  ;;  %v1495_v1 = vpop.f32.mrf.mxu1 }
 0x15f   :  { %v1182_v59 = vpop.f32.mrf.mxu0 }
 0x160   :  { %v2294_v60 = vpack.c.bf16 %v1655_v55, %v1655_v55  ;;  %v1470_v61 = vadd.f32 %v1469_v12, %v1181_v56  ;;  %v1498_v4 = vpop.f32.mrf.mxu1 }
 0x161   :  { %v1185_v45 = vpop.f32.mrf.mxu0 }
 0x162   :  { %1976 = vst.msk [vmem:[%s3486_s3 + $0x58] sm:$0xf] %vm1953_vm1, %v2294_v60  ;;  %v1656_v63 = vmax.f32 %v1470_v61, 0.0  ;;  %v1186_v0 = vadd.f32 %v3035_v22, %v1185_v45  ;;  %v1500_v9 = vpop.f32.mrf.mxu1 }
 0x163   :  { %v1187_v2 = vpop.f32.mrf.mxu0 }
 0x164   :  { %v2295_v57 = vpack.c.bf16 %v1656_v63, %v1656_v63  ;;  %v1475_v3 = vadd.f32 %v1474_v21, %v1186_v0  ;;  %v1501_v13 = vpop.f32.mrf.mxu1 }
 0x165   :  { %v1188_v6 = vpop.f32.mrf.mxu0 }
 0x166   :  { %1977 = vst.msk [vmem:[%s3486_s3 + $0x5c] sm:$0xf] %vm1953_vm1, %v2295_v57  ;;  %v1657_v7 = vmax.f32 %v1475_v3, 0.0  ;;  %v1189_v8 = vadd.f32 %v3035_v22, %v1188_v6  ;;  %v1503_v19 = vpop.f32.mrf.mxu1 }
 0x167   :  { %v1190_v11 = vpop.f32.mrf.mxu0 }
 0x168   :  { %v2296_v10 = vpack.c.bf16 %v1657_v7, %v1657_v7  ;;  %v1478_v12 = vadd.f32 %v1477_v29, %v1189_v8  ;;  %v1506_v24 = vpop.f32.mrf.mxu1 }
 0x169   :  { %v1193_v14 = vpop.f32.mrf.mxu0 }
 0x16a   :  { %1978 = vst.msk [vmem:[%s3486_s3 + $0x60] sm:$0xf] %vm1953_vm1, %v2296_v10  ;;  %v1658_v15 = vmax.f32 %v1478_v12, 0.0  ;;  %v1194_v17 = vadd.f32 %v3035_v22, %v1193_v14  ;;  %v1508_v26 = vpop.f32.mrf.mxu1 }
 0x16b   :  { %v1195_v5 = vpop.f32.mrf.mxu0 }
 0x16c   :  { %v2297_v20 = vpack.c.bf16 %v1658_v15, %v1658_v15  ;;  %v1483_v21 = vadd.f32 %v1482_v31, %v1194_v17  ;;  %v1509_v30 = vpop.f32.mrf.mxu1 }
 0x16d   :  { %v1196_v16 = vpop.f32.mrf.mxu0 }
 0x16e   :  { %1979 = vst.msk [vmem:[%s3486_s3 + $0x64] sm:$0xf] %vm1953_vm1, %v2297_v20  ;;  %v1659_v18 = vmax.f32 %v1483_v21, 0.0  ;;  %v1197_v25 = vadd.f32 %v3035_v22, %v1196_v16  ;;  %v1511_v36 = vpop.f32.mrf.mxu1 }
 0x16f   :  { %v1198_v27 = vpop.f32.mrf.mxu0 }
 0x170   :  { %v2298_v28 = vpack.c.bf16 %v1659_v18, %v1659_v18  ;;  %v1486_v29 = vadd.f32 %v1485_v46, %v1197_v25  ;;  %v1514_v23 = vpop.f32.mrf.mxu1 }
 0x171   :  { %v1201_v32 = vpop.f32.mrf.mxu0 }
 0x172   :  { %1980 = vst.msk [vmem:[%s3486_s3 + $0x68] sm:$0xf] %vm1953_vm1, %v2298_v28  ;;  %v1660_v34 = vmax.f32 %v1486_v29, 0.0  ;;  %v1202_v35 = vadd.f32 %v3035_v22, %v1201_v32  ;;  %v1516_v43 = vpop.f32.mrf.mxu1 }
 0x173   :  { %v1203_v37 = vpop.f32.mrf.mxu0 }
 0x174   :  { %v2299_v38 = vpack.c.bf16 %v1660_v34, %v1660_v34  ;;  %v1491_v31 = vadd.f32 %v1490_v54, %v1202_v35  ;;  %v1517_v33 = vpop.f32.mrf.mxu1 }
 0x175   :  { %v1204_v39 = vpop.f32.mrf.mxu0 }
 0x176   :  { %1981 = vst.msk [vmem:[%s3486_s3 + $0x6c] sm:$0xf] %vm1953_vm1, %v2299_v38  ;;  %v1661_v40 = vmax.f32 %v1491_v31, 0.0  ;;  %v1205_v42 = vadd.f32 %v3035_v22, %v1204_v39  ;;  %v1519_v50 = vpop.f32.mrf.mxu1 }
 0x177   :  { %v1206_v44 = vpop.f32.mrf.mxu0 }
 0x178   :  { %v2300_v41 = vpack.c.bf16 %v1661_v40, %v1661_v40  ;;  %v1494_v46 = vadd.f32 %v1493_v62, %v1205_v42  ;;  %v1522_v53 = vpop.f32.mrf.mxu1 }
 0x179   :  { %v1209_v47 = vpop.f32.mrf.mxu0 }
 0x17a   :  { %1982 = vst.msk [vmem:[%s3486_s3 + $0x70] sm:$0xf] %vm1953_vm1, %v2300_v41  ;;  %v1662_v48 = vmax.f32 %v1494_v46, 0.0  ;;  %v1210_v49 = vadd.f32 %v3035_v22, %v1209_v47  ;;  %v1524_v59 = vpop.f32.mrf.mxu1 }
 0x17b   :  { %v1211_v51 = vpop.f32.mrf.mxu0 }
 0x17c   :  { %v2301_v52 = vpack.c.bf16 %v1662_v48, %v1662_v48  ;;  %v1499_v54 = vadd.f32 %v1498_v4, %v1210_v49  ;;  %v1525_v45 = vpop.f32.mrf.mxu1 }
 0x17d   :  { %v1212_v55 = vpop.f32.mrf.mxu0 }
 0x17e   :  { %1983 = vst.msk [vmem:[%s3486_s3 + $0x74] sm:$0xf] %vm1953_vm1, %v2301_v52  ;;  %v1663_v56 = vmax.f32 %v1499_v54, 0.0  ;;  %v1213_v58 = vadd.f32 %v3035_v22, %v1212_v55  ;;  %v1527_v2 = vpop.f32.mrf.mxu1 }
 0x17f   :  { %v1214_v60 = vpop.f32.mrf.mxu0 }
 0x180   :  { %v2302_v61 = vpack.c.bf16 %v1663_v56, %v1663_v56  ;;  %v1502_v62 = vadd.f32 %v1501_v13, %v1213_v58  ;;  %v1530_v6 = vpop.f32.mrf.mxu1 }
 0x181   :  { %v1217_v63 = vpop.f32.mrf.mxu0 }
 0x182   :  { %1984 = vst.msk [vmem:[%s3486_s3 + $0x78] sm:$0xf] %vm1953_vm1, %v2302_v61  ;;  %v1664_v0 = vmax.f32 %v1502_v62, 0.0  ;;  %v1218_v1 = vadd.f32 %v3035_v22, %v1217_v63  ;;  %v1532_v11 = vpop.f32.mrf.mxu1 }
 0x183   :  { %v1219_v57 = vpop.f32.mrf.mxu0 }
 0x184   :  { %v2303_v3 = vpack.c.bf16 %v1664_v0, %v1664_v0  ;;  %v1507_v4 = vadd.f32 %v1506_v24, %v1218_v1  ;;  %v1533_v14 = vpop.f32.mrf.mxu1 }
 0x185   :  { %v1220_v7 = vpop.f32.mrf.mxu0 }
 0x186   :  { %1985 = vst.msk [vmem:[%s3486_s3 + $0x7c] sm:$0xf] %vm1953_vm1, %v2303_v3  ;;  %v1665_v8 = vmax.f32 %v1507_v4, 0.0  ;;  %v1221_v9 = vadd.f32 %v3035_v22, %v1220_v7  ;;  %v1535_v5 = vpop.f32.mrf.mxu1 }
 0x187   :  { %v1222_v10 = vpop.f32.mrf.mxu0 }
 0x188   :  { %v2304_v12 = vpack.c.bf16 %v1665_v8, %v1665_v8  ;;  %v1510_v13 = vadd.f32 %v1509_v30, %v1221_v9  ;;  %v1538_v16 = vpop.f32.mrf.mxu1 }
 0x189   :  { %v1225_v15 = vpop.f32.mrf.mxu0 }
 0x18a   :  { %1986 = vst.msk [vmem:[%s3486_s3 + $0x80] sm:$0xf] %vm1953_vm1, %v2304_v12  ;;  %v1666_v17 = vmax.f32 %v1510_v13, 0.0  ;;  %v1226_v19 = vadd.f32 %v3035_v22, %v1225_v15  ;;  %v1540_v27 = vpop.f32.mrf.mxu1 }
 0x18b   :  { %v1227_v20 = vpop.f32.mrf.mxu0 }
 0x18c   :  { %v2305_v21 = vpack.c.bf16 %v1666_v17, %v1666_v17  ;;  %v1515_v24 = vadd.f32 %v1514_v23, %v1226_v19  ;;  %v1541_v32 = vpop.f32.mrf.mxu1 }
 0x18d   :  { %v1228_v18 = vpop.f32.mrf.mxu0 }
 0x18e   :  { %1987 = vst.msk [vmem:[%s3486_s3 + $0x84] sm:$0xf] %vm1953_vm1, %v2305_v21  ;;  %v1667_v25 = vmax.f32 %v1515_v24, 0.0  ;;  %v1229_v26 = vadd.f32 %v3035_v22, %v1228_v18  ;;  %v1543_v37 = vpop.f32.mrf.mxu1 }
 0x18f   :  { %v1230_v28 = vpop.f32.mrf.mxu0 }
 0x190   :  { %v2306_v29 = vpack.c.bf16 %v1667_v25, %v1667_v25  ;;  %v1518_v30 = vadd.f32 %v1517_v33, %v1229_v26  ;;  %v1546_v39 = vpop.f32.mrf.mxu1 }
 0x191   :  { %v1233_v34 = vpop.f32.mrf.mxu0 }
 0x192   :  { %1988 = vst.msk [vmem:[%s3486_s3 + $0x88] sm:$0xf] %vm1953_vm1, %v2306_v29  ;;  %v1668_v35 = vmax.f32 %v1518_v30, 0.0  ;;  %v1234_v36 = vadd.f32 %v3035_v22, %v1233_v34  ;;  %v1548_v44 = vpop.f32.mrf.mxu1 }
 0x193   :  { %v1235_v38 = vpop.f32.mrf.mxu0 }
 0x194   :  { %v2307_v31 = vpack.c.bf16 %v1668_v35, %v1668_v35  ;;  %v1523_v23 = vadd.f32 %v1522_v53, %v1234_v36  ;;  %v1549_v47 = vpop.f32.mrf.mxu1 }
 0x195   :  { %v1236_v40 = vpop.f32.mrf.mxu0 }
 0x196   :  { %1989 = vst.msk [vmem:[%s3486_s3 + $0x8c] sm:$0xf] %vm1953_vm1, %v2307_v31  ;;  %v1669_v42 = vmax.f32 %v1523_v23, 0.0  ;;  %v1237_v43 = vadd.f32 %v3035_v22, %v1236_v40  ;;  %v1551_v51 = vpop.f32.mrf.mxu1 }
 0x197   :  { %v1238_v41 = vpop.f32.mrf.mxu0 }
 0x198   :  { %v2308_v46 = vpack.c.bf16 %v1669_v42, %v1669_v42  ;;  %v1526_v33 = vadd.f32 %v1525_v45, %v1237_v43  ;;  %v1554_v55 = vpop.f32.mrf.mxu1 }
 0x199   :  { %v1241_v48 = vpop.f32.mrf.mxu0 }
 0x19a   :  { %1990 = vst.msk [vmem:[%s3486_s3 + $0x90] sm:$0xf] %vm1953_vm1, %v2308_v46  ;;  %v1670_v49 = vmax.f32 %v1526_v33, 0.0  ;;  %v1242_v50 = vadd.f32 %v3035_v22, %v1241_v48  ;;  %v1556_v60 = vpop.f32.mrf.mxu1 }
 0x19b   :  { %v1243_v52 = vpop.f32.mrf.mxu0 }
 0x19c   :  { %v2309_v54 = vpack.c.bf16 %v1670_v49, %v1670_v49  ;;  %v1531_v53 = vadd.f32 %v1530_v6, %v1242_v50  ;;  %v1557_v63 = vpop.f32.mrf.mxu1 }
 0x19d   :  { %v1244_v56 = vpop.f32.mrf.mxu0 }
 0x19e   :  { %1991 = vst.msk [vmem:[%s3486_s3 + $0x94] sm:$0xf] %vm1953_vm1, %v2309_v54  ;;  %v1671_v58 = vmax.f32 %v1531_v53, 0.0  ;;  %v1245_v59 = vadd.f32 %v3035_v22, %v1244_v56  ;;  %v1559_v57 = vpop.f32.mrf.mxu1 }
 0x19f   :  { %v1246_v61 = vpop.f32.mrf.mxu0 }
 0x1a0   :  { %v2310_v62 = vpack.c.bf16 %v1671_v58, %v1671_v58  ;;  %v1534_v45 = vadd.f32 %v1533_v14, %v1245_v59  ;;  %v1562_v7 = vpop.f32.mrf.mxu1 }
 0x1a1   :  { %v1249_v0 = vpop.f32.mrf.mxu0 }
 0x1a2   :  { %1992 = vst.msk [vmem:[%s3486_s3 + $0x98] sm:$0xf] %vm1953_vm1, %v2310_v62  ;;  %v1672_v1 = vmax.f32 %v1534_v45, 0.0  ;;  %v1250_v2 = vadd.f32 %v3035_v22, %v1249_v0  ;;  %v1564_v10 = vpop.f32.mrf.mxu1 }
 0x1a3   :  { %v1251_v3 = vpop.f32.mrf.mxu0 }
 0x1a4   :  { %v2311_v4 = vpack.c.bf16 %v1672_v1, %v1672_v1  ;;  %v1539_v6 = vadd.f32 %v1538_v16, %v1250_v2  ;;  %v1565_v15 = vpop.f32.mrf.mxu1 }
 0x1a5   :  { %v1252_v8 = vpop.f32.mrf.mxu0 }
 0x1a6   :  { %1993 = vst.msk [vmem:[%s3486_s3 + $0x9c] sm:$0xf] %vm1953_vm1, %v2311_v4  ;;  %v1673_v9 = vmax.f32 %v1539_v6, 0.0  ;;  %v1253_v11 = vadd.f32 %v3035_v22, %v1252_v8  ;;  %v1567_v20 = vpop.f32.mrf.mxu1 }
 0x1a7   :  { %v1254_v12 = vpop.f32.mrf.mxu0  ;;  %v3407_v20 = vld [vmem:[%s3485_s2] ss:$0 sm:$0xff] }
 0x1a8   :  { %v2312_v13 = vpack.c.bf16 %v1673_v9, %v1673_v9  ;;  %v1542_v14 = vadd.f32 %v1541_v32, %v1253_v11  ;;  %v1570_v18 = vpop.f32.mrf.mxu1 }
 0x1a9   :  { %v1257_v17 = vpop.f32.mrf.mxu0 }
 0x1aa   :  { %1994 = vst.msk [vmem:[%s3486_s3 + $0xa0] sm:$0xf] %vm1953_vm1, %v2312_v13  ;;  %v1674_v19 = vmax.f32 %v1542_v14, 0.0  ;;  %v1258_v5 = vadd.f32 %v3035_v22, %v1257_v17  ;;  %v1572_v28 = vpop.f32.mrf.mxu1 }
 0x1ab   :  { %v1259_v21 = vpop.f32.mrf.mxu0 }
 0x1ac   :  { %v2313_v24 = vpack.c.bf16 %v1674_v19, %v1674_v19  ;;  %v1547_v16 = vadd.f32 %v1546_v39, %v1258_v5  ;;  %v1573_v34 = vpop.f32.mrf.mxu1 }
 0x1ad   :  { %v1260_v25 = vpop.f32.mrf.mxu0 }
 0x1ae   :  { %1995 = vst.msk [vmem:[%s3486_s3 + $0xa4] sm:$0xf] %vm1953_vm1, %v2313_v24  ;;  %v1675_v26 = vmax.f32 %v1547_v16, 0.0  ;;  %v1261_v27 = vadd.f32 %v3035_v22, %v1260_v25  ;;  %v1575_v38 = vpop.f32.mrf.mxu1 }
 0x1af   :  { %v1262_v29 = vpop.f32.mrf.mxu0 }
 0x1b0   :  { %v2314_v30 = vpack.c.bf16 %v1675_v26, %v1675_v26  ;;  %v1550_v32 = vadd.f32 %v1549_v47, %v1261_v27  ;;  %v1578_v40 = vpop.f32.mrf.mxu1 }
 0x1b1   :  { %v1265_v35 = vpop.f32.mrf.mxu0 }
 0x1b2   :  { %1996 = vst.msk [vmem:[%s3486_s3 + $0xa8] sm:$0xf] %vm1953_vm1, %v2314_v30  ;;  %v1676_v36 = vmax.f32 %v1550_v32, 0.0  ;;  %v1266_v37 = vadd.f32 %v3035_v22, %v1265_v35  ;;  %v1580_v41 = vpop.f32.mrf.mxu1 }
 0x1b3   :  { %v1267_v31 = vpop.f32.mrf.mxu0 }
 0x1b4   :  { %v2315_v23 = vpack.c.bf16 %v1676_v36, %v1676_v36  ;;  %v1555_v39 = vadd.f32 %v1554_v55, %v1266_v37  ;;  %v1581_v48 = vpop.f32.mrf.mxu1 }
 0x1b5   :  { %v1268_v42 = vpop.f32.mrf.mxu0 }
 0x1b6   :  { %1997 = vst.msk [vmem:[%s3486_s3 + $0xac] sm:$0xf] %vm1953_vm1, %v2315_v23  ;;  %v1677_v43 = vmax.f32 %v1555_v39, 0.0  ;;  %v1269_v44 = vadd.f32 %v3035_v22, %v1268_v42  ;;  %v1583_v52 = vpop.f32.mrf.mxu1 }
 0x1b7   :  { %v1270_v46 = vpop.f32.mrf.mxu0 }
 0x1b8   :  { %v2316_v33 = vpack.c.bf16 %v1677_v43, %v1677_v43  ;;  %v1558_v47 = vadd.f32 %v1557_v63, %v1269_v44  ;;  %v1586_v56 = vpop.f32.mrf.mxu1 }
 0x1b9   :  { %v1273_v49 = vpop.f32.mrf.mxu0 }
 0x1ba   :  { %1998 = vst.msk [vmem:[%s3486_s3 + $0xb0] sm:$0xf] %vm1953_vm1, %v2316_v33  ;;  %v1678_v50 = vmax.f32 %v1558_v47, 0.0  ;;  %v1274_v51 = vadd.f32 %v3035_v22, %v1273_v49  ;;  %v1588_v61 = vpop.f32.mrf.mxu1 }
 0x1bb   :  { %v1275_v54 = vpop.f32.mrf.mxu0 }
 0x1bc   :  { %v2317_v53 = vpack.c.bf16 %v1678_v50, %v1678_v50  ;;  %v1563_v55 = vadd.f32 %v1562_v7, %v1274_v51  ;;  %v1589_v0 = vpop.f32.mrf.mxu1 }
 0x1bd   :  { %v1276_v58 = vpop.f32.mrf.mxu0 }
 0x1be   :  { %1999 = vst.msk [vmem:[%s3486_s3 + $0xb4] sm:$0xf] %vm1953_vm1, %v2317_v53  ;;  %v1679_v59 = vmax.f32 %v1563_v55, 0.0  ;;  %v1277_v60 = vadd.f32 %v3035_v22, %v1276_v58  ;;  %v1591_v3 = vpop.f32.mrf.mxu1 }
 0x1bf   :  { %v1278_v62 = vpop.f32.mrf.mxu0 }
 0x1c0   :  { %v2318_v45 = vpack.c.bf16 %v1679_v59, %v1679_v59  ;;  %v1566_v63 = vadd.f32 %v1565_v15, %v1277_v60  ;;  %v1594_v8 = vpop.f32.mrf.mxu1 }
 0x1c1   :  { %v1281_v1 = vpop.f32.mrf.mxu0 }
 0x1c2   :  { %2000 = vst.msk [vmem:[%s3486_s3 + $0xb8] sm:$0xf] %vm1953_vm1, %v2318_v45  ;;  %v1680_v2 = vmax.f32 %v1566_v63, 0.0  ;;  %v1282_v57 = vadd.f32 %v3035_v22, %v1281_v1  ;;  %v1596_v12 = vpop.f32.mrf.mxu1 }
 0x1c3   :  { %v1283_v4 = vpop.f32.mrf.mxu0 }
 0x1c4   :  { %v2319_v6 = vpack.c.bf16 %v1680_v2, %v1680_v2  ;;  %v1571_v7 = vadd.f32 %v1570_v18, %v1282_v57  ;;  %v1597_v17 = vpop.f32.mrf.mxu1 }
 0x1c5   :  { %v1284_v9 = vpop.f32.mrf.mxu0 }
 0x1c6   :  { %2001 = vst.msk [vmem:[%s3486_s3 + $0xbc] sm:$0xf] %vm1953_vm1, %v2319_v6  ;;  %v1681_v11 = vmax.f32 %v1571_v7, 0.0  ;;  %v1285_v10 = vadd.f32 %v3035_v22, %v1284_v9  ;;  %v1599_v22 = vpop.f32.mrf.mxu1 }
 0x1c7   :  { %v1286_v13 = vpop.f32.mrf.mxu0 }
 0x1c8   :  { %v2320_v14 = vpack.c.bf16 %v1681_v11, %v1681_v11  ;;  %v1574_v15 = vadd.f32 %v1573_v34, %v1285_v10  ;;  %v1602_v25 = vpop.f32.mrf.mxu1 }
 0x1c9   :  { %v1289_v19 = vpop.f32.mrf.mxu0 }
 0x1ca   :  { %2002 = vst.msk [vmem:[%s3486_s3 + $0xc0] sm:$0xf] %vm1953_vm1, %v2320_v14  ;;  %v1682_v5 = vmax.f32 %v1574_v15, 0.0  ;;  %v1290_v21 = vadd.f32 %v3407_v20, %v1289_v19  ;;  %v1604_v29 = vpop.f32.mrf.mxu1 }
 0x1cb   :  { %v1291_v24 = vpop.f32.mrf.mxu0 }
 0x1cc   :  { %v2321_v16 = vpack.c.bf16 %v1682_v5, %v1682_v5  ;;  %v1579_v18 = vadd.f32 %v1578_v40, %v1290_v21  ;;  %v1605_v35 = vpop.f32.mrf.mxu1 }
 0x1cd   :  { %v1292_v26 = vpop.f32.mrf.mxu0 }
 0x1ce   :  { %2003 = vst.msk [vmem:[%s3486_s3 + $0xc4] sm:$0xf] %vm1953_vm1, %v2321_v16  ;;  %v1683_v27 = vmax.f32 %v1579_v18, 0.0  ;;  %v1293_v28 = vadd.f32 %v3407_v20, %v1292_v26  ;;  %v1607_v31 = vpop.f32.mrf.mxu1 }
 0x1cf   :  { %v1294_v30 = vpop.f32.mrf.mxu0 }
 0x1d0   :  { %v2322_v32 = vpack.c.bf16 %v1683_v27, %v1683_v27  ;;  %v1582_v34 = vadd.f32 %v1581_v48, %v1293_v28  ;;  %v1610_v42 = vpop.f32.mrf.mxu1 }
 0x1d1   :  { %v1297_v36 = vpop.f32.mrf.mxu0 }
 0x1d2   :  { %2004 = vst.msk [vmem:[%s3486_s3 + $0xc8] sm:$0xf] %vm1953_vm1, %v2322_v32  ;;  %v1684_v37 = vmax.f32 %v1582_v34, 0.0  ;;  %v1298_v38 = vadd.f32 %v3407_v20, %v1297_v36  ;;  %v1612_v46 = vpop.f32.mrf.mxu1 }
 0x1d3   :  { %v1299_v23 = vpop.f32.mrf.mxu0 }
 0x1d4   :  { %v2323_v39 = vpack.c.bf16 %v1684_v37, %v1684_v37  ;;  %v1587_v40 = vadd.f32 %v1586_v56, %v1298_v38  ;;  %v1613_v49 = vpop.f32.mrf.mxu1 }
 0x1d5   :  { %v1300_v43 = vpop.f32.mrf.mxu0 }
 0x1d6   :  { %2005 = vst.msk [vmem:[%s3486_s3 + $0xcc] sm:$0xf] %vm1953_vm1, %v2323_v39  ;;  %v1685_v44 = vmax.f32 %v1587_v40, 0.0  ;;  %v1301_v41 = vadd.f32 %v3407_v20, %v1300_v43  ;;  %v1615_v54 = vpop.f32.mrf.mxu1 }
 0x1d7   :  { %v1302_v33 = vpop.f32.mrf.mxu0 }
 0x1d8   :  { %v2324_v47 = vpack.c.bf16 %v1685_v44, %v1685_v44  ;;  %v1590_v48 = vadd.f32 %v1589_v0, %v1301_v41  ;;  %v1618_v58 = vpop.f32.mrf.mxu1 }
 0x1d9   :  { %v1305_v50 = vpop.f32.mrf.mxu0 }
 0x1da   :  { %2006 = vst.msk [vmem:[%s3486_s3 + $0xd0] sm:$0xf] %vm1953_vm1, %v2324_v47  ;;  %v1686_v51 = vmax.f32 %v1590_v48, 0.0  ;;  %v1306_v52 = vadd.f32 %v3407_v20, %v1305_v50  ;;  %v1620_v62 = vpop.f32.mrf.mxu1 }
 0x1db   :  { %v1307_v53 = vpop.f32.mrf.mxu0 }
 0x1dc   :  { %v2325_v55 = vpack.c.bf16 %v1686_v51, %v1686_v51  ;;  %v1595_v56 = vadd.f32 %v1594_v8, %v1306_v52  ;;  %v1621_v1 = vpop.f32.mrf.mxu1 }
 0x1dd   :  { %v1308_v59 = vpop.f32.mrf.mxu0 }
 0x1de   :  { %2007 = vst.msk [vmem:[%s3486_s3 + $0xd4] sm:$0xf] %vm1953_vm1, %v2325_v55  ;;  %v1687_v60 = vmax.f32 %v1595_v56, 0.0  ;;  %v1309_v61 = vadd.f32 %v3407_v20, %v1308_v59  ;;  %v1623_v4 = vpop.f32.mrf.mxu1 }
 0x1df   :  { %v1310_v45 = vpop.f32.mrf.mxu0 }
 0x1e0   :  { %v2326_v63 = vpack.c.bf16 %v1687_v60, %v1687_v60  ;;  %v1598_v0 = vadd.f32 %v1597_v17, %v1309_v61  ;;  %v1626_v9 = vpop.f32.mrf.mxu1 }
 0x1e1   :  { %v1313_v2 = vpop.f32.mrf.mxu0 }
 0x1e2   :  { %2008 = vst.msk [vmem:[%s3486_s3 + $0xd8] sm:$0xf] %vm1953_vm1, %v2326_v63  ;;  %v1688_v57 = vmax.f32 %v1598_v0, 0.0  ;;  %v1314_v3 = vadd.f32 %v3407_v20, %v1313_v2  ;;  %v1628_v13 = vpop.f32.mrf.mxu1 }
 0x1e3   :  { %v1315_v6 = vpop.f32.mrf.mxu0 }
 0x1e4   :  { %v2327_v7 = vpack.c.bf16 %v1688_v57, %v1688_v57  ;;  %v1603_v8 = vadd.f32 %v1602_v25, %v1314_v3  ;;  %v1629_v19 = vpop.f32.mrf.mxu1 }
 0x1e5   :  { %v1316_v11 = vpop.f32.mrf.mxu0 }
 0x1e6   :  { %2009 = vst.msk [vmem:[%s3486_s3 + $0xdc] sm:$0xf] %vm1953_vm1, %v2327_v7  ;;  %v1689_v10 = vmax.f32 %v1603_v8, 0.0  ;;  %v1317_v12 = vadd.f32 %v3407_v20, %v1316_v11  ;;  %v1631_v24 = vpop.f32.mrf.mxu1 }
 0x1e7   :  { %v1318_v14 = vpop.f32.mrf.mxu0 }
 0x1e8   :  { %v2328_v15 = vpack.c.bf16 %v1689_v10, %v1689_v10  ;;  %v1606_v17 = vadd.f32 %v1605_v35, %v1317_v12 }
 0x1e9   :  { %v1321_v5 = vpop.f32.mrf.mxu0 }
 0x1ea   :  { %2010 = vst.msk [vmem:[%s3486_s3 + $0xe0] sm:$0xf] %vm1953_vm1, %v2328_v15  ;;  %v1690_v21 = vmax.f32 %v1606_v17, 0.0  ;;  %v1322_v22 = vadd.f32 %v3407_v20, %v1321_v5 }
 0x1eb   :  { %v1323_v16 = vpop.f32.mrf.mxu0 }
 0x1ec   :  { %v2329_v18 = vpack.c.bf16 %v1690_v21, %v1690_v21  ;;  %v1611_v25 = vadd.f32 %v1610_v42, %v1322_v22 }
 0x1ed   :  { %v1324_v26 = vpop.f32.mrf.mxu0 }
 0x1ee   :  { %2011 = vst.msk [vmem:[%s3486_s3 + $0xe4] sm:$0xf] %vm1953_vm1, %v2329_v18  ;;  %v1691_v27 = vmax.f32 %v1611_v25, 0.0  ;;  %v1325_v28 = vadd.f32 %v3407_v20, %v1324_v26 }
 0x1ef   :  { %v1326_v29 = vpop.f32.mrf.mxu0 }
 0x1f0   :  { %v2330_v30 = vpack.c.bf16 %v1691_v27, %v1691_v27  ;;  %v1614_v32 = vadd.f32 %v1613_v49, %v1325_v28 }
 0x1f1   :  { %v1329_v34 = vpop.f32.mrf.mxu0 }
 0x1f2   :  { %2012 = vst.msk [vmem:[%s3486_s3 + $0xe8] sm:$0xf] %vm1953_vm1, %v2330_v30  ;;  %v1692_v35 = vmax.f32 %v1614_v32, 0.0  ;;  %v1330_v36 = vadd.f32 %v3407_v20, %v1329_v34 }
 0x1f3   :  { %v1331_v37 = vpop.f32.mrf.mxu0 }
 0x1f4   :  { %v2331_v38 = vpack.c.bf16 %v1692_v35, %v1692_v35  ;;  %v1619_v31 = vadd.f32 %v1618_v58, %v1330_v36 }
 0x1f5   :  { %v1332_v23 = vpop.f32.mrf.mxu0 }
 0x1f6   :  { %2013 = vst.msk [vmem:[%s3486_s3 + $0xec] sm:$0xf] %vm1953_vm1, %v2331_v38  ;;  %v1693_v39 = vmax.f32 %v1619_v31, 0.0  ;;  %v1333_v40 = vadd.f32 %v3407_v20, %v1332_v23 }
 0x1f7   :  { %v1334_v42 = vpop.f32.mrf.mxu0 }
 0x1f8   :  { %v2332_v43 = vpack.c.bf16 %v1693_v39, %v1693_v39  ;;  %v1622_v44 = vadd.f32 %v1621_v1, %v1333_v40 }
 0x1f9   :  { %v1337_v41 = vpop.f32.mrf.mxu0 }
 0x1fa   :  { %2014 = vst.msk [vmem:[%s3486_s3 + $0xf0] sm:$0xf] %vm1953_vm1, %v2332_v43  ;;  %v1694_v46 = vmax.f32 %v1622_v44, 0.0  ;;  %v1338_v33 = vadd.f32 %v3407_v20, %v1337_v41 }
 0x1fb   :  { %v1339_v47 = vpop.f32.mrf.mxu0 }
 0x1fc   :  { %v2333_v48 = vpack.c.bf16 %v1694_v46, %v1694_v46  ;;  %v1627_v49 = vadd.f32 %v1626_v9, %v1338_v33 }
 0x1fd   :  { %v1340_v50 = vpop.f32.mrf.mxu0 }
 0x1fe   :  { %2015 = vst.msk [vmem:[%s3486_s3 + $0xf4] sm:$0xf] %vm1953_vm1, %v2333_v48  ;;  %v1695_v51 = vmax.f32 %v1627_v49, 0.0  ;;  %v1341_v52 = vadd.f32 %v3407_v20, %v1340_v50 }
 0x1ff   :  { %v1342_v54 = vpop.f32.mrf.mxu0 }
 0x200   :  { %v2334_v53 = vpack.c.bf16 %v1695_v51, %v1695_v51  ;;  %v1630_v55 = vadd.f32 %v1629_v19, %v1341_v52 }
 0x202   :  { %2016 = vst.msk [vmem:[%s3486_s3 + $0xf8] sm:$0xf] %vm1953_vm1, %v2334_v53  ;;  %v1696_v56 = vmax.f32 %v1630_v55, 0.0 }
 0x204   :  { %v2335_v58 = vpack.c.bf16 %v1696_v56, %v1696_v56 }
 0x206   :  { %2017 = vst.msk [vmem:[%s3486_s3 + $0xfc] sm:$0xf] %vm1953_vm1, %v2335_v58 }

// kernel: joint_embedding2_forward.9
= control target key start
LH: loop header
LB: loop body
LE: loop exit
PB: predicated region body
PF: predicated region fallthrough
CT: control target
= control target key end

     0   :  { %s3290_s0 = inlined_call_operand.vmem [shape: bf16[2,2048], index: 0, kind: input, shape index: {}]   ;;  %s3291_s1 = inlined_call_operand.vmem [shape: bf16[2048,32], index: 1, kind: input, shape index: {}]   ;;  %s3292_s2 = inlined_call_operand.vmem [shape: f32[1,32], index: 2, kind: input, shape index: {}]   ;;  %s3293_s3 = inlined_call_operand.vmem [shape: bf16[2,16], index: 3, kind: input, shape index: {}]   ;;  %s3294_s4 = inlined_call_operand.vmem [shape: bf16[16,32], index: 4, kind: input, shape index: {}]   ;;  %s3295_s5 = inlined_call_operand.vmem [shape: f32[1,32], index: 5, kind: input, shape index: {}]   ;;  %s3296_s6 = inlined_call_operand.vmem [shape: bf16[32,32], index: 6, kind: input, shape index: {}]   ;;  %s3297_s7 = inlined_call_operand.vmem [shape: f32[1,32], index: 7, kind: input, shape index: {}]   ;;  %s3298_s8 = inlined_call_operand.vmem [shape: bf16[2,16], index: 8, kind: input, shape index: {}]   ;;  %s3299_s9 = inlined_call_operand.vmem [shape: bf16[16,32], index: 9, kind: input, shape index: {}]   ;;  %s3300_s10 = inlined_call_operand.vmem [shape: f32[1,32], index: 10, kind: input, shape index: {}]   ;;  %s3301_s11 = inlined_call_operand.vmem [shape: bf16[32,32], index: 11, kind: input, shape index: {}]   ;;  %s3302_s12 = inlined_call_operand.vmem [shape: f32[1,32], index: 12, kind: input, shape index: {}]   ;;  %s3303_s13 = inlined_call_operand.vmem [shape: bf16[96,32], index: 13, kind: input, shape index: {}]   ;;  %s3304_s14 = inlined_call_operand.vmem [shape: f32[1,32], index: 14, kind: input, shape index: {}]   ;;  %s3305_s15 = inlined_call_operand.vmem [shape: bf16[32,32], index: 15, kind: input, shape index: {}]   ;;  %s3306_s16 = inlined_call_operand.vmem [shape: f32[1,32], index: 16, kind: input, shape index: {}]   ;;  %s3307_s17 = inlined_call_operand.hbm [shape: f32[2,32], index: 17, kind: output, shape index: {}]  }
   0x1   :  { %3310 = sst [smem:[#allocation5_spill]] %s3290_s0 }
   0x2   :  { %3311 = sst [smem:[#allocation6_spill]] %s3291_s1 }
   0x3   :  { %s3312_s26 = sld [smem:[#allocation6_spill]]  ;;  %v329_v27 = vlaneseq  ;;  %v2674_v35 = vmov 1966171168  }
   0x4   :  { %s3313_s19 = sld [smem:[#allocation5_spill]]  ;;  %v327_v36 = vunpack.c.l.s4 %v2674_v35 }
   0x5   :  { %v330_v32 = vshrl.u32 %v329_v27, 7 }
   0x6   :  { %v328_v39 = vunpack.c.0.s8 %v327_v36 }
   0x8   :  { %v2873_v41 = vsub.s32 %v328_v39, %v330_v32 }
   0x9   :  { %v2496_v0 = vld [vmem:[%s3312_s26 + $0x78] sm:$0xff]   ;;  %v2500_v4 = vld [vmem:[%s3312_s26 + $0x70] sm:$0xff]   ;;  %v2504_v8 = vld [vmem:[%s3312_s26 + $0x68] sm:$0xff]  }
   0xa   :  { %v2497_v1 = vld [vmem:[%s3312_s26 + $0x38] sm:$0xff]   ;;  %2234 = vmatprep.subr.bf16.mxu0 %v2496_v0  ;;  %v2501_v5 = vld [vmem:[%s3312_s26 + $0x30] sm:$0xff]   ;;  %v2505_v9 = vld [vmem:[%s3312_s26 + $0x28] sm:$0xff]  }
   0xb   :  { %v2498_v2 = vld [vmem:[%s3312_s26 + $0xf8] sm:$0xff]   ;;  %2235 = vmatpush3.bf16.msra.mxu0 %v2497_v1  ;;  %v2502_v6 = vld [vmem:[%s3312_s26 + $0xf0] sm:$0xff]   ;;  %v2506_v10 = vld [vmem:[%s3312_s26 + $0xe8] sm:$0xff]  }
   0xc   :  { %v2499_v3 = vld [vmem:[%s3312_s26 + $0xb8] sm:$0xff]   ;;  %2256 = vmatprep.subr.bf16.mxu1 %v2498_v2  ;;  %2236 = vmatprep.subr.bf16.mxu0 %v2500_v4  ;;  %v2503_v7 = vld [vmem:[%s3312_s26 + $0xb0] sm:$0xff]   ;;  %v2507_v11 = vld [vmem:[%s3312_s26 + $0xa8] sm:$0xff]  }
   0xd   :  { %2257 = vmatpush3.bf16.msra.mxu1 %v2499_v3  ;;  %v2508_v12 = vld [vmem:[%s3312_s26 + $0x60] sm:$0xff]   ;;  %v2512_v16 = vld [vmem:[%s3312_s26 + $0x58] sm:$0xff]   ;;  %v2516_v20 = vld [vmem:[%s3312_s26 + $0x50] sm:$0xff]  }
   0xe   :  { %2258 = vmatprep.subr.bf16.mxu1 %v2502_v6  ;;  %v2509_v13 = vld [vmem:[%s3312_s26 + $0x20] sm:$0xff]   ;;  %v2513_v17 = vld [vmem:[%s3312_s26 + $0x18] sm:$0xff]   ;;  %v2517_v21 = vld [vmem:[%s3312_s26 + $0x10] sm:$0xff]  }
   0xf   :  { %2237 = vmatpush3.bf16.msra.mxu0 %v2501_v5  ;;  %v2510_v14 = vld [vmem:[%s3312_s26 + $0xe0] sm:$0xff]   ;;  %v2514_v18 = vld [vmem:[%s3312_s26 + $0xd8] sm:$0xff]   ;;  %v2518_v22 = vld [vmem:[%s3312_s26 + $0xd0] sm:$0xff]  }
  0x10   :  { %2238 = vmatprep.subr.bf16.mxu0 %v2504_v8  ;;  %v2511_v15 = vld [vmem:[%s3312_s26 + $0xa0] sm:$0xff]   ;;  %v2515_v19 = vld [vmem:[%s3312_s26 + $0x98] sm:$0xff]   ;;  %v2519_v23 = vld [vmem:[%s3312_s26 + $0x90] sm:$0xff]  }
  0x11   :  { %2259 = vmatpush3.bf16.msra.mxu1 %v2503_v7  ;;  %v2520_v24 = vld [vmem:[%s3312_s26 + $0x48] sm:$0xff]   ;;  %v2524_v29 = vld [vmem:[%s3312_s26 + $0x40] sm:$0xff]   ;;  %v2529_v37 = vld [vmem:[%s3312_s26 + $0x178] sm:$0xff]  }
  0x12   :  { %2260 = vmatprep.subr.bf16.mxu1 %v2506_v10  ;;  %v2521_v25 = vld [vmem:[%s3312_s26 + $0x8] sm:$0xff]   ;;  %v2525_v30 = vld [vmem:[%s3312_s26] sm:$0xff]   ;;  %v2531_v40 = vld [vmem:[%s3312_s26 + $0x1f8] sm:$0xff]  }
  0x13   :  { %2239 = vmatpush3.bf16.msra.mxu0 %v2505_v9  ;;  %v2522_v26 = vld [vmem:[%s3312_s26 + $0xc8] sm:$0xff]   ;;  %v2526_v31 = vld [vmem:[%s3312_s26 + $0xc0] sm:$0xff]   ;;  %v2530_v48 = vld [vmem:[%s3312_s26 + $0x138] sm:$0xff]  }
  0x14   :  { %2240 = vmatprep.subr.bf16.mxu0 %v2508_v12  ;;  %v2523_v28 = vld [vmem:[%s3312_s26 + $0x88] sm:$0xff]   ;;  %v58_v33 = vld [vmem:[%s3313_s19] sm:$0xff]  ;;  %v2533_v51 = vld [vmem:[%s3312_s26 + $0x170] sm:$0xff]  }
  0x15   :  { %2261 = vmatpush3.bf16.msra.mxu1 %v2507_v11  ;;  %v2528_v34 = vld [vmem:[%s3312_s26 + $0x80] sm:$0xff]   ;;  %v325_v38 = vcombine.high %v58_v33, %v58_v33  ;;  %v332_v42 = vrot.slane %v58_v33, %v2873_v41  ;;  %v2532_v53 = vld [vmem:[%s3312_s26 + $0x1b8] sm:$0xff]   ;;  %v2535_v54 = vld [vmem:[%s3312_s26 + $0x1f0] sm:$0xff]  }
  0x16   :  { %2262 = vmatprep.subr.bf16.mxu1 %v2510_v14  ;;  %v2534_v56 = vld [vmem:[%s3312_s26 + $0x130] sm:$0xff]   ;;  %v2537_v57 = vld [vmem:[%s3312_s26 + $0x168] sm:$0xff]   ;;  %v2541_v61 = vld [vmem:[%s3312_s26 + $0x160] sm:$0xff]  }
  0x17   :  { %2241 = vmatpush3.bf16.msra.mxu0 %v2509_v13  ;;  %v2877_v43 = vrot.slane %v325_v38, %v2873_v41  ;;  %v340_v44 = vcombine.high %v332_v42, %v332_v42  ;;  %v348_v45 = vrot.slane %v332_v42, %v2873_v41  ;;  %v2536_v58 = vld [vmem:[%s3312_s26 + $0x1b0] sm:$0xff]   ;;  %v2539_v59 = vld [vmem:[%s3312_s26 + $0x1e8] sm:$0xff]   ;;  %v2543_v63 = vld [vmem:[%s3312_s26 + $0x1e0] sm:$0xff]  }
  0x18   :  { %2242 = vmatprep.subr.bf16.mxu0 %v2512_v16  ;;  %v2538_v60 = vld [vmem:[%s3312_s26 + $0x128] sm:$0xff]   ;;  %v2542_v0 = vld [vmem:[%s3312_s26 + $0x120] sm:$0xff]   ;;  %v2545_v1 = vld [vmem:[%s3312_s26 + $0x158] sm:$0xff]  }
  0x19   :  { %2263 = vmatpush3.bf16.msra.mxu1 %v2511_v15  ;;  %v341_v46 = vcombine.high %v2877_v43, %v2877_v43  ;;  %v362_v47 = vrot.slane %v340_v44, %v2873_v41  ;;  %v370_v50 = vcombine.high %v348_v45, %v348_v45  ;;  %v2540_v62 = vld [vmem:[%s3312_s26 + $0x1a8] sm:$0xff]   ;;  %v2544_v2 = vld [vmem:[%s3312_s26 + $0x1a0] sm:$0xff]   ;;  %v2547_v3 = vld [vmem:[%s3312_s26 + $0x1d8] sm:$0xff]  }
  0x1a   :  { %2264 = vmatprep.subr.bf16.mxu1 %v2514_v18  ;;  %v2546_v4 = vld [vmem:[%s3312_s26 + $0x118] sm:$0xff]   ;;  %v2549_v5 = vld [vmem:[%s3312_s26 + $0x150] sm:$0xff]   ;;  %v2553_v9 = vld [vmem:[%s3312_s26 + $0x148] sm:$0xff]  }
  0x1b   :  { %2243 = vmatpush3.bf16.msra.mxu0 %v2513_v17  ;;  %v369_v49 = vrot.slane %v341_v46, %v2873_v41  ;;  %1239 = vmatprep.mubr.bf16.mxu0 %v362_v47  ;;  %v372_v52 = vcombine.high %v362_v47, %v362_v47  ;;  %v2548_v6 = vld [vmem:[%s3312_s26 + $0x198] sm:$0xff]   ;;  %v2551_v7 = vld [vmem:[%s3312_s26 + $0x1d0] sm:$0xff]   ;;  %v2555_v11 = vld [vmem:[%s3312_s26 + $0x1c8] sm:$0xff]   ;;  %v355_v17 = vrot.slane %v2877_v43, %v2873_v41 }
  0x1c   :  { %2244 = vmatprep.subr.bf16.mxu0 %v2516_v20  ;;  %v2550_v8 = vld [vmem:[%s3312_s26 + $0x110] sm:$0xff]   ;;  %v2554_v12 = vld [vmem:[%s3312_s26 + $0x108] sm:$0xff]   ;;  %v2557_v13 = vld [vmem:[%s3312_s26 + $0x140] sm:$0xff]  }
  0x1d   :  { %2265 = vmatpush3.bf16.msra.mxu1 %v2515_v19  ;;  %v373_v55 = vcombine.high %v369_v49, %v369_v49  ;;  %1279 = vmatprep.mubr.bf16.mxu1 %v372_v52  ;;  %v2552_v10 = vld [vmem:[%s3312_s26 + $0x190] sm:$0xff]   ;;  %v2556_v14 = vld [vmem:[%s3312_s26 + $0x188] sm:$0xff]   ;;  %v2559_v15 = vld [vmem:[%s3312_s26 + $0x1c0] sm:$0xff]  }
  0x1e   :  { %2266 = vmatprep.subr.bf16.mxu1 %v2518_v22  ;;  %v2558_v16 = vld [vmem:[%s3312_s26 + $0x100] sm:$0xff]   ;;  %v2561_v18 = vld [vmem:[%s3312_s26 + $0x278] sm:$0xff]   ;;  %v371_v22 = vcombine.high %v355_v17, %v355_v17  ;;  %v2569_v27 = vld [vmem:[%s3312_s26 + $0x268] sm:$0xff]  }
  0x1f   :  { %2245 = vmatpush3.bf16.msra.mxu0 %v2517_v21  ;;  %v2560_v19 = vld [vmem:[%s3312_s26 + $0x180] sm:$0xff]   ;;  %v2563_v20 = vld [vmem:[%s3312_s26 + $0x2f8] sm:$0xff]   ;;  %v2572_v32 = vld [vmem:[%s3312_s26 + $0x2a8] sm:$0xff]  }
  0x20   :  { %2246 = vmatprep.subr.bf16.mxu0 %v2520_v24  ;;  %v2562_v21 = vld [vmem:[%s3312_s26 + $0x238] sm:$0xff]   ;;  %v2575_v33 = vld [vmem:[%s3312_s26 + $0x2e0] sm:$0xff]   ;;  %v2581_v39 = vld [vmem:[%s3312_s26 + $0x250] sm:$0xff]  }
  0x21   :  { %2267 = vmatpush3.bf16.msra.mxu1 %v2519_v23  ;;  %v2565_v23 = vld [vmem:[%s3312_s26 + $0x270] sm:$0xff]   ;;  %v2564_v24 = vld [vmem:[%s3312_s26 + $0x2b8] sm:$0xff]   ;;  %v2576_v36 = vld [vmem:[%s3312_s26 + $0x2a0] sm:$0xff]  }
  0x22   :  { %2268 = vmatprep.subr.bf16.mxu1 %v2522_v26  ;;  %v2566_v26 = vld [vmem:[%s3312_s26 + $0x230] sm:$0xff]   ;;  %v2577_v35 = vld [vmem:[%s3312_s26 + $0x258] sm:$0xff]   ;;  %v2585_v44 = vld [vmem:[%s3312_s26 + $0x248] sm:$0xff]  }
  0x23   :  { %2247 = vmatpush3.bf16.msra.mxu0 %v2521_v25  ;;  %v2567_v25 = vld [vmem:[%s3312_s26 + $0x2f0] sm:$0xff]   ;;  %v2578_v38 = vld [vmem:[%s3312_s26 + $0x218] sm:$0xff]  }
  0x24   :  { %2248 = vmatprep.subr.bf16.mxu0 %v2524_v29  ;;  %v2571_v29 = vld [vmem:[%s3312_s26 + $0x2e8] sm:$0xff]   ;;  %v2583_v42 = vld [vmem:[%s3312_s26 + $0x2d0] sm:$0xff]  }
  0x25   :  { %2269 = vmatpush3.bf16.msra.mxu1 %v2523_v28  ;;  %v2568_v28 = vld [vmem:[%s3312_s26 + $0x2b0] sm:$0xff]  }
  0x26   :  { %2270 = vmatprep.subr.bf16.mxu1 %v2526_v31  ;;  %v2573_v31 = vld [vmem:[%s3312_s26 + $0x260] sm:$0xff]   ;;  %v2582_v43 = vld [vmem:[%s3312_s26 + $0x210] sm:$0xff]  }
  0x27   :  { %2249 = vmatpush3.bf16.msra.mxu0 %v2525_v30  ;;  %v2570_v30 = vld [vmem:[%s3312_s26 + $0x228] sm:$0xff]   ;;  %v2584_v46 = vld [vmem:[%s3312_s26 + $0x290] sm:$0xff]  }
  0x28   :  { %2278 = vmatprep.subr.bf16.mxu0 %v2529_v37  ;;  %v2579_v37 = vld [vmem:[%s3312_s26 + $0x2d8] sm:$0xff]  }
  0x29   :  { %2271 = vmatpush3.bf16.msra.mxu1 %v2528_v34  ;;  %v2574_v34 = vld [vmem:[%s3312_s26 + $0x220] sm:$0xff]  }
  0x2a   :  { %2300 = vmatprep.subr.bf16.mxu1 %v2531_v40  ;;  %1240 = vmatmul.mubr.bf16.vlgmr.msra.gmra.mxu0 %v348_v45  ;;  %v2580_v40 = vld [vmem:[%s3312_s26 + $0x298] sm:$0xff]   ;;  %v59_v45 = vld [vmem:[%s3313_s19 + $0x8] sm:$0xff] }
  0x2b   :  { %2279 = vmatpush3.bf16.msra.mxu0 %v2530_v48  ;;  %1319 = vmatprep.mubr.bf16.mxu0 %v369_v49  ;;  %v381_v47 = vrot.slane %v59_v45, %v2873_v41  ;;  %v374_v48 = vcombine.high %v59_v45, %v59_v45  ;;  %v2587_v49 = vld [vmem:[%s3312_s26 + $0x2c8] sm:$0xff]  }
  0x2c   :  { %1280 = vmatmul.mubr.bf16.vlgmr.msra.gmra.mxu1 %v370_v50  ;;  %2280 = vmatprep.subr.bf16.mxu0 %v2533_v51  ;;  %v2586_v50 = vld [vmem:[%s3312_s26 + $0x208] sm:$0xff]  }
  0x2d   :  { %2301 = vmatpush3.bf16.msra.mxu1 %v2532_v53  ;;  %1359 = vmatprep.mubr.bf16.mxu1 %v373_v55  ;;  %v389_v51 = vcombine.high %v381_v47, %v381_v47  ;;  %v3062_v52 = vrot.slane %v374_v48, %v2873_v41  ;;  %v2589_v53 = vld [vmem:[%s3312_s26 + $0x240] sm:$0xff]  }
  0x2e   :  { %2302 = vmatprep.subr.bf16.mxu1 %v2535_v54  ;;  %v2588_v54 = vld [vmem:[%s3312_s26 + $0x288] sm:$0xff]  }
  0x2f   :  { %2281 = vmatpush3.bf16.msra.mxu0 %v2534_v56  ;;  %v411_v55 = vrot.slane %v389_v51, %v2873_v41  ;;  %v390_v56 = vcombine.high %v3062_v52, %v3062_v52 }
  0x30   :  { %2282 = vmatprep.subr.bf16.mxu0 %v2537_v57  ;;  %v2591_v57 = vld [vmem:[%s3312_s26 + $0x2c0] sm:$0xff]  }
  0x31   :  { %2303 = vmatpush3.bf16.msra.mxu1 %v2536_v58  ;;  %v2590_v58 = vld [vmem:[%s3312_s26 + $0x200] sm:$0xff]  }
  0x32   :  { %2304 = vmatprep.subr.bf16.mxu1 %v2539_v59  ;;  %v421_v59 = vcombine.high %v411_v55, %v411_v55 }
  0x33   :  { %2283 = vmatpush3.bf16.msra.mxu0 %v2538_v60  ;;  %v397_v60 = vrot.slane %v381_v47, %v2873_v41 }
  0x34   :  { %2284 = vmatprep.subr.bf16.mxu0 %v2541_v61  ;;  %v2593_v61 = vld [vmem:[%s3312_s26 + $0x378] sm:$0xff]  }
  0x35   :  { %2305 = vmatpush3.bf16.msra.mxu1 %v2540_v62  ;;  %v2592_v62 = vld [vmem:[%s3312_s26 + $0x280] sm:$0xff]  }
  0x36   :  { %2306 = vmatprep.subr.bf16.mxu1 %v2543_v63  ;;  %v418_v63 = vrot.slane %v390_v56, %v2873_v41 }
  0x37   :  { %2285 = vmatpush3.bf16.msra.mxu0 %v2542_v0  ;;  %v2595_v0 = vld [vmem:[%s3312_s26 + $0x3f8] sm:$0xff]  }
  0x38   :  { %2286 = vmatprep.subr.bf16.mxu0 %v2545_v1  ;;  %v2594_v1 = vld [vmem:[%s3312_s26 + $0x338] sm:$0xff]  }
  0x39   :  { %2307 = vmatpush3.bf16.msra.mxu1 %v2544_v2  ;;  %v419_v2 = vcombine.high %v397_v60, %v397_v60 }
  0x3a   :  { %2308 = vmatprep.subr.bf16.mxu1 %v2547_v3  ;;  %v2597_v3 = vld [vmem:[%s3312_s26 + $0x370] sm:$0xff]  }
  0x3b   :  { %2287 = vmatpush3.bf16.msra.mxu0 %v2546_v4  ;;  %v2596_v4 = vld [vmem:[%s3312_s26 + $0x3b8] sm:$0xff]  }
  0x3c   :  { %2288 = vmatprep.subr.bf16.mxu0 %v2549_v5  ;;  %v422_v5 = vcombine.high %v418_v63, %v418_v63 }
  0x3d   :  { %2309 = vmatpush3.bf16.msra.mxu1 %v2548_v6  ;;  %v2599_v6 = vld [vmem:[%s3312_s26 + $0x3f0] sm:$0xff]  }
  0x3e   :  { %2310 = vmatprep.subr.bf16.mxu1 %v2551_v7  ;;  %v2598_v7 = vld [vmem:[%s3312_s26 + $0x330] sm:$0xff]  }
  0x3f   :  { %2289 = vmatpush3.bf16.msra.mxu0 %v2550_v8  ;;  %v2601_v8 = vld [vmem:[%s3312_s26 + $0x368] sm:$0xff]  }
  0x40   :  { %2290 = vmatprep.subr.bf16.mxu0 %v2553_v9  ;;  %v2600_v9 = vld [vmem:[%s3312_s26 + $0x3b0] sm:$0xff]  }
  0x41   :  { %2311 = vmatpush3.bf16.msra.mxu1 %v2552_v10  ;;  %v2603_v10 = vld [vmem:[%s3312_s26 + $0x3e8] sm:$0xff]  }
  0x42   :  { %2312 = vmatprep.subr.bf16.mxu1 %v2555_v11  ;;  %v2602_v11 = vld [vmem:[%s3312_s26 + $0x328] sm:$0xff]  }
  0x43   :  { %2291 = vmatpush3.bf16.msra.mxu0 %v2554_v12  ;;  %v2605_v12 = vld [vmem:[%s3312_s26 + $0x360] sm:$0xff]  }
  0x44   :  { %2292 = vmatprep.subr.bf16.mxu0 %v2557_v13  ;;  %v2604_v13 = vld [vmem:[%s3312_s26 + $0x3a8] sm:$0xff]  }
  0x45   :  { %2313 = vmatpush3.bf16.msra.mxu1 %v2556_v14  ;;  %v2607_v14 = vld [vmem:[%s3312_s26 + $0x3e0] sm:$0xff]  }
  0x46   :  { %2314 = vmatprep.subr.bf16.mxu1 %v2559_v15  ;;  %v2606_v15 = vld [vmem:[%s3312_s26 + $0x320] sm:$0xff]  }
  0x47   :  { %2293 = vmatpush3.bf16.msra.mxu0 %v2558_v16  ;;  %v2609_v16 = vld [vmem:[%s3312_s26 + $0x358] sm:$0xff]  }
  0x48   :  { %2322 = vmatprep.subr.bf16.mxu0 %v2561_v18  ;;  %v2611_v18 = vld [vmem:[%s3312_s26 + $0x3d8] sm:$0xff]  }
  0x49   :  { %2315 = vmatpush3.bf16.msra.mxu1 %v2560_v19  ;;  %v2610_v19 = vld [vmem:[%s3312_s26 + $0x318] sm:$0xff]  }
  0x4a   :  { %1320 = vmatmul.mubr.bf16.vlgmr.msra.gmra.mxu0 %v355_v17  ;;  %2344 = vmatprep.subr.bf16.mxu1 %v2563_v20  ;;  %v2608_v17 = vld [vmem:[%s3312_s26 + $0x3a0] sm:$0xff]   ;;  %v2613_v20 = vld [vmem:[%s3312_s26 + $0x350] sm:$0xff]  }
  0x4b   :  { %2323 = vmatpush3.bf16.msra.mxu0 %v2562_v21  ;;  %1399 = vmatprep.mubr.bf16.mxu0 %v411_v55  ;;  %v2612_v21 = vld [vmem:[%s3312_s26 + $0x398] sm:$0xff]  }
  0x4c   :  { %1360 = vmatmul.mubr.bf16.vlgmr.msra.gmra.mxu1 %v371_v22  ;;  %2324 = vmatprep.subr.bf16.mxu0 %v2565_v23  ;;  %v2615_v22 = vld [vmem:[%s3312_s26 + $0x3d0] sm:$0xff]  }
  0x4d   :  { %2345 = vmatpush3.bf16.msra.mxu1 %v2564_v24  ;;  %1439 = vmatprep.mubr.bf16.mxu1 %v421_v59  ;;  %v2614_v23 = vld [vmem:[%s3312_s26 + $0x310] sm:$0xff]   ;;  %v2617_v24 = vld [vmem:[%s3312_s26 + $0x348] sm:$0xff]  }
  0x4e   :  { %2346 = vmatprep.subr.bf16.mxu1 %v2567_v25  ;;  %v2616_v25 = vld [vmem:[%s3312_s26 + $0x390] sm:$0xff]  }
  0x4f   :  { %2325 = vmatpush3.bf16.msra.mxu0 %v2566_v26  ;;  %v2618_v26 = vld [vmem:[%s3312_s26 + $0x308] sm:$0xff]  }
  0x50   :  { %2326 = vmatprep.subr.bf16.mxu0 %v2569_v27  ;;  %v2619_v27 = vld [vmem:[%s3312_s26 + $0x3c8] sm:$0xff]  }
  0x51   :  { %2347 = vmatpush3.bf16.msra.mxu1 %v2568_v28  ;;  %v2620_v28 = vld [vmem:[%s3312_s26 + $0x388] sm:$0xff]  }
  0x52   :  { %2348 = vmatprep.subr.bf16.mxu1 %v2571_v29  ;;  %v2621_v29 = vld [vmem:[%s3312_s26 + $0x340] sm:$0xff]  }
  0x53   :  { %2327 = vmatpush3.bf16.msra.mxu0 %v2570_v30  ;;  %v2623_v30 = vld [vmem:[%s3312_s26 + $0x3c0] sm:$0xff]  }
  0x54   :  { %2328 = vmatprep.subr.bf16.mxu0 %v2573_v31  ;;  %v2622_v31 = vld [vmem:[%s3312_s26 + $0x300] sm:$0xff]  }
  0x55   :  { %2349 = vmatpush3.bf16.msra.mxu1 %v2572_v32  ;;  %v2625_v32 = vld [vmem:[%s3312_s26 + $0x380] sm:$0xff]  }
  0x56   :  { %2350 = vmatprep.subr.bf16.mxu1 %v2575_v33  ;;  %v404_v33 = vrot.slane %v3062_v52, %v2873_v41 }
  0x57   :  { %2329 = vmatpush3.bf16.msra.mxu0 %v2574_v34  ;;  %v2626_v34 = vld [vmem:[%s3294_s4] sm:$0xff]  }
  0x58   :  { %2330 = vmatprep.subr.bf16.mxu0 %v2577_v35  ;;  %v2675_v35 = vmov 0.0  }
  0x59   :  { %2351 = vmatpush3.bf16.msra.mxu1 %v2576_v36  ;;  %v420_v36 = vcombine.high %v404_v33, %v404_v33 }
  0x5a   :  { %2352 = vmatprep.subr.bf16.mxu1 %v2579_v37 }
  0x5b   :  { %2331 = vmatpush3.bf16.msra.mxu0 %v2578_v38 }
  0x5c   :  { %2332 = vmatprep.subr.bf16.mxu0 %v2581_v39 }
  0x5d   :  { %2353 = vmatpush3.bf16.msra.mxu1 %v2580_v40 }
  0x5e   :  { %2354 = vmatprep.subr.bf16.mxu1 %v2583_v42 }
  0x5f   :  { %2333 = vmatpush3.bf16.msra.mxu0 %v2582_v43 }
  0x60   :  { %2334 = vmatprep.subr.bf16.mxu0 %v2585_v44 }
  0x61   :  { %2355 = vmatpush3.bf16.msra.mxu1 %v2584_v46 }
  0x62   :  { %2356 = vmatprep.subr.bf16.mxu1 %v2587_v49 }
  0x63   :  { %2335 = vmatpush3.bf16.msra.mxu0 %v2586_v50 }
  0x64   :  { %2336 = vmatprep.subr.bf16.mxu0 %v2589_v53 }
  0x65   :  { %2357 = vmatpush3.bf16.msra.mxu1 %v2588_v54 }
  0x66   :  { %2358 = vmatprep.subr.bf16.mxu1 %v2591_v57 }
  0x67   :  { %2337 = vmatpush3.bf16.msra.mxu0 %v2590_v58 }
  0x68   :  { %2366 = vmatprep.subr.bf16.mxu0 %v2593_v61 }
  0x69   :  { %2359 = vmatpush3.bf16.msra.mxu1 %v2592_v62 }
  0x6a   :  { %1400 = vmatmul.mubr.bf16.vlgmr.msra.gmra.mxu0 %v397_v60  ;;  %2388 = vmatprep.subr.bf16.mxu1 %v2595_v0 }
  0x6b   :  { %2367 = vmatpush3.bf16.msra.mxu0 %v2594_v1  ;;  %1479 = vmatprep.mubr.bf16.mxu0 %v418_v63 }
  0x6c   :  { %1440 = vmatmul.mubr.bf16.vlgmr.msra.gmra.mxu1 %v419_v2  ;;  %2368 = vmatprep.subr.bf16.mxu0 %v2597_v3 }
  0x6d   :  { %2389 = vmatpush3.bf16.msra.mxu1 %v2596_v4  ;;  %1519 = vmatprep.mubr.bf16.mxu1 %v422_v5 }
  0x6e   :  { %2390 = vmatprep.subr.bf16.mxu1 %v2599_v6 }
  0x6f   :  { %2369 = vmatpush3.bf16.msra.mxu0 %v2598_v7 }
  0x70   :  { %2370 = vmatprep.subr.bf16.mxu0 %v2601_v8 }
  0x71   :  { %2391 = vmatpush3.bf16.msra.mxu1 %v2600_v9 }
  0x72   :  { %2392 = vmatprep.subr.bf16.mxu1 %v2603_v10 }
  0x73   :  { %2371 = vmatpush3.bf16.msra.mxu0 %v2602_v11 }
  0x74   :  { %2372 = vmatprep.subr.bf16.mxu0 %v2605_v12 }
  0x75   :  { %2393 = vmatpush3.bf16.msra.mxu1 %v2604_v13 }
  0x76   :  { %2394 = vmatprep.subr.bf16.mxu1 %v2607_v14 }
  0x77   :  { %2373 = vmatpush3.bf16.msra.mxu0 %v2606_v15 }
  0x78   :  { %2374 = vmatprep.subr.bf16.mxu0 %v2609_v16 }
  0x79   :  { %2395 = vmatpush3.bf16.msra.mxu1 %v2608_v17 }
  0x7a   :  { %2396 = vmatprep.subr.bf16.mxu1 %v2611_v18 }
  0x7b   :  { %2375 = vmatpush3.bf16.msra.mxu0 %v2610_v19 }
  0x7c   :  { %2376 = vmatprep.subr.bf16.mxu0 %v2613_v20 }
  0x7d   :  { %2397 = vmatpush3.bf16.msra.mxu1 %v2612_v21 }
  0x7e   :  { %2398 = vmatprep.subr.bf16.mxu1 %v2615_v22 }
  0x7f   :  { %2377 = vmatpush3.bf16.msra.mxu0 %v2614_v23 }
  0x80   :  { %2378 = vmatprep.subr.bf16.mxu0 %v2617_v24 }
  0x81   :  { %2399 = vmatpush3.bf16.msra.mxu1 %v2616_v25 }
  0x82   :  { %2400 = vmatprep.subr.bf16.mxu1 %v2619_v27 }
  0x83   :  { %2379 = vmatpush3.bf16.msra.mxu0 %v2618_v26 }
  0x84   :  { %2380 = vmatprep.subr.bf16.mxu0 %v2621_v29 }
  0x85   :  { %2401 = vmatpush3.bf16.msra.mxu1 %v2620_v28 }
  0x86   :  { %2402 = vmatprep.subr.bf16.mxu1 %v2623_v30 }
  0x87   :  { %2381 = vmatpush3.bf16.msra.mxu0 %v2622_v31 }
  0x88   :  { %2432 = vmatprep.subr.bf16.mxu0 %v2675_v35 }
  0x89   :  { %22 = vsyncpa [#allocation3], 0  ;;  %2403 = vmatpush3.bf16.msra.mxu1 %v2625_v32  ;;  %vm2676_vm0 = vmmov 0   ;;  %v1527_v41 = vld [vmem:[%s3293_s3] sm:$0x1]  ;;  %vm1543_vm1 = vcmask 130048  }
  0x8a   :  { %1480 = vmatmul.mubr.bf16.vlgmr.msra.gmra.mxu0 %v404_v33  ;;  %2438 = vmatprep.subr.bf16.mxu1 %v2675_v35  ;;  %v2627_v37 = vld [vmem:[%s3299_s9] sm:$0xff]   ;;  %v2628_v51 = vld [vmem:[%s3296_s6 + $0x8] sm:$0xff]   ;;  %v2634_v55 = vld [vmem:[%s3303_s13 + $0x18] sm:$0xff]   ;;  %vm1618_vm2 = vcmask 261120   ;;  %vm2058_vm3 = vcmask 254976  }
  0x8b   :  { %2433 = vmatpush3.bf16.msra.mxu0 %v2626_v34  ;;  %2434 = vmatprep.mubr.msk.bf16.mxu0 %vm2676_vm0, %v2675_v35  ;;  %v1662_v38 = vld [vmem:[%s3298_s8] sm:$0x1] }
  0x8c   :  { %1520 = vmatmul.mubr.bf16.vlgmr.msra.gmra.mxu1 %v420_v36  ;;  %2446 = vmatprep.subr.bf16.mxu0 %v2675_v35  ;;  %v2074_v40 = vld [vmem:[%s3292_s2] ss:$0 sm:$0xff] }
  0x8d   :  { %2442 = vmatprep.mubr.msk.bf16.mxu1 %vm2676_vm0, %v2675_v35  ;;  %2439 = vmatpush3.bf16.msra.mxu1 %v2628_v51  ;;  %v2629_v54 = vld [vmem:[%s3296_s6] sm:$0xff]   ;;  %v2632_v51 = vld [vmem:[%s3303_s13 + $0x8] sm:$0xff]  }
  0x8e   :  { %2440 = vmatprep.subr.bf16.mxu1 %v2675_v35  ;;  %v2203_v22 = vld [vmem:[%s3295_s5] ss:$0 sm:$0xff] }
  0x8f   :  { %v2211_v31 = vld [vmem:[%s3300_s10] ss:$0 sm:$0xff] }
  0x91   :  { %2441 = vmatpush3.bf16.msra.mxu1 %v2629_v54 }
  0x92   :  { %2435 = vmatmul.mubr.msk.bf16.vlgmr.msra.gmra.mxu0 %vm1543_vm1, %v1527_v41  ;;  %2452 = vmatprep.subr.bf16.mxu1 %v2675_v35 }
  0x93   :  { %2447 = vmatpush3.bf16.msra.mxu0 %v2627_v37  ;;  %2448 = vmatprep.mubr.msk.bf16.mxu0 %vm2676_vm0, %v2675_v35 }
  0x94   :  { %2460 = vmatprep.subr.bf16.mxu0 %v2675_v35 }
  0x9a   :  { %2449 = vmatmul.mubr.msk.bf16.vlgmr.msra.gmra.mxu0 %vm1543_vm1, %v1662_v38 }
  0x9b   :  { %2464 = vmatprep.mubr.msk.bf16.mxu0 %vm2676_vm0, %v2675_v35  ;;  %2461 = vmatpush3.bf16.msra.mxu0 %v2634_v55  ;;  %v2633_v55 = vld [vmem:[%s3303_s13] sm:$0xff]  }
  0x9c   :  { %2462 = vmatprep.subr.bf16.mxu0 %v2675_v35 }
  0xea   :  { %v2250_v39 = vpop.f32.mrf.mxu0 }
  0xec   :  { %v2251_v42 = vpop.f32.mrf.mxu0  ;;  %v2272_v43 = vpop.f32.mrf.mxu1 }
  0xed   :  { %v2252_v44 = vadd.f32 %v2251_v42, %v2250_v39 }
  0xee   :  { %v2253_v45 = vpop.f32.mrf.mxu0  ;;  %v2273_v46 = vpop.f32.mrf.mxu1 }
  0xef   :  { %v1242_v47 = vadd.f32 %v2252_v44, %v2074_v40  ;;  %v2274_v48 = vadd.f32 %v2273_v46, %v2272_v43  ;;  %v2630_v45 = vld [vmem:[%s3301_s11 + $0x8] sm:$0xff]  }
  0xf0   :  { %v2254_v49 = vpop.f32.mrf.mxu0  ;;  %v2275_v50 = vpop.f32.mrf.mxu1 }
  0xf1   :  { %v1282_v52 = vadd.f32 %v2274_v48, %v1242_v47  ;;  %v2631_v47 = vld [vmem:[%s3301_s11] sm:$0xff]  }
  0xf2   :  { %v2276_v53 = vpop.f32.mrf.mxu1 }
 0x10a   :  { %v2294_v56 = vpop.f32.mrf.mxu0 }
 0x10c   :  { %v2295_v57 = vpop.f32.mrf.mxu0  ;;  %v2316_v58 = vpop.f32.mrf.mxu1 }
 0x10d   :  { %v2296_v59 = vadd.f32 %v2295_v57, %v2294_v56 }
 0x10e   :  { %v2297_v60 = vpop.f32.mrf.mxu0  ;;  %v2317_v61 = vpop.f32.mrf.mxu1 }
 0x10f   :  { %v1322_v62 = vadd.f32 %v2296_v59, %v1282_v52  ;;  %v2318_v63 = vadd.f32 %v2317_v61, %v2316_v58  ;;  %v2635_v58 = vld [vmem:[%s3303_s13 + $0x10] sm:$0xff]   ;;  %v2207_v59 = vld [vmem:[%s3297_s7] ss:$0 sm:$0xff] }
 0x110   :  { %v2298_v0 = vpop.f32.mrf.mxu0  ;;  %v2319_v1 = vpop.f32.mrf.mxu1  ;;  %2463 = vmatpush3.bf16.msra.mxu0 %v2635_v58 }
 0x111   :  { %v1362_v2 = vadd.f32 %v2318_v63, %v1322_v62  ;;  %2476 = vmatprep.subr.bf16.mxu0 %v2675_v35  ;;  %v2636_v63 = vld [vmem:[%s3303_s13 + $0x28] sm:$0xff]  }
 0x112   :  { %v2320_v3 = vpop.f32.mrf.mxu1 }
 0x113   :  { %v2215_v3 = vld [vmem:[%s3302_s12] ss:$0 sm:$0xff] }
 0x12a   :  { %v2338_v4 = vpop.f32.mrf.mxu0 }
 0x12c   :  { %v2339_v5 = vpop.f32.mrf.mxu0  ;;  %v2360_v6 = vpop.f32.mrf.mxu1 }
 0x12d   :  { %v2340_v7 = vadd.f32 %v2339_v5, %v2338_v4  ;;  %v2637_v4 = vld [vmem:[%s3303_s13 + $0x20] sm:$0xff]  }
 0x12e   :  { %v2341_v8 = vpop.f32.mrf.mxu0  ;;  %v2361_v9 = vpop.f32.mrf.mxu1 }
 0x12f   :  { %v1402_v10 = vadd.f32 %v2340_v7, %v1362_v2  ;;  %v2362_v11 = vadd.f32 %v2361_v9, %v2360_v6 }
 0x130   :  { %v2342_v12 = vpop.f32.mrf.mxu0  ;;  %v2363_v13 = vpop.f32.mrf.mxu1 }
 0x131   :  { %v1442_v14 = vadd.f32 %v2362_v11, %v1402_v10 }
 0x132   :  { %v2364_v15 = vpop.f32.mrf.mxu1 }
 0x133   :  { %v2638_v15 = vld [vmem:[%s3305_s15 + $0x8] sm:$0xff]  }
 0x14a   :  { %v2382_v16 = vpop.f32.mrf.mxu0 }
 0x14c   :  { %v2383_v17 = vpop.f32.mrf.mxu0  ;;  %v2404_v18 = vpop.f32.mrf.mxu1 }
 0x14d   :  { %v2384_v48 = vadd.f32 %v2383_v17, %v2382_v16  ;;  %v2639_v16 = vld [vmem:[%s3305_s15] sm:$0xff]  }
 0x14e   :  { %v2385_v19 = vpop.f32.mrf.mxu0  ;;  %v2405_v20 = vpop.f32.mrf.mxu1 }
 0x14f   :  { %v1482_v52 = vadd.f32 %v2384_v48, %v1442_v14  ;;  %v2406_v53 = vadd.f32 %v2405_v20, %v2404_v18 }
 0x150   :  { %v2386_v21 = vpop.f32.mrf.mxu0  ;;  %v2407_v23 = vpop.f32.mrf.mxu1 }
 0x151   :  { %v1522_v56 = vadd.f32 %v2406_v53, %v1482_v52  ;;  %v2228_v23 = vld [vmem:[%s3304_s14] ss:$0 sm:$0xff]  ;;  %s2677_s14 = smov [#allocation2]  }
 0x152   :  { %v1581_v24 = vpop.f32.mrf.mxu0  ;;  %v2408_v25 = vpop.f32.mrf.mxu1  ;;  %s2066_s24 = sshll.u32 %s2677_s14, 4  ;;  %s2067_s24 = int_to_ptr.vmem [resolvable:$true] %s2066_s24 }
 0x153   :  { %v1582_v26 = vadd.f32 %v2203_v22, %v1581_v24  ;;  %v1795_v57 = vpack.c.bf16 %v1522_v56, %v1522_v56  ;;  %s2652_s25 = scalar_lea.vmem %s2067_s24, 32  ;;  %p2657_p1 = scmp.lt.s32.totalorder %s2067_s24, %s2067_s24 }
 0x154   :  { %v2436_v27 = vpop.f32.mrf.mxu0  ;;  %p2653_p0 = scmp.ne.s32.totalorder %s2067_s24, %s2652_s25  ;;  %p2658_p2 = scmp.lt.s32.totalorder %s2652_s25, %s2652_s25 }
 0x155   :  { %v2206_v28 = vmul.f32 -1.442695, %v1582_v26 }
 0x156   :  { %v1584_v29 = vpop.f32.mrf.mxu0  ;;  %p2659_p3 = por %p2658_p2, %p2657_p1 }
 0x157   :  { %2640 = vpow2.f32 %v2206_v28 }
 0x158   :  { %v2437_v30 = vpop.f32.mrf.mxu0  ;;  %p2660_p4 = pnand %p2659_p3, %p2653_p0 }
 0x15a   :  { %v1715_v32 = vpop.f32.mrf.mxu0 }
 0x15b   :  { %v1716_v33 = vadd.f32 %v2211_v31, %v1715_v32 }
 0x15c   :  { %v2450_v34 = vpop.f32.mrf.mxu0 }
 0x15d   :  { %v2214_v36 = vmul.f32 -1.442695, %v1716_v33  ;;  %v2230_v34 = vld [vmem:[%s3306_s16] ss:$0 sm:$0xff] }
 0x15e   :  { %v1718_v41 = vpop.f32.mrf.mxu0 }
 0x15f   :  { %2642 = vpow2.f32 %v2214_v36 }
 0x160   :  { %v2451_v37 = vpop.f32.mrf.mxu0 }
 0x164   :  { %v2641_v38 = vpop.eup %2640 }
 0x165   :  { %v1590_v39 = vadd.f32 1.0, %v2641_v38 }
 0x167   :  { %2644 = vrcp.f32 %v1590_v39 }
 0x16c   :  { %v2643_v40 = vpop.eup %2642 }
 0x16d   :  { %v1724_v42 = vadd.f32 1.0, %v2643_v40 }
 0x16f   :  { %2646 = vrcp.f32 %v1724_v42 }
 0x174   :  { %v2645_v43 = vpop.eup %2644 }
 0x175   :  { %v1593_v44 = vmul.f32 %v2645_v43, %v1582_v26 }
 0x177   :  { %v1594_v46 = vpack.c.bf16 %v1593_v44, %v1593_v44 }
 0x179   :  { %2443 = vmatmul.mubr.msk.bf16.vlgmr.msra.gmra.mxu1 %vm1618_vm2, %v1594_v46 }
 0x17a   :  { %2453 = vmatpush3.bf16.msra.mxu1 %v2630_v45  ;;  %2456 = vmatprep.mubr.msk.bf16.mxu1 %vm2676_vm0, %v2675_v35 }
 0x17b   :  { %2454 = vmatprep.subr.bf16.mxu1 %v2675_v35 }
 0x17c   :  { %v2647_v49 = vpop.eup %2646 }
 0x17d   :  { %v1727_v50 = vmul.f32 %v2647_v49, %v1716_v33 }
 0x17e   :  { %2455 = vmatpush3.bf16.msra.mxu1 %v2631_v47 }
 0x17f   :  { %v1728_v54 = vpack.c.bf16 %v1727_v50, %v1727_v50  ;;  %2468 = vmatprep.subr.bf16.mxu1 %v2675_v35 }
 0x181   :  { %2457 = vmatmul.mubr.msk.bf16.vlgmr.msra.gmra.mxu1 %vm1618_vm2, %v1728_v54 }
 0x182   :  { %2469 = vmatpush3.bf16.msra.mxu1 %v2632_v51  ;;  %2472 = vmatprep.mubr.msk.bf16.mxu1 %vm2676_vm0, %v2675_v35 }
 0x183   :  { %2470 = vmatprep.subr.bf16.mxu1 %v2675_v35 }
 0x186   :  { %2471 = vmatpush3.bf16.msra.mxu1 %v2633_v55 }
 0x187   :  { %2484 = vmatprep.subr.bf16.mxu1 %v2675_v35 }
 0x189   :  { %2473 = vmatmul.mubr.msk.bf16.vlgmr.msra.gmra.mxu1 %vm1618_vm2, %v1795_v57 }
 0x18a   :  { %2488 = vmatprep.mubr.msk.bf16.mxu1 %vm2676_vm0, %v2675_v35  ;;  %2485 = vmatpush3.bf16.msra.mxu1 %v2638_v15 }
 0x18b   :  { %2486 = vmatprep.subr.bf16.mxu1 %v2675_v35 }
 0x18e   :  { %2487 = vmatpush3.bf16.msra.mxu1 %v2639_v16 }
 0x239   :  { %v1656_v60 = vpop.f32.mrf.mxu1 }
 0x23a   :  { %v1657_v61 = vadd.f32 %v2207_v59, %v1656_v60 }
 0x23b   :  { %v2444_v62 = vpop.f32.mrf.mxu1 }
 0x23c   :  { %v1800_v0 = vpack.c.bf16 %v1657_v61, %v1657_v61 }
 0x23d   :  { %v1659_v1 = vpop.f32.mrf.mxu1 }
 0x23e   :  { %2465 = vmatmul.mubr.msk.bf16.vlgmr.msra.gmra.mxu0 %vm1618_vm2, %v1800_v0 }
 0x23f   :  { %v2445_v2 = vpop.f32.mrf.mxu1  ;;  %2477 = vmatpush3.bf16.msra.mxu0 %v2636_v63  ;;  %2480 = vmatprep.mubr.msk.bf16.mxu0 %vm2676_vm0, %v2675_v35 }
 0x240   :  { %2478 = vmatprep.subr.bf16.mxu0 %v2675_v35 }
 0x241   :  { %v1789_v5 = vpop.f32.mrf.mxu1 }
 0x242   :  { %v1790_v6 = vadd.f32 %v2215_v3, %v1789_v5 }
 0x243   :  { %v2458_v7 = vpop.f32.mrf.mxu1  ;;  %2479 = vmatpush3.bf16.msra.mxu0 %v2637_v4 }
 0x244   :  { %v1915_v8 = vpack.c.bf16 %v1790_v6, %v1790_v6 }
 0x245   :  { %v1792_v9 = vpop.f32.mrf.mxu1 }
 0x246   :  { %2481 = vmatmul.mubr.msk.bf16.vlgmr.msra.gmra.mxu0 %vm1618_vm2, %v1915_v8 }
 0x247   :  { %v2459_v10 = vpop.f32.mrf.mxu1 }
 0x249   :  { %v1909_v11 = vpop.f32.mrf.mxu1 }
 0x24b   :  { %v2474_v12 = vpop.f32.mrf.mxu1 }
 0x24d   :  { %v1912_v13 = vpop.f32.mrf.mxu1 }
 0x24f   :  { %v2475_v14 = vpop.f32.mrf.mxu1 }
 0x2fe   :  { %v1854_v17 = vpop.f32.mrf.mxu0 }
 0x2ff   :  { %v1910_v21 = vadd.f32 %v1909_v11, %v1854_v17 }
 0x300   :  { %v2466_v18 = vpop.f32.mrf.mxu0 }
 0x302   :  { %v1857_v19 = vpop.f32.mrf.mxu0 }
 0x304   :  { %v2467_v20 = vpop.f32.mrf.mxu0 }
 0x306   :  { %v1969_v22 = vpop.f32.mrf.mxu0 }
 0x307   :  { %v1975_v24 = vadd.f32 %v1969_v22, %v1910_v21 }
 0x308   :  { %v2482_v25 = vpop.f32.mrf.mxu0 }
 0x309   :  { %v1983_v26 = vadd.f32 %v2228_v23, %v1975_v24 }
 0x30a   :  { %v1972_v27 = vpop.f32.mrf.mxu0 }
 0x30b   :  { %v2229_v35 = vmul.f32 -1.442695, %v1983_v26 }
 0x30c   :  { %v2483_v28 = vpop.f32.mrf.mxu0 }
 0x30d   :  { %2648 = vpow2.f32 %v2229_v35 }
 0x31a   :  { %v2649_v29 = vpop.eup %2648 }
 0x31b   :  { %v1987_v30 = vadd.f32 1.0, %v2649_v29 }
 0x31d   :  { %2650 = vrcp.f32 %v1987_v30 }
 0x32a   :  { %v2651_v31 = vpop.eup %2650 }
 0x32b   :  { %v1990_v32 = vmul.f32 %v2651_v31, %v1983_v26 }
 0x32d   :  { %v1991_v33 = vpack.c.bf16 %v1990_v32, %v1990_v32 }
 0x32f   :  { %2489 = vmatmul.mubr.msk.bf16.vlgmr.msra.gmra.mxu1 %vm1618_vm2, %v1991_v33 }
 0x3ef   :  { %v2052_v36 = vpop.f32.mrf.mxu1 }
 0x3f0   :  { %v2053_v41 = vadd.f32 %v2230_v34, %v2052_v36 }
 0x3f1   :  { %v2490_v37 = vpop.f32.mrf.mxu1 }
 0x3f2   :  { %2059 = vst.msk [vmem:[#allocation2] sm:$0x3] %vm2058_vm3, %v2053_v41 }
 0x3f3   :  { %v2055_v38 = vpop.f32.mrf.mxu1 }
 0x3f4   :  { %2663 = shalt.err (!%p2660_p4)
}
 0x3f5   :  { %2069 = dma.vmem_to_hbm [thread:$0]  %s2067_s24, 32, %s3307_s17, [#allocation3]   ;;  %v2491_v39 = vpop.f32.mrf.mxu1 }
 0x3f6   :  { %2672 = dma.done.wait [#allocation3], 32  }
 0x3f7   :  { %2673 = vsyncadd [#allocation3], 4294967264 }
 0x3f8   :  { %2073 = vsyncpa [#allocation3], 1 }

</bundles_post_ra>
